<compile_context>
chip_gen: v7x
topology: tpu7x:2x2x1
jax: 0.10.0
libtpu: 0.0.40
codegen_flags: <defaults>
</compile_context>

<pallas_src>
import jax
import jax.numpy as jnp
from jax import lax
from jax.experimental import pallas as pl
from jax.experimental.pallas import tpu as pltpu

EPS = 1e-5
LANE = 128


def _round_up(x, m):
    return (x + m - 1) // m * m


def _conv3x3_flat(xf, w_ref, tile, whp):
    """3x3 'same' conv on flattened, spatially padded rows.

    xf:    ((tile+2)*whp, cin_p) bf16 -- rows are the pixels of (tile+2) padded
           image rows of width whp (col 0 and cols >= wh+1 hold the zero pad).
    w_ref: (9, cin_p, cout_p) bf16 ref, tap index = 3*dy + dx.
    Returns (tile*whp, cout_p) f32. Rows that land on padding columns carry
    garbage and must be masked by the caller.
    """
    m = tile * whp
    cout_p = w_ref.shape[-1]
    acc_dx = []
    for dx in range(3):
        acc = jnp.zeros((m, cout_p), jnp.float32)
        for dy in range(3):
            lhs = xf[dy * whp:dy * whp + m, :]          # aligned sublane slice
            acc = acc + jnp.dot(lhs, w_ref[3 * dy + dx],
                                preferred_element_type=jnp.float32)
        acc_dx.append(acc)
    # out[r] = acc_dx[1][r] + acc_dx[0][r-1] + acc_dx[2][r+1]
    zrow = jnp.zeros((1, cout_p), jnp.float32)
    z = acc_dx[1]
    z = z + jnp.concatenate([zrow, acc_dx[0][:-1]], axis=0)
    z = z + jnp.concatenate([acc_dx[2][1:], zrow], axis=0)
    return z


def down_forward(x_nchw, params):
    """Down.forward: MaxPool2d(2) -> Conv3x3 -> BN -> ReLU -> Conv3x3 -> BN -> ReLU."""
    n, cin, h, w = x_nchw.shape
    assert h % 2 == 0 and w % 2 == 0
    cmid = params["w1"].shape[0]
    cout = params["w2"].shape[0]

    hh, wh = h // 2, w // 2
    cin_p = _round_up(cin, LANE)
    cmid_p = _round_up(cmid, LANE)
    cout_p = _round_up(cout, LANE)
    whp = _round_up(wh + 2, 16)       # padded pooled width (conv pad + alignment)
    tile = min(8, hh)                 # pooled rows per grid step
    assert hh % tile == 0
    n_tiles = hh // tile

    f32, bf16 = jnp.float32, jnp.bfloat16

    # ---------------- preprocessing glue (single fused pad + cast) -----------
    x = jnp.transpose(x_nchw, (0, 2, 3, 1))                         # NHWC
    x = jnp.pad(x, ((0, 0), (0, 0), (2, 2 * whp - w - 2), (0, cin_p - cin)))
    x = x.astype(bf16)                                              # (N, H, 2*WHP, CIN_P)
    # Pure-view reshape: axis2 = raw_row_parity*WHP + pooled_col,
    #                    axis3 = raw_col_parity*CIN_P + channel.
    xv = x.reshape(n, hh, 2 * whp, 2 * cin_p)

    def prep_w(w_oihw, ci_p, co_p):
        o, i, _, _ = w_oihw.shape
        wm = jnp.transpose(w_oihw, (2, 3, 1, 0)).reshape(9, i, o)   # (kh*3+kw, I, O)
        wm = jnp.pad(wm, ((0, 0), (0, ci_p - i), (0, co_p - o)))
        return wm.astype(bf16)

    w1 = prep_w(params["w1"], cin_p, cmid_p)
    w2 = prep_w(params["w2"], cmid_p, cout_p)
    # Conv biases b1/b2 are intentionally not used: a per-channel bias before
    # training-mode BatchNorm cancels exactly against the batch mean.

    g1 = jnp.pad(params["g1"], (0, cmid_p - cmid)).astype(f32)
    be1 = jnp.pad(params["be1"], (0, cmid_p - cmid)).astype(f32)
    g2 = jnp.pad(params["g2"], (0, cout_p - cout)).astype(f32)
    be2 = jnp.pad(params["be2"], (0, cout_p - cout)).astype(f32)

    cparams = pltpu.CompilerParams(
        dimension_semantics=("parallel", "parallel"),
        vmem_limit_bytes=64 * 1024 * 1024,
    )

    # ------------------------------ kernels ----------------------------------
    def pool_conv1_kernel(top_ref, mid_ref, bot_ref, w_ref, z_ref, st_ref):
        hp = pl.program_id(1)
        last = pl.num_programs(1) - 1

        def pool2x2(b):                 # (R, 2*WHP, 2*CIN_P) -> (R, WHP, CIN_P)
            m = jnp.maximum(b[:, :whp, :], b[:, whp:, :])     # raw-row parity
            return jnp.maximum(m[..., :cin_p], m[..., cin_p:])  # raw-col parity

        top = pool2x2(top_ref[0])                             # (1, WHP, CIN_P)
        mid = pool2x2(mid_ref[0])                             # (TILE, WHP, CIN_P)
        bot = pool2x2(bot_ref[0])                             # (1, WHP, CIN_P)
        top = jnp.where(hp == 0, jnp.zeros_like(top), top)    # conv zero-pad row
        bot = jnp.where(hp == last, jnp.zeros_like(bot), bot)
        xw = jnp.concatenate([top, mid, bot], axis=0)         # (TILE+2, WHP, CIN_P)
        xf = xw.reshape((tile + 2) * whp, cin_p)

        z = _conv3x3_flat(xf, w_ref, tile, whp).reshape(tile, whp, cmid_p)
        col = lax.broadcasted_iota(jnp.int32, (1, whp, 1), 1)
        z = jnp.where((col >= 1) & (col <= wh), z, 0.0)       # zero W-pad cols

        z_ref[0] = z.astype(z_ref.dtype)
        s = jnp.sum(z, axis=(0, 1))
        ss = jnp.sum(z * z, axis=(0, 1))
        st_ref[0, 0] = jnp.concatenate(
            [s[None], ss[None], jnp.zeros((6, cmid_p), jnp.float32)], axis=0)

    def bn1_conv2_kernel(top_ref, mid_ref, bot_ref, sc_ref, sh_ref, w_ref,
                         z_ref, st_ref):
        hp = pl.program_id(1)
        last = pl.num_programs(1) - 1
        zw = jnp.concatenate([top_ref[0], mid_ref[0], bot_ref[0]], axis=0)
        # Fused BN1 (single FMA) + ReLU1 applied to the loaded pre-BN conv1 tile
        y = jnp.maximum(zw.astype(jnp.float32) * sc_ref[...] + sh_ref[...], 0.0)
        # Zero positions that are conv2 zero-padding: W pad columns, and the
        # halo rows at the image top/bottom.
        col = lax.broadcasted_iota(jnp.int32, (tile + 2, whp, 1), 1)
        row = lax.broadcasted_iota(jnp.int32, (tile + 2, whp, 1), 0)
        ok = (col >= 1) & (col <= wh)
        ok = ok & jnp.logical_not((row == 0) & (hp == 0))
        ok = ok & jnp.logical_not((row == tile + 1) & (hp == last))
        y = jnp.where(ok, y, 0.0)
        xf = y.astype(jnp.bfloat16).reshape((tile + 2) * whp, cmid_p)

        z = _conv3x3_flat(xf, w_ref, tile, whp).reshape(tile, whp, cout_p)
        colz = lax.broadcasted_iota(jnp.int32, (1, whp, 1), 1)
        z = jnp.where((colz >= 1) & (colz <= wh), z, 0.0)

        z_ref[0] = z.astype(z_ref.dtype)
        s = jnp.sum(z, axis=(0, 1))
        ss = jnp.sum(z * z, axis=(0, 1))
        st_ref[0, 0] = jnp.concatenate(
            [s[None], ss[None], jnp.zeros((6, cout_p), jnp.float32)], axis=0)

    def bn_relu_kernel(z_ref, sc_ref, sh_ref, o_ref):
        o_ref[...] = jnp.maximum(
            z_ref[...] * sc_ref[...] + sh_ref[...], 0.0).astype(o_ref.dtype)

    # ------------------------- stage 1: pool + conv1 -------------------------
    z1, st1 = pl.pallas_call(
        pool_conv1_kernel,
        grid=(n, n_tiles),
        in_specs=[
            pl.BlockSpec((1, 1, 2 * whp, 2 * cin_p),
                         lambda b, t: (b, jnp.maximum(t * tile - 1, 0), 0, 0)),
            pl.BlockSpec((1, tile, 2 * whp, 2 * cin_p),
                         lambda b, t: (b, t, 0, 0)),
            pl.BlockSpec((1, 1, 2 * whp, 2 * cin_p),
                         lambda b, t: (b, jnp.minimum((t + 1) * tile, hh - 1), 0, 0)),
            pl.BlockSpec((9, cin_p, cmid_p), lambda b, t: (0, 0, 0)),
        ],
        out_specs=(
            pl.BlockSpec((1, tile, whp, cmid_p), lambda b, t: (b, t, 0, 0)),
            pl.BlockSpec((1, 1, 8, cmid_p), lambda b, t: (b, t, 0, 0)),
        ),
        out_shape=(
            jax.ShapeDtypeStruct((n, hh, whp, cmid_p), bf16),
            jax.ShapeDtypeStruct((n, n_tiles, 8, cmid_p), f32),
        ),
        compiler_params=cparams,
    )(xv, xv, xv, w1)

    def bn_scale_shift(st, gamma, beta):
        # tiny O(C) reduction of the per-tile partial sums (full-M statistics)
        cnt = n * hh * wh
        s = jnp.sum(st[:, :, 0, :], axis=(0, 1))
        ss = jnp.sum(st[:, :, 1, :], axis=(0, 1))
        mean = s / cnt
        var = jnp.maximum(ss / cnt - mean * mean, 0.0)
        scale = gamma * lax.rsqrt(var + EPS)
        shift = beta - mean * scale
        return scale.reshape(1, -1).astype(f32), shift.reshape(1, -1).astype(f32)

    sc1, sh1 = bn_scale_shift(st1, g1, be1)

    # --------------------- stage 2: BN1 + ReLU1 + conv2 ----------------------
    z2, st2 = pl.pallas_call(
        bn1_conv2_kernel,
        grid=(n, n_tiles),
        in_specs=[
            pl.BlockSpec((1, 1, whp, cmid_p),
                         lambda b, t: (b, jnp.maximum(t * tile - 1, 0), 0, 0)),
            pl.BlockSpec((1, tile, whp, cmid_p), lambda b, t: (b, t, 0, 0)),
            pl.BlockSpec((1, 1, whp, cmid_p),
                         lambda b, t: (b, jnp.minimum((t + 1) * tile, hh - 1), 0, 0)),
            pl.BlockSpec((1, cmid_p), lambda b, t: (0, 0)),
            pl.BlockSpec((1, cmid_p), lambda b, t: (0, 0)),
            pl.BlockSpec((9, cmid_p, cout_p), lambda b, t: (0, 0, 0)),
        ],
        out_specs=(
            pl.BlockSpec((1, tile, whp, cout_p), lambda b, t: (b, t, 0, 0)),
            pl.BlockSpec((1, 1, 8, cout_p), lambda b, t: (b, t, 0, 0)),
        ),
        out_shape=(
            jax.ShapeDtypeStruct((n, hh, whp, cout_p), f32),
            jax.ShapeDtypeStruct((n, n_tiles, 8, cout_p), f32),
        ),
        compiler_params=cparams,
    )(z1, z1, z1, sc1, sh1, w2)

    sc2, sh2 = bn_scale_shift(st2, g2, be2)

    # ------------------------ stage 3: BN2 + ReLU2 ---------------------------
    y = pl.pallas_call(
        bn_relu_kernel,
        grid=(n, n_tiles),
        in_specs=[
            pl.BlockSpec((1, tile, whp, cout_p), lambda b, t: (b, t, 0, 0)),
            pl.BlockSpec((1, cout_p), lambda b, t: (0, 0)),
            pl.BlockSpec((1, cout_p), lambda b, t: (0, 0)),
        ],
        out_specs=pl.BlockSpec((1, tile, whp, cout_p), lambda b, t: (b, t, 0, 0)),
        out_shape=jax.ShapeDtypeStruct((n, hh, whp, cout_p), f32),
        compiler_params=cparams,
    )(z2, sc2, sh2)

    y = y[:, :, 1:wh + 1, :cout]                  # drop W-pad cols / pad channels
    return jnp.transpose(y, (0, 3, 1, 2))         # NHWC -> NCHW


# --------------------------- parameter initialization ------------------------
def init_params(key, cin, cout):
    cmid = cout  # DoubleConv: mid_channels defaults to out_channels
    ks = jax.random.split(key, 8)

    def conv_w(k, o, i):
        bound = 1.0 / (i * 9) ** 0.5
        return jax.random.uniform(k, (o, i, 3, 3), jnp.float32, -bound, bound)

    def conv_b(k, o, i):
        bound = 1.0 / (i * 9) ** 0.5
        return jax.random.uniform(k, (o,), jnp.float32, -bound, bound)

    return {
        "w1": conv_w(ks[0], cmid, cin),
        "b1": conv_b(ks[1], cmid, cin),   # unused by the kernel (cancels in BN)
        "g1": 1.0 + 0.1 * jax.random.normal(ks[2], (cmid,), jnp.float32),
        "be1": 0.1 * jax.random.normal(ks[3], (cmid,), jnp.float32),
        "w2": conv_w(ks[4], cout, cmid),
        "b2": conv_b(ks[5], cout, cmid),  # unused by the kernel (cancels in BN)
        "g2": 1.0 + 0.1 * jax.random.normal(ks[6], (cout,), jnp.float32),
        "be2": 0.1 * jax.random.normal(ks[7], (cout,), jnp.float32),
    }


# --------------------------- pure-JAX reference -------------------------------
def reference_forward(x_nchw, params):
    y = jax.lax.reduce_window(x_nchw, -jnp.inf, jax.lax.max,
                              (1, 1, 2, 2), (1, 1, 2, 2), "VALID")

    def block(x, w, b, g, be):
        z = jax.lax.conv_general_dilated(
            x, w, (1, 1), ((1, 1), (1, 1)),
            dimension_numbers=("NCHW", "OIHW", "NCHW"),
            precision=jax.lax.Precision.HIGHEST)
        z = z + b[None, :, None, None]
        mean = jnp.mean(z, axis=(0, 2, 3), keepdims=True)
        var = jnp.mean((z - mean) ** 2, axis=(0, 2, 3), keepdims=True)
        z = (z - mean) * jax.lax.rsqrt(var + EPS)
        z = z * g[None, :, None, None] + be[None, :, None, None]
        return jnp.maximum(z, 0.0)

    y = block(y, params["w1"], params["b1"], params["g1"], params["be1"])
    y = block(y, params["w2"], params["b2"], params["g2"], params["be2"])
    return y


# ----------------------------------- main -------------------------------------
if __name__ == "__main__":
    key = jax.random.PRNGKey(0)
    kx, kp = jax.random.split(key)

    N, Cin, H, W = 2, 4, 16, 16
    Cout = 8

    x = jax.random.normal(kx, (N, Cin, H, W), jnp.float32)
    params = init_params(kp, Cin, Cout)

    y = jax.jit(down_forward)(x, params)
    y = jax.block_until_ready(y)

    assert y.shape == (N, Cout, H // 2, W // 2), y.shape

    ref = reference_forward(x, params)
    max_err = float(jnp.max(jnp.abs(y - ref)))
    # Tolerance accounts for intentional bf16 MXU operands (f32 accumulation &
    # f32 batch statistics); a structural bug (wrong tap / shift / stats) would
    # produce O(1) errors and still fail this check.
    if not max_err < 5e-2:
        raise AssertionError(f"kernel vs reference mismatch: max abs err = {max_err}")

    print("KERNEL_OK")
</pallas_src>

<mosaic_0001>
module attributes {stable_mosaic.version = 11 : i64} {
  func.func @pool_conv1_kernel(%arg0: i32, %arg1: i32, %arg2: memref<1x1x32x256xbf16, #tpu.memory_space<vmem>>, %arg3: memref<1x8x32x256xbf16, #tpu.memory_space<vmem>>, %arg4: memref<1x1x32x256xbf16, #tpu.memory_space<vmem>>, %arg5: memref<9x128x128xbf16, #tpu.memory_space<vmem>>, %arg6: memref<1x8x16x128xbf16, #tpu.memory_space<vmem>>, %arg7: memref<1x1x8x128xf32, #tpu.memory_space<vmem>>) attributes {dimension_semantics = [#tpu.dimension_semantics<parallel>, #tpu.dimension_semantics<parallel>], iteration_bounds = array<i64: 2, 1>, scalar_prefetch = 0 : i64, scratch_operands = 0 : i64, tpu.core_type = #tpu.core_type<tc>, window_params = [{transform_indices = @transform_0, window_bounds = array<i64: 1, 1, 32, 256>}, {transform_indices = @transform_1, window_bounds = array<i64: 1, 8, 32, 256>}, {transform_indices = @transform_2, window_bounds = array<i64: 1, 1, 32, 256>}, {pipeline_mode = #tpu.pipeline_mode<synchronous>, transform_indices = @transform_3, window_bounds = array<i64: 9, 128, 128>}, {transform_indices = @transform_4, window_bounds = array<i64: 1, 8, 16, 128>}, {transform_indices = @transform_5, window_bounds = array<i64: 1, 1, 8, 128>}]} {
    %c0 = arith.constant 0 : index
    %c0_0 = arith.constant 0 : index
    %c0_1 = arith.constant 0 : index
    %c0_2 = arith.constant 0 : index
    %0 = vector.load %arg2[%c0, %c0_0, %c0_1, %c0_2] : memref<1x1x32x256xbf16, #tpu.memory_space<vmem>>, vector<1x1x32x256xbf16>
    %1 = vector.shape_cast %0 : vector<1x1x32x256xbf16> to vector<1x32x256xbf16>
    %2 = vector.extract_strided_slice %1 {offsets = [0, 0, 0], sizes = [1, 16, 256], strides = [1, 1, 1]} : vector<1x32x256xbf16> to vector<1x16x256xbf16>
    %3 = vector.extract_strided_slice %1 {offsets = [0, 16, 0], sizes = [1, 16, 256], strides = [1, 1, 1]} : vector<1x32x256xbf16> to vector<1x16x256xbf16>
    %4 = arith.maximumf %2, %3 : vector<1x16x256xbf16>
    %5 = vector.extract_strided_slice %4 {offsets = [0, 0, 0], sizes = [1, 16, 128], strides = [1, 1, 1]} : vector<1x16x256xbf16> to vector<1x16x128xbf16>
    %6 = vector.extract_strided_slice %4 {offsets = [0, 0, 128], sizes = [1, 16, 128], strides = [1, 1, 1]} : vector<1x16x256xbf16> to vector<1x16x128xbf16>
    %7 = arith.maximumf %5, %6 : vector<1x16x128xbf16>
    %c0_3 = arith.constant 0 : index
    %c0_4 = arith.constant 0 : index
    %c0_5 = arith.constant 0 : index
    %c0_6 = arith.constant 0 : index
    %8 = vector.load %arg3[%c0_3, %c0_4, %c0_5, %c0_6] : memref<1x8x32x256xbf16, #tpu.memory_space<vmem>>, vector<1x8x32x256xbf16>
    %9 = vector.shape_cast %8 : vector<1x8x32x256xbf16> to vector<8x32x256xbf16>
    %10 = vector.extract_strided_slice %9 {offsets = [0, 0, 0], sizes = [8, 16, 256], strides = [1, 1, 1]} : vector<8x32x256xbf16> to vector<8x16x256xbf16>
    %11 = vector.extract_strided_slice %9 {offsets = [0, 16, 0], sizes = [8, 16, 256], strides = [1, 1, 1]} : vector<8x32x256xbf16> to vector<8x16x256xbf16>
    %12 = arith.maximumf %10, %11 : vector<8x16x256xbf16>
    %13 = vector.extract_strided_slice %12 {offsets = [0, 0, 0], sizes = [8, 16, 128], strides = [1, 1, 1]} : vector<8x16x256xbf16> to vector<8x16x128xbf16>
    %14 = vector.extract_strided_slice %12 {offsets = [0, 0, 128], sizes = [8, 16, 128], strides = [1, 1, 1]} : vector<8x16x256xbf16> to vector<8x16x128xbf16>
    %15 = arith.maximumf %13, %14 : vector<8x16x128xbf16>
    %c0_7 = arith.constant 0 : index
    %c0_8 = arith.constant 0 : index
    %c0_9 = arith.constant 0 : index
    %c0_10 = arith.constant 0 : index
    %16 = vector.load %arg4[%c0_7, %c0_8, %c0_9, %c0_10] : memref<1x1x32x256xbf16, #tpu.memory_space<vmem>>, vector<1x1x32x256xbf16>
    %17 = vector.shape_cast %16 : vector<1x1x32x256xbf16> to vector<1x32x256xbf16>
    %18 = vector.extract_strided_slice %17 {offsets = [0, 0, 0], sizes = [1, 16, 256], strides = [1, 1, 1]} : vector<1x32x256xbf16> to vector<1x16x256xbf16>
    %19 = vector.extract_strided_slice %17 {offsets = [0, 16, 0], sizes = [1, 16, 256], strides = [1, 1, 1]} : vector<1x32x256xbf16> to vector<1x16x256xbf16>
    %20 = arith.maximumf %18, %19 : vector<1x16x256xbf16>
    %21 = vector.extract_strided_slice %20 {offsets = [0, 0, 0], sizes = [1, 16, 128], strides = [1, 1, 1]} : vector<1x16x256xbf16> to vector<1x16x128xbf16>
    %22 = vector.extract_strided_slice %20 {offsets = [0, 0, 128], sizes = [1, 16, 128], strides = [1, 1, 1]} : vector<1x16x256xbf16> to vector<1x16x128xbf16>
    %23 = arith.maximumf %21, %22 : vector<1x16x128xbf16>
    %c0_i32 = arith.constant 0 : i32
    %24 = arith.cmpi eq, %arg1, %c0_i32 : i32
    %cst = arith.constant 0.000000e+00 : bf16
    %25 = vector.broadcast %cst : bf16 to vector<1x16x128xbf16>
    %26 = arith.select %24, %25, %7 : vector<1x16x128xbf16>
    %c0_i32_11 = arith.constant 0 : i32
    %27 = arith.cmpi eq, %arg1, %c0_i32_11 : i32
    %cst_12 = arith.constant 0.000000e+00 : bf16
    %28 = vector.broadcast %cst_12 : bf16 to vector<1x16x128xbf16>
    %29 = arith.select %27, %28, %23 : vector<1x16x128xbf16>
    %30 = tpu.concatenate %26, %15, %29 in 0 : vector<1x16x128xbf16>, vector<8x16x128xbf16>, vector<1x16x128xbf16> -> vector<10x16x128xbf16>
    %31 = vector.shape_cast %30 : vector<10x16x128xbf16> to vector<160x128xbf16>
    %cst_13 = arith.constant 0.000000e+00 : f32
    %32 = vector.broadcast %cst_13 : f32 to vector<128x128xf32>
    %33 = vector.extract_strided_slice %31 {offsets = [0, 0], sizes = [128, 128], strides = [1, 1]} : vector<160x128xbf16> to vector<128x128xbf16>
    %c0_14 = arith.constant 0 : index
    %c0_15 = arith.constant 0 : index
    %c0_16 = arith.constant 0 : index
    %34 = vector.load %arg5[%c0_14, %c0_15, %c0_16] : memref<9x128x128xbf16, #tpu.memory_space<vmem>>, vector<1x128x128xbf16>
    %35 = vector.shape_cast %34 : vector<1x128x128xbf16> to vector<128x128xbf16>
    %cst_17 = arith.constant dense<0.000000e+00> : vector<128x128xf32>
    %36 = tpu.matmul %33, %35, %cst_17 {dimension_numbers = #tpu.dot_dimension_numbers<[1], [0], [0], [1], [0, 0, 1, 1], [], []>} : vector<128x128xbf16>, vector<128x128xbf16>, vector<128x128xf32> -> vector<128x128xf32>
    %37 = arith.addf %32, %36 : vector<128x128xf32>
    %38 = vector.extract_strided_slice %31 {offsets = [16, 0], sizes = [128, 128], strides = [1, 1]} : vector<160x128xbf16> to vector<128x128xbf16>
    %c3 = arith.constant 3 : index
    %c0_18 = arith.constant 0 : index
    %c0_19 = arith.constant 0 : index
    %39 = vector.load %arg5[%c3, %c0_18, %c0_19] : memref<9x128x128xbf16, #tpu.memory_space<vmem>>, vector<1x128x128xbf16>
    %40 = vector.shape_cast %39 : vector<1x128x128xbf16> to vector<128x128xbf16>
    %cst_20 = arith.constant dense<0.000000e+00> : vector<128x128xf32>
    %41 = tpu.matmul %38, %40, %cst_20 {dimension_numbers = #tpu.dot_dimension_numbers<[1], [0], [0], [1], [0, 0, 1, 1], [], []>} : vector<128x128xbf16>, vector<128x128xbf16>, vector<128x128xf32> -> vector<128x128xf32>
    %42 = arith.addf %37, %41 : vector<128x128xf32>
    %43 = vector.extract_strided_slice %31 {offsets = [32, 0], sizes = [128, 128], strides = [1, 1]} : vector<160x128xbf16> to vector<128x128xbf16>
    %c6 = arith.constant 6 : index
    %c0_21 = arith.constant 0 : index
    %c0_22 = arith.constant 0 : index
    %44 = vector.load %arg5[%c6, %c0_21, %c0_22] : memref<9x128x128xbf16, #tpu.memory_space<vmem>>, vector<1x128x128xbf16>
    %45 = vector.shape_cast %44 : vector<1x128x128xbf16> to vector<128x128xbf16>
    %cst_23 = arith.constant dense<0.000000e+00> : vector<128x128xf32>
    %46 = tpu.matmul %43, %45, %cst_23 {dimension_numbers = #tpu.dot_dimension_numbers<[1], [0], [0], [1], [0, 0, 1, 1], [], []>} : vector<128x128xbf16>, vector<128x128xbf16>, vector<128x128xf32> -> vector<128x128xf32>
    %47 = arith.addf %42, %46 : vector<128x128xf32>
    %cst_24 = arith.constant 0.000000e+00 : f32
    %48 = vector.broadcast %cst_24 : f32 to vector<128x128xf32>
    %49 = vector.extract_strided_slice %31 {offsets = [0, 0], sizes = [128, 128], strides = [1, 1]} : vector<160x128xbf16> to vector<128x128xbf16>
    %c1 = arith.constant 1 : index
    %c0_25 = arith.constant 0 : index
    %c0_26 = arith.constant 0 : index
    %50 = vector.load %arg5[%c1, %c0_25, %c0_26] : memref<9x128x128xbf16, #tpu.memory_space<vmem>>, vector<1x128x128xbf16>
    %51 = vector.shape_cast %50 : vector<1x128x128xbf16> to vector<128x128xbf16>
    %cst_27 = arith.constant dense<0.000000e+00> : vector<128x128xf32>
    %52 = tpu.matmul %49, %51, %cst_27 {dimension_numbers = #tpu.dot_dimension_numbers<[1], [0], [0], [1], [0, 0, 1, 1], [], []>} : vector<128x128xbf16>, vector<128x128xbf16>, vector<128x128xf32> -> vector<128x128xf32>
    %53 = arith.addf %48, %52 : vector<128x128xf32>
    %54 = vector.extract_strided_slice %31 {offsets = [16, 0], sizes = [128, 128], strides = [1, 1]} : vector<160x128xbf16> to vector<128x128xbf16>
    %c4 = arith.constant 4 : index
    %c0_28 = arith.constant 0 : index
    %c0_29 = arith.constant 0 : index
    %55 = vector.load %arg5[%c4, %c0_28, %c0_29] : memref<9x128x128xbf16, #tpu.memory_space<vmem>>, vector<1x128x128xbf16>
    %56 = vector.shape_cast %55 : vector<1x128x128xbf16> to vector<128x128xbf16>
    %cst_30 = arith.constant dense<0.000000e+00> : vector<128x128xf32>
    %57 = tpu.matmul %54, %56, %cst_30 {dimension_numbers = #tpu.dot_dimension_numbers<[1], [0], [0], [1], [0, 0, 1, 1], [], []>} : vector<128x128xbf16>, vector<128x128xbf16>, vector<128x128xf32> -> vector<128x128xf32>
    %58 = arith.addf %53, %57 : vector<128x128xf32>
    %59 = vector.extract_strided_slice %31 {offsets = [32, 0], sizes = [128, 128], strides = [1, 1]} : vector<160x128xbf16> to vector<128x128xbf16>
    %c7 = arith.constant 7 : index
    %c0_31 = arith.constant 0 : index
    %c0_32 = arith.constant 0 : index
    %60 = vector.load %arg5[%c7, %c0_31, %c0_32] : memref<9x128x128xbf16, #tpu.memory_space<vmem>>, vector<1x128x128xbf16>
    %61 = vector.shape_cast %60 : vector<1x128x128xbf16> to vector<128x128xbf16>
    %cst_33 = arith.constant dense<0.000000e+00> : vector<128x128xf32>
    %62 = tpu.matmul %59, %61, %cst_33 {dimension_numbers = #tpu.dot_dimension_numbers<[1], [0], [0], [1], [0, 0, 1, 1], [], []>} : vector<128x128xbf16>, vector<128x128xbf16>, vector<128x128xf32> -> vector<128x128xf32>
    %63 = arith.addf %58, %62 : vector<128x128xf32>
    %cst_34 = arith.constant 0.000000e+00 : f32
    %64 = vector.broadcast %cst_34 : f32 to vector<128x128xf32>
    %65 = vector.extract_strided_slice %31 {offsets = [0, 0], sizes = [128, 128], strides = [1, 1]} : vector<160x128xbf16> to vector<128x128xbf16>
    %c2 = arith.constant 2 : index
    %c0_35 = arith.constant 0 : index
    %c0_36 = arith.constant 0 : index
    %66 = vector.load %arg5[%c2, %c0_35, %c0_36] : memref<9x128x128xbf16, #tpu.memory_space<vmem>>, vector<1x128x128xbf16>
    %67 = vector.shape_cast %66 : vector<1x128x128xbf16> to vector<128x128xbf16>
    %cst_37 = arith.constant dense<0.000000e+00> : vector<128x128xf32>
    %68 = tpu.matmul %65, %67, %cst_37 {dimension_numbers = #tpu.dot_dimension_numbers<[1], [0], [0], [1], [0, 0, 1, 1], [], []>} : vector<128x128xbf16>, vector<128x128xbf16>, vector<128x128xf32> -> vector<128x128xf32>
    %69 = arith.addf %64, %68 : vector<128x128xf32>
    %70 = vector.extract_strided_slice %31 {offsets = [16, 0], sizes = [128, 128], strides = [1, 1]} : vector<160x128xbf16> to vector<128x128xbf16>
    %c5 = arith.constant 5 : index
    %c0_38 = arith.constant 0 : index
    %c0_39 = arith.constant 0 : index
    %71 = vector.load %arg5[%c5, %c0_38, %c0_39] : memref<9x128x128xbf16, #tpu.memory_space<vmem>>, vector<1x128x128xbf16>
    %72 = vector.shape_cast %71 : vector<1x128x128xbf16> to vector<128x128xbf16>
    %cst_40 = arith.constant dense<0.000000e+00> : vector<128x128xf32>
    %73 = tpu.matmul %70, %72, %cst_40 {dimension_numbers = #tpu.dot_dimension_numbers<[1], [0], [0], [1], [0, 0, 1, 1], [], []>} : vector<128x128xbf16>, vector<128x128xbf16>, vector<128x128xf32> -> vector<128x128xf32>
    %74 = arith.addf %69, %73 : vector<128x128xf32>
    %75 = vector.extract_strided_slice %31 {offsets = [32, 0], sizes = [128, 128], strides = [1, 1]} : vector<160x128xbf16> to vector<128x128xbf16>
    %c8 = arith.constant 8 : index
    %c0_41 = arith.constant 0 : index
    %c0_42 = arith.constant 0 : index
    %76 = vector.load %arg5[%c8, %c0_41, %c0_42] : memref<9x128x128xbf16, #tpu.memory_space<vmem>>, vector<1x128x128xbf16>
    %77 = vector.shape_cast %76 : vector<1x128x128xbf16> to vector<128x128xbf16>
    %cst_43 = arith.constant dense<0.000000e+00> : vector<128x128xf32>
    %78 = tpu.matmul %75, %77, %cst_43 {dimension_numbers = #tpu.dot_dimension_numbers<[1], [0], [0], [1], [0, 0, 1, 1], [], []>} : vector<128x128xbf16>, vector<128x128xbf16>, vector<128x128xf32> -> vector<128x128xf32>
    %79 = arith.addf %74, %78 : vector<128x128xf32>
    %cst_44 = arith.constant 0.000000e+00 : f32
    %80 = vector.broadcast %cst_44 : f32 to vector<1x128xf32>
    %81 = vector.extract_strided_slice %47 {offsets = [0, 0], sizes = [127, 128], strides = [1, 1]} : vector<128x128xf32> to vector<127x128xf32>
    %82 = tpu.concatenate %80, %81 in 0 : vector<1x128xf32>, vector<127x128xf32> -> vector<128x128xf32>
    %83 = arith.addf %63, %82 : vector<128x128xf32>
    %84 = vector.extract_strided_slice %79 {offsets = [1, 0], sizes = [127, 128], strides = [1, 1]} : vector<128x128xf32> to vector<127x128xf32>
    %85 = tpu.concatenate %84, %80 in 0 : vector<127x128xf32>, vector<1x128xf32> -> vector<128x128xf32>
    %86 = arith.addf %83, %85 : vector<128x128xf32>
    %87 = vector.shape_cast %86 : vector<128x128xf32> to vector<8x16x128xf32>
    %88 = tpu.iota {dimensions = array<i32: 1>} : vector<1x16x1xi32>
    %c1_i32 = arith.constant 1 : i32
    %89 = vector.broadcast %c1_i32 : i32 to vector<1x16x1xi32>
    %90 = arith.cmpi sge, %88, %89 : vector<1x16x1xi32>
    %c8_i32 = arith.constant 8 : i32
    %91 = vector.broadcast %c8_i32 : i32 to vector<1x16x1xi32>
    %92 = arith.cmpi sle, %88, %91 : vector<1x16x1xi32>
    %93 = arith.andi %90, %92 : vector<1x16x1xi1>
    %cst_45 = arith.constant 0.000000e+00 : f32
    %94 = vector.shape_cast %93 : vector<1x16x1xi1> to vector<1x16x1xi1>
    %95 = vector.broadcast %94 : vector<1x16x1xi1> to vector<8x16x128xi1>
    %96 = vector.broadcast %cst_45 : f32 to vector<8x16x128xf32>
    %97 = arith.select %95, %87, %96 : vector<8x16x128xi1>, vector<8x16x128xf32>
    %98 = arith.truncf %97 : vector<8x16x128xf32> to vector<8x16x128xbf16>
    %c0_46 = arith.constant 0 : index
    %c0_47 = arith.constant 0 : index
    %c0_48 = arith.constant 0 : index
    %c0_49 = arith.constant 0 : index
    %99 = vector.load %arg6[%c0_46, %c0_47, %c0_48, %c0_49] : memref<1x8x16x128xbf16, #tpu.memory_space<vmem>>, vector<1x8x16x128xbf16>
    %100 = vector.shape_cast %99 : vector<1x8x16x128xbf16> to vector<8x16x128xbf16>
    %101 = vector.shape_cast %98 : vector<8x16x128xbf16> to vector<1x8x16x128xbf16>
    tpu.vector_store %arg6[%c0_46, %c0_47, %c0_48, %c0_49], %101 {strides = array<i32>} : memref<1x8x16x128xbf16, #tpu.memory_space<vmem>>, vector<1x8x16x128xbf16>,
    %cst_50 = arith.constant dense<0.000000e+00> : vector<128xf32>
    %102 = vector.multi_reduction <add>, %97, %cst_50 [0, 1] : vector<8x16x128xf32> to vector<128xf32>
    %103 = arith.mulf %97, %97 : vector<8x16x128xf32>
    %cst_51 = arith.constant dense<0.000000e+00> : vector<128xf32>
    %104 = vector.multi_reduction <add>, %103, %cst_51 [0, 1] : vector<8x16x128xf32> to vector<128xf32>
    %105 = vector.shape_cast %102 : vector<128xf32> to vector<1x128xf32>
    %106 = vector.shape_cast %104 : vector<128xf32> to vector<1x128xf32>
    %cst_52 = arith.constant 0.000000e+00 : f32
    %107 = vector.broadcast %cst_52 : f32 to vector<6x128xf32>
    %108 = tpu.concatenate %105, %106, %107 in 0 : vector<1x128xf32>, vector<1x128xf32>, vector<6x128xf32> -> vector<8x128xf32>
    %c0_53 = arith.constant 0 : index
    %c0_54 = arith.constant 0 : index
    %c0_55 = arith.constant 0 : index
    %c0_56 = arith.constant 0 : index
    %109 = vector.load %arg7[%c0_53, %c0_54, %c0_55, %c0_56] : memref<1x1x8x128xf32, #tpu.memory_space<vmem>>, vector<1x1x8x128xf32>
    %110 = vector.shape_cast %109 : vector<1x1x8x128xf32> to vector<8x128xf32>
    %111 = vector.shape_cast %108 : vector<8x128xf32> to vector<1x1x8x128xf32>
    tpu.vector_store %arg7[%c0_53, %c0_54, %c0_55, %c0_56], %111 {strides = array<i32>} : memref<1x1x8x128xf32, #tpu.memory_space<vmem>>, vector<1x1x8x128xf32>,
    return
  }
  func.func @transform_0(%arg0: i32, %arg1: i32) -> (i32, i32, i32, i32) {
    %c8_i32 = arith.constant 8 : i32
    %0 = arith.muli %arg1, %c8_i32 : i32
    %c1_i32 = arith.constant 1 : i32
    %1 = arith.subi %0, %c1_i32 : i32
    %c0_i32 = arith.constant 0 : i32
    %2 = arith.maxsi %1, %c0_i32 : i32
    %c0_i32_0 = arith.constant 0 : i32
    %c0_i32_1 = arith.constant 0 : i32
    %c0_i32_2 = arith.constant 0 : i32
    return %arg0, %2, %c0_i32_0, %c0_i32_1 : i32, i32, i32, i32
  }
  func.func @transform_1(%arg0: i32, %arg1: i32) -> (i32, i32, i32, i32) {
    %c0_i32 = arith.constant 0 : i32
    %c0_i32_0 = arith.constant 0 : i32
    %c0_i32_1 = arith.constant 0 : i32
    return %arg0, %arg1, %c0_i32, %c0_i32_0 : i32, i32, i32, i32
  }
  func.func @transform_2(%arg0: i32, %arg1: i32) -> (i32, i32, i32, i32) {
    %c1_i32 = arith.constant 1 : i32
    %0 = arith.addi %arg1, %c1_i32 : i32
    %c8_i32 = arith.constant 8 : i32
    %1 = arith.muli %0, %c8_i32 : i32
    %c7_i32 = arith.constant 7 : i32
    %2 = arith.minsi %1, %c7_i32 : i32
    %c0_i32 = arith.constant 0 : i32
    %c0_i32_0 = arith.constant 0 : i32
    %c0_i32_1 = arith.constant 0 : i32
    return %arg0, %2, %c0_i32, %c0_i32_0 : i32, i32, i32, i32
  }
  func.func @transform_3(%arg0: i32, %arg1: i32) -> (i32, i32, i32) {
    %c0_i32 = arith.constant 0 : i32
    %c0_i32_0 = arith.constant 0 : i32
    %c0_i32_1 = arith.constant 0 : i32
    %c0_i32_2 = arith.constant 0 : i32
    return %c0_i32, %c0_i32_0, %c0_i32_1 : i32, i32, i32
  }
  func.func @transform_4(%arg0: i32, %arg1: i32) -> (i32, i32, i32, i32) {
    %c0_i32 = arith.constant 0 : i32
    %c0_i32_0 = arith.constant 0 : i32
    %c0_i32_1 = arith.constant 0 : i32
    return %arg0, %arg1, %c0_i32, %c0_i32_0 : i32, i32, i32, i32
  }
  func.func @transform_5(%arg0: i32, %arg1: i32) -> (i32, i32, i32, i32) {
    %c0_i32 = arith.constant 0 : i32
    %c0_i32_0 = arith.constant 0 : i32
    %c0_i32_1 = arith.constant 0 : i32
    return %arg0, %arg1, %c0_i32, %c0_i32_0 : i32, i32, i32, i32
  }
}

module attributes {stable_mosaic.version = 11 : i64} {
  func.func @bn1_conv2_kernel(%arg0: i32, %arg1: i32, %arg2: memref<1x1x16x128xbf16, #tpu.memory_space<vmem>>, %arg3: memref<1x8x16x128xbf16, #tpu.memory_space<vmem>>, %arg4: memref<1x1x16x128xbf16, #tpu.memory_space<vmem>>, %arg5: memref<1x128xf32, #tpu.memory_space<vmem>>, %arg6: memref<1x128xf32, #tpu.memory_space<vmem>>, %arg7: memref<9x128x128xbf16, #tpu.memory_space<vmem>>, %arg8: memref<1x8x16x128xf32, #tpu.memory_space<vmem>>, %arg9: memref<1x1x8x128xf32, #tpu.memory_space<vmem>>) attributes {dimension_semantics = [#tpu.dimension_semantics<parallel>, #tpu.dimension_semantics<parallel>], iteration_bounds = array<i64: 2, 1>, scalar_prefetch = 0 : i64, scratch_operands = 0 : i64, tpu.core_type = #tpu.core_type<tc>, window_params = [{transform_indices = @transform_0, window_bounds = array<i64: 1, 1, 16, 128>}, {transform_indices = @transform_1, window_bounds = array<i64: 1, 8, 16, 128>}, {transform_indices = @transform_2, window_bounds = array<i64: 1, 1, 16, 128>}, {pipeline_mode = #tpu.pipeline_mode<synchronous>, transform_indices = @transform_3, window_bounds = array<i64: 1, 128>}, {pipeline_mode = #tpu.pipeline_mode<synchronous>, transform_indices = @transform_4, window_bounds = array<i64: 1, 128>}, {pipeline_mode = #tpu.pipeline_mode<synchronous>, transform_indices = @transform_5, window_bounds = array<i64: 9, 128, 128>}, {transform_indices = @transform_6, window_bounds = array<i64: 1, 8, 16, 128>}, {transform_indices = @transform_7, window_bounds = array<i64: 1, 1, 8, 128>}]} {
    %c0 = arith.constant 0 : index
    %c0_0 = arith.constant 0 : index
    %c0_1 = arith.constant 0 : index
    %c0_2 = arith.constant 0 : index
    %0 = vector.load %arg2[%c0, %c0_0, %c0_1, %c0_2] : memref<1x1x16x128xbf16, #tpu.memory_space<vmem>>, vector<1x1x16x128xbf16>
    %1 = vector.shape_cast %0 : vector<1x1x16x128xbf16> to vector<1x16x128xbf16>
    %c0_3 = arith.constant 0 : index
    %c0_4 = arith.constant 0 : index
    %c0_5 = arith.constant 0 : index
    %c0_6 = arith.constant 0 : index
    %2 = vector.load %arg3[%c0_3, %c0_4, %c0_5, %c0_6] : memref<1x8x16x128xbf16, #tpu.memory_space<vmem>>, vector<1x8x16x128xbf16>
    %3 = vector.shape_cast %2 : vector<1x8x16x128xbf16> to vector<8x16x128xbf16>
    %c0_7 = arith.constant 0 : index
    %c0_8 = arith.constant 0 : index
    %c0_9 = arith.constant 0 : index
    %c0_10 = arith.constant 0 : index
    %4 = vector.load %arg4[%c0_7, %c0_8, %c0_9, %c0_10] : memref<1x1x16x128xbf16, #tpu.memory_space<vmem>>, vector<1x1x16x128xbf16>
    %5 = vector.shape_cast %4 : vector<1x1x16x128xbf16> to vector<1x16x128xbf16>
    %6 = tpu.concatenate %1, %3, %5 in 0 : vector<1x16x128xbf16>, vector<8x16x128xbf16>, vector<1x16x128xbf16> -> vector<10x16x128xbf16>
    %7 = arith.extf %6 : vector<10x16x128xbf16> to vector<10x16x128xf32>
    %c0_11 = arith.constant 0 : index
    %c0_12 = arith.constant 0 : index
    %8 = vector.load %arg5[%c0_11, %c0_12] : memref<1x128xf32, #tpu.memory_space<vmem>>, vector<1x128xf32>
    %9 = vector.shape_cast %8 : vector<1x128xf32> to vector<1x1x128xf32>
    %10 = vector.broadcast %9 : vector<1x1x128xf32> to vector<10x16x128xf32>
    %11 = arith.mulf %7, %10 : vector<10x16x128xf32>
    %c0_13 = arith.constant 0 : index
    %c0_14 = arith.constant 0 : index
    %12 = vector.load %arg6[%c0_13, %c0_14] : memref<1x128xf32, #tpu.memory_space<vmem>>, vector<1x128xf32>
    %13 = vector.shape_cast %12 : vector<1x128xf32> to vector<1x1x128xf32>
    %14 = vector.broadcast %13 : vector<1x1x128xf32> to vector<10x16x128xf32>
    %15 = arith.addf %11, %14 : vector<10x16x128xf32>
    %cst = arith.constant 0.000000e+00 : f32
    %16 = vector.broadcast %cst : f32 to vector<10x16x128xf32>
    %17 = arith.maximumf %15, %16 : vector<10x16x128xf32>
    %18 = tpu.iota {dimensions = array<i32: 1>} : vector<10x16x1xi32>
    %19 = tpu.iota {dimensions = array<i32: 0>} : vector<10x16x1xi32>
    %c1_i32 = arith.constant 1 : i32
    %20 = vector.broadcast %c1_i32 : i32 to vector<10x16x1xi32>
    %21 = arith.cmpi sge, %18, %20 : vector<10x16x1xi32>
    %c8_i32 = arith.constant 8 : i32
    %22 = vector.broadcast %c8_i32 : i32 to vector<10x16x1xi32>
    %23 = arith.cmpi sle, %18, %22 : vector<10x16x1xi32>
    %24 = arith.andi %21, %23 : vector<10x16x1xi1>
    %c0_i32 = arith.constant 0 : i32
    %25 = vector.broadcast %c0_i32 : i32 to vector<10x16x1xi32>
    %26 = arith.cmpi eq, %19, %25 : vector<10x16x1xi32>
    %c0_i32_15 = arith.constant 0 : i32
    %27 = arith.cmpi eq, %arg1, %c0_i32_15 : i32
    %28 = vector.broadcast %27 : i1 to vector<10x16x1xi1>
    %29 = arith.andi %26, %28 : vector<10x16x1xi1>
    %cst_16 = arith.constant dense<true> : vector<10x16x1xi1>
    %30 = arith.xori %29, %cst_16 : vector<10x16x1xi1>
    %31 = arith.andi %24, %30 : vector<10x16x1xi1>
    %c9_i32 = arith.constant 9 : i32
    %32 = vector.broadcast %c9_i32 : i32 to vector<10x16x1xi32>
    %33 = arith.cmpi eq, %19, %32 : vector<10x16x1xi32>
    %c0_i32_17 = arith.constant 0 : i32
    %34 = arith.cmpi eq, %arg1, %c0_i32_17 : i32
    %35 = vector.broadcast %34 : i1 to vector<10x16x1xi1>
    %36 = arith.andi %33, %35 : vector<10x16x1xi1>
    %cst_18 = arith.constant dense<true> : vector<10x16x1xi1>
    %37 = arith.xori %36, %cst_18 : vector<10x16x1xi1>
    %38 = arith.andi %31, %37 : vector<10x16x1xi1>
    %cst_19 = arith.constant 0.000000e+00 : f32
    %39 = vector.shape_cast %38 : vector<10x16x1xi1> to vector<10x16x1xi1>
    %40 = vector.broadcast %39 : vector<10x16x1xi1> to vector<10x16x128xi1>
    %41 = vector.broadcast %cst_19 : f32 to vector<10x16x128xf32>
    %42 = arith.select %40, %17, %41 : vector<10x16x128xi1>, vector<10x16x128xf32>
    %43 = arith.truncf %42 : vector<10x16x128xf32> to vector<10x16x128xbf16>
    %44 = vector.shape_cast %43 : vector<10x16x128xbf16> to vector<160x128xbf16>
    %cst_20 = arith.constant 0.000000e+00 : f32
    %45 = vector.broadcast %cst_20 : f32 to vector<128x128xf32>
    %46 = vector.extract_strided_slice %44 {offsets = [0, 0], sizes = [128, 128], strides = [1, 1]} : vector<160x128xbf16> to vector<128x128xbf16>
    %c0_21 = arith.constant 0 : index
    %c0_22 = arith.constant 0 : index
    %c0_23 = arith.constant 0 : index
    %47 = vector.load %arg7[%c0_21, %c0_22, %c0_23] : memref<9x128x128xbf16, #tpu.memory_space<vmem>>, vector<1x128x128xbf16>
    %48 = vector.shape_cast %47 : vector<1x128x128xbf16> to vector<128x128xbf16>
    %cst_24 = arith.constant dense<0.000000e+00> : vector<128x128xf32>
    %49 = tpu.matmul %46, %48, %cst_24 {dimension_numbers = #tpu.dot_dimension_numbers<[1], [0], [0], [1], [0, 0, 1, 1], [], []>} : vector<128x128xbf16>, vector<128x128xbf16>, vector<128x128xf32> -> vector<128x128xf32>
    %50 = arith.addf %45, %49 : vector<128x128xf32>
    %51 = vector.extract_strided_slice %44 {offsets = [16, 0], sizes = [128, 128], strides = [1, 1]} : vector<160x128xbf16> to vector<128x128xbf16>
    %c3 = arith.constant 3 : index
    %c0_25 = arith.constant 0 : index
    %c0_26 = arith.constant 0 : index
    %52 = vector.load %arg7[%c3, %c0_25, %c0_26] : memref<9x128x128xbf16, #tpu.memory_space<vmem>>, vector<1x128x128xbf16>
    %53 = vector.shape_cast %52 : vector<1x128x128xbf16> to vector<128x128xbf16>
    %cst_27 = arith.constant dense<0.000000e+00> : vector<128x128xf32>
    %54 = tpu.matmul %51, %53, %cst_27 {dimension_numbers = #tpu.dot_dimension_numbers<[1], [0], [0], [1], [0, 0, 1, 1], [], []>} : vector<128x128xbf16>, vector<128x128xbf16>, vector<128x128xf32> -> vector<128x128xf32>
    %55 = arith.addf %50, %54 : vector<128x128xf32>
    %56 = vector.extract_strided_slice %44 {offsets = [32, 0], sizes = [128, 128], strides = [1, 1]} : vector<160x128xbf16> to vector<128x128xbf16>
    %c6 = arith.constant 6 : index
    %c0_28 = arith.constant 0 : index
    %c0_29 = arith.constant 0 : index
    %57 = vector.load %arg7[%c6, %c0_28, %c0_29] : memref<9x128x128xbf16, #tpu.memory_space<vmem>>, vector<1x128x128xbf16>
    %58 = vector.shape_cast %57 : vector<1x128x128xbf16> to vector<128x128xbf16>
    %cst_30 = arith.constant dense<0.000000e+00> : vector<128x128xf32>
    %59 = tpu.matmul %56, %58, %cst_30 {dimension_numbers = #tpu.dot_dimension_numbers<[1], [0], [0], [1], [0, 0, 1, 1], [], []>} : vector<128x128xbf16>, vector<128x128xbf16>, vector<128x128xf32> -> vector<128x128xf32>
    %60 = arith.addf %55, %59 : vector<128x128xf32>
    %cst_31 = arith.constant 0.000000e+00 : f32
    %61 = vector.broadcast %cst_31 : f32 to vector<128x128xf32>
    %62 = vector.extract_strided_slice %44 {offsets = [0, 0], sizes = [128, 128], strides = [1, 1]} : vector<160x128xbf16> to vector<128x128xbf16>
    %c1 = arith.constant 1 : index
    %c0_32 = arith.constant 0 : index
    %c0_33 = arith.constant 0 : index
    %63 = vector.load %arg7[%c1, %c0_32, %c0_33] : memref<9x128x128xbf16, #tpu.memory_space<vmem>>, vector<1x128x128xbf16>
    %64 = vector.shape_cast %63 : vector<1x128x128xbf16> to vector<128x128xbf16>
    %cst_34 = arith.constant dense<0.000000e+00> : vector<128x128xf32>
    %65 = tpu.matmul %62, %64, %cst_34 {dimension_numbers = #tpu.dot_dimension_numbers<[1], [0], [0], [1], [0, 0, 1, 1], [], []>} : vector<128x128xbf16>, vector<128x128xbf16>, vector<128x128xf32> -> vector<128x128xf32>
    %66 = arith.addf %61, %65 : vector<128x128xf32>
    %67 = vector.extract_strided_slice %44 {offsets = [16, 0], sizes = [128, 128], strides = [1, 1]} : vector<160x128xbf16> to vector<128x128xbf16>
    %c4 = arith.constant 4 : index
    %c0_35 = arith.constant 0 : index
    %c0_36 = arith.constant 0 : index
    %68 = vector.load %arg7[%c4, %c0_35, %c0_36] : memref<9x128x128xbf16, #tpu.memory_space<vmem>>, vector<1x128x128xbf16>
    %69 = vector.shape_cast %68 : vector<1x128x128xbf16> to vector<128x128xbf16>
    %cst_37 = arith.constant dense<0.000000e+00> : vector<128x128xf32>
    %70 = tpu.matmul %67, %69, %cst_37 {dimension_numbers = #tpu.dot_dimension_numbers<[1], [0], [0], [1], [0, 0, 1, 1], [], []>} : vector<128x128xbf16>, vector<128x128xbf16>, vector<128x128xf32> -> vector<128x128xf32>
    %71 = arith.addf %66, %70 : vector<128x128xf32>
    %72 = vector.extract_strided_slice %44 {offsets = [32, 0], sizes = [128, 128], strides = [1, 1]} : vector<160x128xbf16> to vector<128x128xbf16>
    %c7 = arith.constant 7 : index
    %c0_38 = arith.constant 0 : index
    %c0_39 = arith.constant 0 : index
    %73 = vector.load %arg7[%c7, %c0_38, %c0_39] : memref<9x128x128xbf16, #tpu.memory_space<vmem>>, vector<1x128x128xbf16>
    %74 = vector.shape_cast %73 : vector<1x128x128xbf16> to vector<128x128xbf16>
    %cst_40 = arith.constant dense<0.000000e+00> : vector<128x128xf32>
    %75 = tpu.matmul %72, %74, %cst_40 {dimension_numbers = #tpu.dot_dimension_numbers<[1], [0], [0], [1], [0, 0, 1, 1], [], []>} : vector<128x128xbf16>, vector<128x128xbf16>, vector<128x128xf32> -> vector<128x128xf32>
    %76 = arith.addf %71, %75 : vector<128x128xf32>
    %cst_41 = arith.constant 0.000000e+00 : f32
    %77 = vector.broadcast %cst_41 : f32 to vector<128x128xf32>
    %78 = vector.extract_strided_slice %44 {offsets = [0, 0], sizes = [128, 128], strides = [1, 1]} : vector<160x128xbf16> to vector<128x128xbf16>
    %c2 = arith.constant 2 : index
    %c0_42 = arith.constant 0 : index
    %c0_43 = arith.constant 0 : index
    %79 = vector.load %arg7[%c2, %c0_42, %c0_43] : memref<9x128x128xbf16, #tpu.memory_space<vmem>>, vector<1x128x128xbf16>
    %80 = vector.shape_cast %79 : vector<1x128x128xbf16> to vector<128x128xbf16>
    %cst_44 = arith.constant dense<0.000000e+00> : vector<128x128xf32>
    %81 = tpu.matmul %78, %80, %cst_44 {dimension_numbers = #tpu.dot_dimension_numbers<[1], [0], [0], [1], [0, 0, 1, 1], [], []>} : vector<128x128xbf16>, vector<128x128xbf16>, vector<128x128xf32> -> vector<128x128xf32>
    %82 = arith.addf %77, %81 : vector<128x128xf32>
    %83 = vector.extract_strided_slice %44 {offsets = [16, 0], sizes = [128, 128], strides = [1, 1]} : vector<160x128xbf16> to vector<128x128xbf16>
    %c5 = arith.constant 5 : index
    %c0_45 = arith.constant 0 : index
    %c0_46 = arith.constant 0 : index
    %84 = vector.load %arg7[%c5, %c0_45, %c0_46] : memref<9x128x128xbf16, #tpu.memory_space<vmem>>, vector<1x128x128xbf16>
    %85 = vector.shape_cast %84 : vector<1x128x128xbf16> to vector<128x128xbf16>
    %cst_47 = arith.constant dense<0.000000e+00> : vector<128x128xf32>
    %86 = tpu.matmul %83, %85, %cst_47 {dimension_numbers = #tpu.dot_dimension_numbers<[1], [0], [0], [1], [0, 0, 1, 1], [], []>} : vector<128x128xbf16>, vector<128x128xbf16>, vector<128x128xf32> -> vector<128x128xf32>
    %87 = arith.addf %82, %86 : vector<128x128xf32>
    %88 = vector.extract_strided_slice %44 {offsets = [32, 0], sizes = [128, 128], strides = [1, 1]} : vector<160x128xbf16> to vector<128x128xbf16>
    %c8 = arith.constant 8 : index
    %c0_48 = arith.constant 0 : index
    %c0_49 = arith.constant 0 : index
    %89 = vector.load %arg7[%c8, %c0_48, %c0_49] : memref<9x128x128xbf16, #tpu.memory_space<vmem>>, vector<1x128x128xbf16>
    %90 = vector.shape_cast %89 : vector<1x128x128xbf16> to vector<128x128xbf16>
    %cst_50 = arith.constant dense<0.000000e+00> : vector<128x128xf32>
    %91 = tpu.matmul %88, %90, %cst_50 {dimension_numbers = #tpu.dot_dimension_numbers<[1], [0], [0], [1], [0, 0, 1, 1], [], []>} : vector<128x128xbf16>, vector<128x128xbf16>, vector<128x128xf32> -> vector<128x128xf32>
    %92 = arith.addf %87, %91 : vector<128x128xf32>
    %cst_51 = arith.constant 0.000000e+00 : f32
    %93 = vector.broadcast %cst_51 : f32 to vector<1x128xf32>
    %94 = vector.extract_strided_slice %60 {offsets = [0, 0], sizes = [127, 128], strides = [1, 1]} : vector<128x128xf32> to vector<127x128xf32>
    %95 = tpu.concatenate %93, %94 in 0 : vector<1x128xf32>, vector<127x128xf32> -> vector<128x128xf32>
    %96 = arith.addf %76, %95 : vector<128x128xf32>
    %97 = vector.extract_strided_slice %92 {offsets = [1, 0], sizes = [127, 128], strides = [1, 1]} : vector<128x128xf32> to vector<127x128xf32>
    %98 = tpu.concatenate %97, %93 in 0 : vector<127x128xf32>, vector<1x128xf32> -> vector<128x128xf32>
    %99 = arith.addf %96, %98 : vector<128x128xf32>
    %100 = vector.shape_cast %99 : vector<128x128xf32> to vector<8x16x128xf32>
    %101 = tpu.iota {dimensions = array<i32: 1>} : vector<1x16x1xi32>
    %c1_i32_52 = arith.constant 1 : i32
    %102 = vector.broadcast %c1_i32_52 : i32 to vector<1x16x1xi32>
    %103 = arith.cmpi sge, %101, %102 : vector<1x16x1xi32>
    %c8_i32_53 = arith.constant 8 : i32
    %104 = vector.broadcast %c8_i32_53 : i32 to vector<1x16x1xi32>
    %105 = arith.cmpi sle, %101, %104 : vector<1x16x1xi32>
    %106 = arith.andi %103, %105 : vector<1x16x1xi1>
    %cst_54 = arith.constant 0.000000e+00 : f32
    %107 = vector.shape_cast %106 : vector<1x16x1xi1> to vector<1x16x1xi1>
    %108 = vector.broadcast %107 : vector<1x16x1xi1> to vector<8x16x128xi1>
    %109 = vector.broadcast %cst_54 : f32 to vector<8x16x128xf32>
    %110 = arith.select %108, %100, %109 : vector<8x16x128xi1>, vector<8x16x128xf32>
    %c0_55 = arith.constant 0 : index
    %c0_56 = arith.constant 0 : index
    %c0_57 = arith.constant 0 : index
    %c0_58 = arith.constant 0 : index
    %111 = vector.load %arg8[%c0_55, %c0_56, %c0_57, %c0_58] : memref<1x8x16x128xf32, #tpu.memory_space<vmem>>, vector<1x8x16x128xf32>
    %112 = vector.shape_cast %111 : vector<1x8x16x128xf32> to vector<8x16x128xf32>
    %113 = vector.shape_cast %110 : vector<8x16x128xf32> to vector<1x8x16x128xf32>
    tpu.vector_store %arg8[%c0_55, %c0_56, %c0_57, %c0_58], %113 {strides = array<i32>} : memref<1x8x16x128xf32, #tpu.memory_space<vmem>>, vector<1x8x16x128xf32>,
    %cst_59 = arith.constant dense<0.000000e+00> : vector<128xf32>
    %114 = vector.multi_reduction <add>, %110, %cst_59 [0, 1] : vector<8x16x128xf32> to vector<128xf32>
    %115 = arith.mulf %110, %110 : vector<8x16x128xf32>
    %cst_60 = arith.constant dense<0.000000e+00> : vector<128xf32>
    %116 = vector.multi_reduction <add>, %115, %cst_60 [0, 1] : vector<8x16x128xf32> to vector<128xf32>
    %117 = vector.shape_cast %114 : vector<128xf32> to vector<1x128xf32>
    %118 = vector.shape_cast %116 : vector<128xf32> to vector<1x128xf32>
    %cst_61 = arith.constant 0.000000e+00 : f32
    %119 = vector.broadcast %cst_61 : f32 to vector<6x128xf32>
    %120 = tpu.concatenate %117, %118, %119 in 0 : vector<1x128xf32>, vector<1x128xf32>, vector<6x128xf32> -> vector<8x128xf32>
    %c0_62 = arith.constant 0 : index
    %c0_63 = arith.constant 0 : index
    %c0_64 = arith.constant 0 : index
    %c0_65 = arith.constant 0 : index
    %121 = vector.load %arg9[%c0_62, %c0_63, %c0_64, %c0_65] : memref<1x1x8x128xf32, #tpu.memory_space<vmem>>, vector<1x1x8x128xf32>
    %122 = vector.shape_cast %121 : vector<1x1x8x128xf32> to vector<8x128xf32>
    %123 = vector.shape_cast %120 : vector<8x128xf32> to vector<1x1x8x128xf32>
    tpu.vector_store %arg9[%c0_62, %c0_63, %c0_64, %c0_65], %123 {strides = array<i32>} : memref<1x1x8x128xf32, #tpu.memory_space<vmem>>, vector<1x1x8x128xf32>,
    return
  }
  func.func @transform_0(%arg0: i32, %arg1: i32) -> (i32, i32, i32, i32) {
    %c8_i32 = arith.constant 8 : i32
    %0 = arith.muli %arg1, %c8_i32 : i32
    %c1_i32 = arith.constant 1 : i32
    %1 = arith.subi %0, %c1_i32 : i32
    %c0_i32 = arith.constant 0 : i32
    %2 = arith.maxsi %1, %c0_i32 : i32
    %c0_i32_0 = arith.constant 0 : i32
    %c0_i32_1 = arith.constant 0 : i32
    %c0_i32_2 = arith.constant 0 : i32
    return %arg0, %2, %c0_i32_0, %c0_i32_1 : i32, i32, i32, i32
  }
  func.func @transform_1(%arg0: i32, %arg1: i32) -> (i32, i32, i32, i32) {
    %c0_i32 = arith.constant 0 : i32
    %c0_i32_0 = arith.constant 0 : i32
    %c0_i32_1 = arith.constant 0 : i32
    return %arg0, %arg1, %c0_i32, %c0_i32_0 : i32, i32, i32, i32
  }
  func.func @transform_2(%arg0: i32, %arg1: i32) -> (i32, i32, i32, i32) {
    %c1_i32 = arith.constant 1 : i32
    %0 = arith.addi %arg1, %c1_i32 : i32
    %c8_i32 = arith.constant 8 : i32
    %1 = arith.muli %0, %c8_i32 : i32
    %c7_i32 = arith.constant 7 : i32
    %2 = arith.minsi %1, %c7_i32 : i32
    %c0_i32 = arith.constant 0 : i32
    %c0_i32_0 = arith.constant 0 : i32
    %c0_i32_1 = arith.constant 0 : i32
    return %arg0, %2, %c0_i32, %c0_i32_0 : i32, i32, i32, i32
  }
  func.func @transform_3(%arg0: i32, %arg1: i32) -> (i32, i32) {
    %c0_i32 = arith.constant 0 : i32
    %c0_i32_0 = arith.constant 0 : i32
    %c0_i32_1 = arith.constant 0 : i32
    return %c0_i32, %c0_i32_0 : i32, i32
  }
  func.func @transform_4(%arg0: i32, %arg1: i32) -> (i32, i32) {
    %c0_i32 = arith.constant 0 : i32
    %c0_i32_0 = arith.constant 0 : i32
    %c0_i32_1 = arith.constant 0 : i32
    return %c0_i32, %c0_i32_0 : i32, i32
  }
  func.func @transform_5(%arg0: i32, %arg1: i32) -> (i32, i32, i32) {
    %c0_i32 = arith.constant 0 : i32
    %c0_i32_0 = arith.constant 0 : i32
    %c0_i32_1 = arith.constant 0 : i32
    %c0_i32_2 = arith.constant 0 : i32
    return %c0_i32, %c0_i32_0, %c0_i32_1 : i32, i32, i32
  }
  func.func @transform_6(%arg0: i32, %arg1: i32) -> (i32, i32, i32, i32) {
    %c0_i32 = arith.constant 0 : i32
    %c0_i32_0 = arith.constant 0 : i32
    %c0_i32_1 = arith.constant 0 : i32
    return %arg0, %arg1, %c0_i32, %c0_i32_0 : i32, i32, i32, i32
  }
  func.func @transform_7(%arg0: i32, %arg1: i32) -> (i32, i32, i32, i32) {
    %c0_i32 = arith.constant 0 : i32
    %c0_i32_0 = arith.constant 0 : i32
    %c0_i32_1 = arith.constant 0 : i32
    return %arg0, %arg1, %c0_i32, %c0_i32_0 : i32, i32, i32, i32
  }
}

module attributes {stable_mosaic.version = 11 : i64} {
  func.func @bn_relu_kernel(%arg0: i32, %arg1: i32, %arg2: memref<1x8x16x128xf32, #tpu.memory_space<vmem>>, %arg3: memref<1x128xf32, #tpu.memory_space<vmem>>, %arg4: memref<1x128xf32, #tpu.memory_space<vmem>>, %arg5: memref<1x8x16x128xf32, #tpu.memory_space<vmem>>) attributes {dimension_semantics = [#tpu.dimension_semantics<parallel>, #tpu.dimension_semantics<parallel>], iteration_bounds = array<i64: 2, 1>, scalar_prefetch = 0 : i64, scratch_operands = 0 : i64, tpu.core_type = #tpu.core_type<tc>, window_params = [{transform_indices = @transform_0, window_bounds = array<i64: 1, 8, 16, 128>}, {pipeline_mode = #tpu.pipeline_mode<synchronous>, transform_indices = @transform_1, window_bounds = array<i64: 1, 128>}, {pipeline_mode = #tpu.pipeline_mode<synchronous>, transform_indices = @transform_2, window_bounds = array<i64: 1, 128>}, {transform_indices = @transform_3, window_bounds = array<i64: 1, 8, 16, 128>}]} {
    %c0 = arith.constant 0 : index
    %c0_0 = arith.constant 0 : index
    %c0_1 = arith.constant 0 : index
    %c0_2 = arith.constant 0 : index
    %0 = vector.load %arg2[%c0, %c0_0, %c0_1, %c0_2] : memref<1x8x16x128xf32, #tpu.memory_space<vmem>>, vector<1x8x16x128xf32>
    %c0_3 = arith.constant 0 : index
    %c0_4 = arith.constant 0 : index
    %1 = vector.load %arg3[%c0_3, %c0_4] : memref<1x128xf32, #tpu.memory_space<vmem>>, vector<1x128xf32>
    %2 = vector.shape_cast %1 : vector<1x128xf32> to vector<1x1x1x128xf32>
    %3 = vector.broadcast %2 : vector<1x1x1x128xf32> to vector<1x8x16x128xf32>
    %4 = arith.mulf %0, %3 : vector<1x8x16x128xf32>
    %c0_5 = arith.constant 0 : index
    %c0_6 = arith.constant 0 : index
    %5 = vector.load %arg4[%c0_5, %c0_6] : memref<1x128xf32, #tpu.memory_space<vmem>>, vector<1x128xf32>
    %6 = vector.shape_cast %5 : vector<1x128xf32> to vector<1x1x1x128xf32>
    %7 = vector.broadcast %6 : vector<1x1x1x128xf32> to vector<1x8x16x128xf32>
    %8 = arith.addf %4, %7 : vector<1x8x16x128xf32>
    %cst = arith.constant 0.000000e+00 : f32
    %9 = vector.broadcast %cst : f32 to vector<1x8x16x128xf32>
    %10 = arith.maximumf %8, %9 : vector<1x8x16x128xf32>
    %c0_7 = arith.constant 0 : index
    %c0_8 = arith.constant 0 : index
    %c0_9 = arith.constant 0 : index
    %c0_10 = arith.constant 0 : index
    %11 = vector.load %arg5[%c0_7, %c0_8, %c0_9, %c0_10] : memref<1x8x16x128xf32, #tpu.memory_space<vmem>>, vector<1x8x16x128xf32>
    tpu.vector_store %arg5[%c0_7, %c0_8, %c0_9, %c0_10], %10 {strides = array<i32>} : memref<1x8x16x128xf32, #tpu.memory_space<vmem>>, vector<1x8x16x128xf32>,
    return
  }
  func.func @transform_0(%arg0: i32, %arg1: i32) -> (i32, i32, i32, i32) {
    %c0_i32 = arith.constant 0 : i32
    %c0_i32_0 = arith.constant 0 : i32
    %c0_i32_1 = arith.constant 0 : i32
    return %arg0, %arg1, %c0_i32, %c0_i32_0 : i32, i32, i32, i32
  }
  func.func @transform_1(%arg0: i32, %arg1: i32) -> (i32, i32) {
    %c0_i32 = arith.constant 0 : i32
    %c0_i32_0 = arith.constant 0 : i32
    %c0_i32_1 = arith.constant 0 : i32
    return %c0_i32, %c0_i32_0 : i32, i32
  }
  func.func @transform_2(%arg0: i32, %arg1: i32) -> (i32, i32) {
    %c0_i32 = arith.constant 0 : i32
    %c0_i32_0 = arith.constant 0 : i32
    %c0_i32_1 = arith.constant 0 : i32
    return %c0_i32, %c0_i32_0 : i32, i32
  }
  func.func @transform_3(%arg0: i32, %arg1: i32) -> (i32, i32, i32, i32) {
    %c0_i32 = arith.constant 0 : i32
    %c0_i32_0 = arith.constant 0 : i32
    %c0_i32_1 = arith.constant 0 : i32
    return %arg0, %arg1, %c0_i32, %c0_i32_0 : i32, i32, i32, i32
  }
}

</mosaic_0001>

<bundles_post_ra>
// kernel: down_forward.5
= control target key start
LH: loop header
LB: loop body
LE: loop exit
PB: predicated region body
PF: predicated region fallthrough
CT: control target
= control target key end

     0   :  { %8 = vsyncpa [#allocation3], 0  ;;  %s1072_s0 = inlined_call_operand.hbm [shape: f32[2,8,16,128], index: 0, kind: input, shape index: {}]   ;;  %s1073_s1 = inlined_call_operand.hbm [shape: f32[1,128], index: 1, kind: input, shape index: {}]   ;;  %s1074_s2 = inlined_call_operand.hbm [shape: f32[1,128], index: 2, kind: input, shape index: {}]   ;;  %s1075_s3 = inlined_call_operand.hbm [shape: f32[2,8,16,128], index: 3, kind: output, shape index: {}]  }
   0x1   :  { %10 = vsyncpa [#allocation3 + $0x1], 0 }
   0x2   :  { %11 = vsyncpa [#allocation6], 0 }
   0x3   :  { %12 = vsyncpa [#allocation4], 0 }
   0x4   :  { %14 = vsyncpa [#allocation4 + $0x1], 0  ;;  %s764_s12 = smov 0   ;;  %s766_s13 = smov 0  }
   0x5   :  { %s768_s14 = smov 0   ;;  %s770_s15 = smov 0  }
   0x6   :  { %s772_s16 = smov 0   ;;  %s774_s17 = smov 0  }
   0x7 LB: > { %s452_s18 = sadd.s32 4294967295, %s734_s17   ;;  %s453_s19 = sadd.s32 4294967294, %s734_s17   ;;  %s734_s17 = sphi %s774_s17, %s20_s17   ;;  %s730_s16 = sphi %s772_s16, %s1101_s16   ;;  %s726_s15 = sphi %s770_s15, %s1100_s15   ;;  %s722_s14 = sphi %s768_s14, %s1099_s14   ;;  %s718_s13 = sphi %s766_s13, %s1098_s13   ;;  %s714_s12 = sphi %s764_s12, %s1097_s12  }
   0x8   : > { %s41_s20 = sadd.s32 1, %s722_s14  ;;  %p48_p0 = scmp.ne.s32.totalorder %s722_s14, %s718_s13 }
   0x9   : > { %p49_p1 = scmp.eq.s32.totalorder %s734_s17, 0  ;;  %p54_p2 = scmp.ne.s32.totalorder %s718_s13, %s714_s12 }
   0xa   : > { %p802_p3 = scmp.eq.s32.totalorder %s452_s18, 0  ;;  %p122_p4 = scmp.eq.s32.totalorder %s452_s18, 1 }
   0xb   : > { %p806_p5 = por %p49_p1, %p48_p0  ;;  %p128_p6 = scmp.eq.s32.totalorder %s453_s19, 1 }
   0xc   : > { %s1082_s21 = scalar_select %p802_p3, 1, 0 }
   0xd   : > { %p812_p7 = por %p802_p3, %p54_p2  ;;  %p816_p8 = por %p122_p4, %p48_p0 }
   0xe   : > { %p820_p9 = por %p128_p6, %p54_p2  ;;  %p454_p10 = scmp.ge.s32.totalorder %s734_s17, 1 }
   0xf   : > { %s1084_s23 = scalar_select %p812_p7, 1, 0 }
  0x10   : > { %s1085_s24 = scalar_select %p816_p8, 1, 0 }
  0x11   : > { %s1086_s25 = scalar_select %p820_p9, 1, 0 }
  0x12   : > { %p135_p11 = scmp.lt.s32.totalorder %s734_s17, 3  ;;  %s736_s27 = smov [#allocation5]  }
  0x13   : > { %s148_s28 = sshll.u32 %s736_s27, 4  ;;  %p504_p1 = scmp.lt.s32.totalorder %s734_s17, 2  ;;  %s149_s28 = int_to_ptr.vmem [resolvable:$true] %s148_s28 }
  0x14   : > { %p827_p13 = pnand %p454_p10, %p135_p11  ;;  %s737_s30 = smov [#allocation7]  }
  0x15   : > { %p836_p4 = pnand %p504_p1, %p806_p5  ;;  %s159_s4 = sshll.u32 %s737_s30, 4  ;;  %s846_s4 = int_to_ptr.vmem [resolvable:$true] %s159_s4 }
  0x16   : > { %s1087_s26 = scalar_select %p827_p13, 1, 0 }
  0x17   : > { %p487_p0 = pneg %p827_p13  ;;  %s562_s8 = scalar_lea.hbm %s1073_s1, 16 }
  0x18   : > { %s1088_s29 = scalar_select %p836_p4, 1, 0 }
  0x19   : > { %p842_p2 = pnand %p487_p0, %p802_p3  ;;  %p563_p5 = scmp.ne.s32.totalorder %s1073_s1, %s562_s8 }
  0x1a   : > { %p569_p1 = scmp.lt.u32.totalorder %s562_s8, %s1073_s1 }
  0x1b   : > { %p564_p6 = pneg %p842_p2 }
  0x1d   : > { %p565_p10 = pnand %p564_p6, %p563_p5 }
  0x1f   : > { %p566_p11 = pneg %p565_p10 }
  0x21   : > { %p571_p0 = pnand %p569_p1, %p566_p11 }
  0x23   : > { %574 = shalt.err (!%p571_p0)
}
  0x24   : > { %s575_s19 = scalar_lea.vmem %s149_s28, 16  ;;  %s582_s22 = scalar_lea.vmem %s149_s28, 32 }
  0x25   : > { %p576_p12 = scmp.ne.s32.totalorder %s149_s28, %s575_s19  ;;  %p583_p3 = scmp.lt.s32.totalorder %s149_s28, %s149_s28 }
  0x26   : > { %p584_p7 = scmp.lt.s32.totalorder %s582_s22, %s575_s19 }
  0x27   : > { %p578_p9 = pnand %p576_p12, %p564_p6 }
  0x28   : > { %p585_p13 = por %p584_p7, %p583_p3 }
  0x29   : > { %p579_p8 = pneg %p578_p9 }
  0x2b   : > { %p586_p4 = pnand %p585_p13, %p579_p8 }
  0x2d   : > { %589 = shalt.err (!%p586_p4)
}
  0x2e   : > { %490 = dma.hbm_to_vmem [thread:$0]  (!%p842_p2), %s1073_s1, 16, %s149_s28, [#allocation6]  }
  0x2f   : > { %s590_s8 = scalar_lea.hbm %s1074_s2, 16 }
  0x30   : > { %p591_p9 = scmp.ne.s32.totalorder %s1074_s2, %s590_s8  ;;  %p597_p8 = scmp.lt.u32.totalorder %s590_s8, %s1074_s2 }
  0x32   : > { %p593_p3 = pnand %p591_p9, %p564_p6 }
  0x34   : > { %p594_p7 = pneg %p593_p3 }
  0x36   : > { %p599_p12 = pnand %p597_p8, %p594_p7 }
  0x38   : > { %602 = shalt.err (!%p599_p12)
}
  0x39   : > { %s603_s28 = scalar_lea.vmem %s846_s4, 16  ;;  %s610_s19 = scalar_lea.vmem %s846_s4, 32 }
  0x3a   : > { %p604_p13 = scmp.ne.s32.totalorder %s846_s4, %s603_s28  ;;  %p611_p10 = scmp.lt.s32.totalorder %s846_s4, %s846_s4 }
  0x3b   : > { %p612_p11 = scmp.lt.s32.totalorder %s610_s19, %s603_s28 }
  0x3c   : > { %p606_p4 = pnand %p604_p13, %p564_p6 }
  0x3d   : > { %p613_p1 = por %p612_p11, %p611_p10 }
  0x3e   : > { %p607_p5 = pneg %p606_p4 }
  0x40   : > { %p614_p0 = pnand %p613_p1, %p607_p5 }
  0x42   : > { %617 = shalt.err (!%p614_p0)
}
  0x43   : > { %493 = dma.hbm_to_vmem [thread:$0]  (!%p842_p2), %s1074_s2, 16, %s846_s4, [#allocation6]  }
  0x44   : > { %s32_s30 = sadd.s32 1, %s730_s16  ;;  %s170_s6 = sand.u32 1, %s722_s14  }
  0x45   : > { %p34_p6 = scmp.ge.s32.totalorder %s32_s30, 2  ;;  %s458_s7 = sshll.u32 %s170_s6, 7 }
  0x46   : > { %s473_s8 = sshll.u32 %s730_s16, 11  ;;  %s174_s4 = scalar_lea.vmem [#allocation2], %s458_s7 }
  0x47   : > { %s1103_s30 = smov (%p34_p6, %s32_s30), 0  ;;  %s904_s10 = scalar_lea.hbm %s1072_s0, %s473_s8 }
  0x48   : > { %s36_s11 = ssub.s32 %s730_s16, %s1103_s30  ;;  %s184_s18 = sshll.u32 %s174_s4, 4  ;;  %s908_s18 = int_to_ptr.vmem [resolvable:$true] %s184_s18 }
  0x49   : > { %p39_p2 = scmp.eq.s32.totalorder %s36_s11, 0  ;;  %s915_s19 = scalar_lea.sflag [#allocation3], %s170_s6 }
  0x4a   : > { %s618_s22 = scalar_lea.hbm %s904_s10, 2048  ;;  %p1090_p3 = scmp.ne.s32.totalorder %s1088_s29, 0 }
  0x4b   : > { %s913_s28 = scalar_select %p39_p2, %s722_s14, %s41_s20  }
  0x4c   : > { %p619_p9 = scmp.ne.s32.totalorder %s904_s10, %s618_s22  ;;  %p620_p7 = pneg %p1090_p3 }
  0x4d   : > { %s623_s7 = scalar_lea.hbm %s1072_s0, 4096  ;;  %p624_p13 = scmp.lt.u32.totalorder %s904_s10, %s1072_s0 }
  0x4e   : > { %p621_p8 = pnand %p620_p7, %p619_p9  ;;  %p625_p4 = scmp.lt.u32.totalorder %s623_s7, %s618_s22 }
  0x4f   : > { %p627_p10 = scmp.lt.u32.totalorder %s618_s22, %s904_s10 }
  0x50   : > { %p622_p12 = pneg %p621_p8  ;;  %p626_p5 = por %p625_p4, %p624_p13 }
  0x52   : > { %p628_p11 = por %p627_p10, %p626_p5 }
  0x54   : > { %p629_p1 = pnand %p628_p11, %p622_p12 }
  0x56   : > { %632 = shalt.err (!%p629_p1)
}
  0x57   : > { %s633_s20 = scalar_lea.vmem %s908_s18, 2048  ;;  %s738_s6 = smov [#allocation2]  }
  0x58   : > { %p634_p0 = scmp.ne.s32.totalorder %s908_s18, %s633_s20  ;;  %s638_s11 = sshll.u32 %s738_s6, 4  ;;  %s639_s11 = int_to_ptr.vmem [resolvable:$false] %s638_s11 }
  0x59   : > { %s640_s4 = scalar_lea.vmem %s639_s11, 4096  ;;  %p641_p9 = scmp.lt.s32.totalorder %s908_s18, %s639_s11 }
  0x5a   : > { %p636_p6 = pnand %p634_p0, %p620_p7  ;;  %p642_p8 = scmp.lt.s32.totalorder %s640_s4, %s633_s20 }
  0x5c   : > { %p637_p2 = pneg %p636_p6  ;;  %p643_p13 = por %p642_p8, %p641_p9 }
  0x5e   : > { %p644_p4 = pnand %p643_p13, %p637_p2 }
  0x60   : > { %647 = shalt.err (!%p644_p4)
}
  0x61   : > { %s739_s22 = smov 128   ;;  %s740_s27 = smov 8  }
  0x62   : > { %497 = dma.hbm_to_vmem [thread:$0]  (!%p1090_p3), %s904_s10, 2048, %s908_s18, %s915_s19, %s739_s22, %s739_s22, %s740_s27  }
  0x63   : > { %p1091_p7 = scmp.ne.s32.totalorder %s1087_s26, 0 }
  0x64   : > { %s946_s8 = sand.u32 (!%p1091_p7), 1, %s718_s13   ;;  %p1092_p12 = scmp.ne.s32.totalorder (!%p1091_p7), %s1084_s23, 0 }
  0x65   : > { %196 = sbr.rel (%p1091_p7) target bundleno = 145 (0x91), region = 32  ;;  %s462_s7 = sshll.u32 (!%p1091_p7), %s946_s8, 7 }
  0x66   : > { %s199_s5 = scalar_lea.sflag (!%p1091_p7), [#allocation3], %s946_s8  ;;  %s952_s9 = scalar_lea.vmem (!%p1091_p7), [#allocation2], %s462_s7 }
  0x6c   : > { %701 = dma.done.wait (%p1092_p12), %s199_s5, 2048  }
  0x6d   : > { %703 = vsyncadd (%p1092_p12), %s199_s5, 4294965248  ;;  %p1093_p3 = scmp.ne.s32.totalorder %s1082_s21, 0 }
  0x6f   : > { %705 = dma.done.wait (%p1093_p3), [#allocation6], 32  }
  0x70   : > { %707 = vsyncadd (%p1093_p3), [#allocation6], 4294967264  ;;  %v235_v0 = vld [vmem:[%s952_s9] sm:$0xff]  ;;  %v236_v4 = vld [vmem:[%s952_s9 + $0x8] sm:$0xff]  ;;  %s989_s21 = scalar_lea.vmem [#allocation8], %s462_s7  ;;  %s474_s23 = sshll.u32 %s726_s15, 11 }
  0x71   : > { %v466_v1 = vld [vmem:[#allocation5] ss:$0 sm:$0xff]  ;;  %v963_v2 = vld [vmem:[#allocation7] ss:$0 sm:$0xff]  ;;  %v237_v5 = vld [vmem:[%s952_s9 + $0x10] sm:$0xff]  ;;  %s346_s26 = sshll.u32 %s989_s21, 4  ;;  %s1014_s10 = scalar_lea.hbm %s1075_s3, %s474_s23  ;;  %s1016_s26 = int_to_ptr.vmem [resolvable:$true] %s346_s26 }
  0x72   : > { %v258_v3 = vmul.f32 %v466_v1, %v235_v0  ;;  %v238_v6 = vld [vmem:[%s952_s9 + $0x18] sm:$0xff]  ;;  %v259_v7 = vmul.f32 %v466_v1, %v236_v4  ;;  %v260_v8 = vmul.f32 %v466_v1, %v237_v5  ;;  %v239_v10 = vld [vmem:[%s952_s9 + $0x20] sm:$0xff]  ;;  %v240_v11 = vld [vmem:[%s952_s9 + $0x28] sm:$0xff]  ;;  %s330_s18 = scalar_lea.sflag [#allocation4], %s946_s8  ;;  %s648_s19 = scalar_lea.vmem %s1016_s26, 2048 }
  0x73   : > { %v261_v9 = vmul.f32 %v466_v1, %v238_v6  ;;  %v241_v12 = vld [vmem:[%s952_s9 + $0x30] sm:$0xff]  ;;  %v262_v14 = vmul.f32 %v466_v1, %v239_v10  ;;  %v263_v15 = vmul.f32 %v466_v1, %v240_v11  ;;  %v242_v17 = vld [vmem:[%s952_s9 + $0x38] sm:$0xff]  ;;  %v243_v22 = vld [vmem:[%s952_s9 + $0x40] sm:$0xff]  ;;  %p649_p5 = scmp.ne.s32.totalorder %s1016_s26, %s648_s19  ;;  %p1094_p10 = scmp.ne.s32.totalorder %s1085_s24, 0 }
  0x74   : > { %v281_v13 = vadd.f32 %v963_v2, %v258_v3  ;;  %v264_v16 = vmul.f32 %v466_v1, %v241_v12  ;;  %v282_v18 = vadd.f32 %v963_v2, %v259_v7  ;;  %v283_v19 = vadd.f32 %v963_v2, %v260_v8  ;;  %v244_v27 = vld [vmem:[%s952_s9 + $0x48] sm:$0xff]  ;;  %v245_v28 = vld [vmem:[%s952_s9 + $0x50] sm:$0xff]  ;;  %v246_v29 = vld [vmem:[%s952_s9 + $0x58] sm:$0xff]  ;;  %s741_s20 = smov [#allocation8]  }
  0x75   : > { %v284_v20 = vadd.f32 %v963_v2, %v261_v9  ;;  %v265_v21 = vmul.f32 %v466_v1, %v242_v17  ;;  %v285_v24 = vadd.f32 %v963_v2, %v262_v14  ;;  %v286_v25 = vadd.f32 %v963_v2, %v263_v15  ;;  %v247_v34 = vld [vmem:[%s952_s9 + $0x60] sm:$0xff]  ;;  %v248_v35 = vld [vmem:[%s952_s9 + $0x68] sm:$0xff]  ;;  %v249_v36 = vld [vmem:[%s952_s9 + $0x70] sm:$0xff]  ;;  %p650_p11 = pnand %p649_p5, %p1094_p10  ;;  %s652_s6 = sshll.u32 %s741_s20, 4  ;;  %s653_s6 = int_to_ptr.vmem [resolvable:$false] %s652_s6 }
  0x76   : > { %v297_v23 = vmax.f32 %v281_v13, 0.0  ;;  %v287_v26 = vadd.f32 %v963_v2, %v264_v16  ;;  %v298_v30 = vmax.f32 %v282_v18, 0.0  ;;  %v299_v31 = vmax.f32 %v283_v19, 0.0  ;;  %v250_v41 = vld [vmem:[%s952_s9 + $0x78] sm:$0xff]  ;;  %s654_s11 = scalar_lea.vmem %s653_s6, 4096  ;;  %p655_p0 = scmp.lt.s32.totalorder %s1016_s26, %s653_s6 }
  0x77   : > { %v300_v32 = vmax.f32 %v284_v20, 0.0  ;;  %v288_v33 = vadd.f32 %v963_v2, %v265_v21  ;;  %v301_v37 = vmax.f32 %v285_v24, 0.0  ;;  %v302_v38 = vmax.f32 %v286_v25, 0.0  ;;  %p651_p1 = pneg %p650_p11  ;;  %p656_p6 = scmp.lt.s32.totalorder %s654_s11, %s648_s19 }
  0x78   : > { %313 = vst [vmem:[%s989_s21] sm:$0xff] %v297_v23  ;;  %v303_v39 = vmax.f32 %v287_v26, 0.0  ;;  %v266_v40 = vmul.f32 %v466_v1, %v243_v22  ;;  %314 = vst [vmem:[%s989_s21 + $0x8] sm:$0xff] %v298_v30  ;;  %v267_v43 = vmul.f32 %v466_v1, %v244_v27  ;;  %v268_v44 = vmul.f32 %v466_v1, %v245_v28 }
  0x79   : > { %315 = vst [vmem:[%s989_s21 + $0x10] sm:$0xff] %v299_v31  ;;  %316 = vst [vmem:[%s989_s21 + $0x18] sm:$0xff] %v300_v32  ;;  %v304_v42 = vmax.f32 %v288_v33, 0.0  ;;  %v269_v45 = vmul.f32 %v466_v1, %v246_v29  ;;  %v270_v47 = vmul.f32 %v466_v1, %v247_v34  ;;  %v271_v48 = vmul.f32 %v466_v1, %v248_v35  ;;  %p657_p2 = por %p656_p6, %p655_p0 }
  0x7a   : > { %317 = vst [vmem:[%s989_s21 + $0x20] sm:$0xff] %v301_v37  ;;  %318 = vst [vmem:[%s989_s21 + $0x28] sm:$0xff] %v302_v38  ;;  %v289_v46 = vadd.f32 %v963_v2, %v266_v40  ;;  %v272_v49 = vmul.f32 %v466_v1, %v249_v36  ;;  %v290_v50 = vadd.f32 %v963_v2, %v267_v43 }
  0x7b   : > { %319 = vst [vmem:[%s989_s21 + $0x30] sm:$0xff] %v303_v39  ;;  %320 = vst [vmem:[%s989_s21 + $0x38] sm:$0xff] %v304_v42  ;;  %v291_v51 = vadd.f32 %v963_v2, %v268_v44  ;;  %v292_v52 = vadd.f32 %v963_v2, %v269_v45  ;;  %v273_v53 = vmul.f32 %v466_v1, %v250_v41  ;;  %p658_p9 = pnand %p657_p2, %p651_p1 }
  0x7c   : > { %v305_v54 = vmax.f32 %v289_v46, 0.0  ;;  %v293_v55 = vadd.f32 %v963_v2, %v270_v47  ;;  %v294_v56 = vadd.f32 %v963_v2, %v271_v48  ;;  %v295_v57 = vadd.f32 %v963_v2, %v272_v49 }
  0x7d   : > { %v306_v58 = vmax.f32 %v290_v50, 0.0  ;;  %v307_v59 = vmax.f32 %v291_v51, 0.0  ;;  %v308_v60 = vmax.f32 %v292_v52, 0.0  ;;  %v296_v61 = vadd.f32 %v963_v2, %v273_v53 }
  0x7e   : > { %321 = vst [vmem:[%s989_s21 + $0x40] sm:$0xff] %v305_v54  ;;  %v309_v62 = vmax.f32 %v293_v55, 0.0  ;;  %v310_v63 = vmax.f32 %v294_v56, 0.0  ;;  %v311_v0 = vmax.f32 %v295_v57, 0.0 }
  0x7f   : > { %322 = vst [vmem:[%s989_s21 + $0x48] sm:$0xff] %v306_v58  ;;  %323 = vst [vmem:[%s989_s21 + $0x50] sm:$0xff] %v307_v59  ;;  %v312_v1 = vmax.f32 %v296_v61, 0.0 }
  0x80   : > { %324 = vst [vmem:[%s989_s21 + $0x58] sm:$0xff] %v308_v60  ;;  %325 = vst [vmem:[%s989_s21 + $0x60] sm:$0xff] %v309_v62 }
  0x81   : > { %326 = vst [vmem:[%s989_s21 + $0x68] sm:$0xff] %v310_v63  ;;  %327 = vst [vmem:[%s989_s21 + $0x70] sm:$0xff] %v311_v0 }
  0x82   : > { %328 = vst [vmem:[%s989_s21 + $0x78] sm:$0xff] %v312_v1 }
  0x83   : > { %661 = shalt.err (!%p658_p9)
}
  0x84   : > { %s662_s4 = scalar_lea.hbm %s1014_s10, 2048  ;;  %s666_s7 = scalar_lea.hbm %s1075_s3, 4096 }
  0x85   : > { %p663_p8 = scmp.ne.s32.totalorder %s1014_s10, %s662_s4  ;;  %p667_p7 = scmp.lt.u32.totalorder %s1014_s10, %s1075_s3 }
  0x86   : > { %p668_p12 = scmp.lt.u32.totalorder %s666_s7, %s662_s4  ;;  %p670_p5 = scmp.lt.u32.totalorder %s662_s4, %s1014_s10 }
  0x87   : > { %p664_p13 = pnand %p663_p8, %p1094_p10 }
  0x88   : > { %p669_p3 = por %p668_p12, %p667_p7 }
  0x89   : > { %p665_p4 = pneg %p664_p13 }
  0x8a   : > { %p671_p11 = por %p670_p5, %p669_p3 }
  0x8c   : > { %p672_p1 = pnand %p671_p11, %p665_p4 }
  0x8e   : > { %675 = shalt.err (!%p672_p1)
}
  0x8f   : > { %s742_s21 = smov 128   ;;  %s743_s23 = smov 8  }
  0x90   : > { %485 = dma.vmem_to_hbm [thread:$0]  (%p1094_p10), %s1016_s26, 2048, %s1014_s10, %s330_s18, %s742_s21, %s742_s21, %s743_s23  }
  0x91 PF: > { %s361_s15 = sand.u32 1, %s714_s12   ;;  %p1095_p0 = scmp.ne.s32.totalorder %s1086_s25, 0 }
  0x92   : > { %p1096_p6 = scmp.ge.s32.totalorder %s734_s17, 2  ;;  %s362_s29 = scalar_lea.sflag [#allocation4], %s361_s15 }
  0x94   : > { %p499_p2 = pnand %p1096_p6, %p1095_p0 }
  0x96   : > { %709 = dma.done.wait (!%p499_p2), %s362_s29, 2048  }
  0x97   : > { %711 = vsyncadd (!%p499_p2), %s362_s29, 4294965248  ;;  %s20_s17 = sadd.s32 1, %s734_s17   ;;  %s1097_s12 = smov %s718_s13 }
  0x98   : > { %p17_p9 = scmp.ge.s32.totalorder %s20_s17, 4   ;;  %s1098_s13 = smov %s722_s14 }
  0x99   : > { %s1099_s14 = smov %s913_s28  ;;  %s1100_s15 = smov %s730_s16 }
  0x9a   : > { %s1101_s16 = smov %s1103_s30  ;;  %19 = sbr.rel (!%p17_p9) target bundleno = 7 (0x7), region = 85 }
  0xa1   :  { %367 = vsyncpa [#allocation3], 1 }
  0xa2   :  { %369 = vsyncpa [#allocation3 + $0x1], 1 }
  0xa3   :  { %370 = vsyncpa [#allocation6], 1 }
  0xa4   :  { %371 = vsyncpa [#allocation4], 1 }
  0xa5   :  { %373 = vsyncpa [#allocation4 + $0x1], 1 }

// kernel: down_forward.4
= control target key start
LH: loop header
LB: loop body
LE: loop exit
PB: predicated region body
PF: predicated region fallthrough
CT: control target
= control target key end

     0   :  { %s4965_s0 = inlined_call_operand.hbm [shape: bf16[2,8,16,128], index: 0, kind: input, shape index: {}, may-alias: {0,1,2}]   ;;  %s4966_s1 = inlined_call_operand.hbm [shape: bf16[2,8,16,128], index: 1, kind: input, shape index: {}, may-alias: {0,1,2}]   ;;  %s4967_s2 = inlined_call_operand.hbm [shape: bf16[2,8,16,128], index: 2, kind: input, shape index: {}, may-alias: {0,1,2}]   ;;  %s4968_s3 = inlined_call_operand.hbm [shape: f32[1,128], index: 3, kind: input, shape index: {}]   ;;  %s4969_s4 = inlined_call_operand.hbm [shape: f32[1,128], index: 4, kind: input, shape index: {}]   ;;  %s4970_s5 = inlined_call_operand.hbm [shape: bf16[9,128,128], index: 5, kind: input, shape index: {}]   ;;  %s4971_s6 = inlined_call_operand.hbm [shape: f32[2,8,16,128], index: 6, kind: output, shape index: {0}]   ;;  %s4972_s7 = inlined_call_operand.hbm [shape: f32[2,1,8,128], index: 7, kind: output, shape index: {1}]  }
   0x1   :  { %4995 = sst [smem:[#allocation29_spill]] %s4966_s1 }
   0x2   :  { %4996 = sst [smem:[#allocation30_spill]] %s4968_s3 }
   0x3   :  { %4997 = sst [smem:[#allocation31_spill]] %s4972_s7 }
   0x4   :  { %13 = vsyncpa [#allocation3], 0 }
   0x5   :  { %15 = vsyncpa [#allocation3 + $0x1], 0 }
   0x6   :  { %16 = vsyncpa [#allocation6], 0 }
   0x7   :  { %18 = vsyncpa [#allocation6 + $0x1], 0 }
   0x8   :  { %19 = vsyncpa [#allocation9], 0 }
   0x9   :  { %20 = vsyncpa [#allocation12], 0 }
   0xa   :  { %21 = vsyncpa [#allocation4], 0 }
   0xb   :  { %23 = vsyncpa [#allocation4 + $0x1], 0 }
   0xc   :  { %24 = vsyncpa [#allocation15], 0 }
   0xd   :  { %26 = vsyncpa [#allocation15 + $0x1], 0  ;;  %s4099_s24 = smov 0   ;;  %s4101_s25 = smov 0  }
   0xe   :  { %s4103_s26 = smov 0   ;;  %s4105_s27 = smov 0  }
   0xf   :  { %s4107_s28 = smov 0   ;;  %s4109_s29 = smov 0  }
  0x10 LB: > { %4998 = sst [smem:[#allocation22_spill]] %s4024_s24  ;;  %s4130_s30 = sadd.s32 4294967295, %s4044_s29   ;;  %s4044_s29 = sphi %s4109_s29, %s32_s29   ;;  %s4040_s28 = sphi %s4107_s28, %s5044_s28   ;;  %s4036_s27 = sphi %s4105_s27, %s5043_s27   ;;  %s4032_s26 = sphi %s4103_s26, %s5042_s26   ;;  %s4028_s25 = sphi %s4101_s25, %s5046_s25   ;;  %s4024_s24 = sphi %s4099_s24, %s5045_s24  }
  0x11   : > { %4999 = sst [smem:[#allocation23_spill]] %s4032_s26  ;;  %s2667_s8 = sadd.s32 4294967294, %s4044_s29  }
  0x12   : > { %5000 = sst [smem:[#allocation24_spill]] %s4040_s28  ;;  %p68_p0 = scmp.ne.s32.totalorder %s4032_s26, %s4028_s25 }
  0x13   : > { %5001 = sst [smem:[#allocation25_spill]] %s4044_s29  ;;  %p69_p1 = scmp.eq.s32.totalorder %s4044_s29, 0 }
  0x14   : > { %p74_p2 = scmp.ne.s32.totalorder %s4028_s25, %s4024_s24  ;;  %p4974_p3 = scmp.eq.s32.totalorder %s4130_s30, 0 }
  0x15   : > { %p4139_p4 = por %p69_p1, %p68_p0  ;;  %p227_p5 = scmp.eq.s32.totalorder %s4130_s30, 1 }
  0x16   : > { %p4146_p6 = por %p4974_p3, %p74_p2  ;;  %p233_p7 = scmp.eq.s32.totalorder %s2667_s8, 1 }
  0x17   : > { %s5002_s9 = scalar_select %p4139_p4, 1, 0 }
  0x18   : > { %s5003_s10 = scalar_select %p4146_p6, 1, 0 }
  0x19   : > { %p4150_p8 = por %p227_p5, %p68_p0  ;;  %p2668_p9 = scmp.ge.s32.totalorder %s4044_s29, 1 }
  0x1a   : > { %p4155_p10 = por %p233_p7, %p74_p2  ;;  %p268_p11 = scmp.lt.s32.totalorder %s4044_s29, 3 }
  0x1b   : > { %s5004_s11 = scalar_select %p4150_p8, 1, 0 }
  0x1c   : > { %s5005_s12 = scalar_select %p4155_p10, 1, 0 }
  0x1d   : > { %p4160_p12 = pnand %p2668_p9, %p268_p11  ;;  %s4046_s14 = smov [#allocation8]  }
  0x1e   : > { %5006 = sst [smem:[#allocation26_spill]] %s5005_s12  ;;  %s281_s15 = sshll.u32 %s4046_s14, 4  ;;  %s282_s15 = int_to_ptr.vmem [resolvable:$true] %s281_s15 }
  0x1f   : > { %s5007_s13 = scalar_select %p4160_p12, 1, 0 }
  0x20   : > { %p3581_p0 = pneg %p4160_p12  ;;  %s44_s18 = sadd.s32 1, %s4040_s28 }
  0x21   : > { %p4175_p2 = scmp.ge.s32.totalorder %s44_s18, 2  ;;  %s5010_s3 = sld [smem:[#allocation30_spill]] }
  0x22   : > { %p4170_p1 = pnand %p3581_p0, %p4974_p3 }
  0x23   : > { %s5009_s19 = scalar_select %p4175_p2, 1, 0 }
  0x24   : > { %s5008_s17 = scalar_select %p4170_p1, 1, 0 }
  0x25   : > { %p4187_p7 = pneg %p4170_p1 }
  0x27   : > { %s3744_s22 = scalar_lea.hbm %s5010_s3, 16 }
  0x28   : > { %p3745_p5 = scmp.ne.s32.totalorder %s5010_s3, %s3744_s22  ;;  %p3751_p0 = scmp.lt.u32.totalorder %s3744_s22, %s5010_s3 }
  0x29   : > { %s5011_s14 = scalar_select %p4187_p7, 1, 0 }
  0x2a   : > { %p3747_p9 = pnand %p4187_p7, %p3745_p5 }
  0x2c   : > { %p3748_p11 = pneg %p3747_p9 }
  0x2e   : > { %p3753_p13 = pnand %p3751_p0, %p3748_p11 }
  0x30   : > { %3756 = shalt.err (!%p3753_p13)
}
  0x31   : > { %s3757_s20 = scalar_lea.vmem %s282_s15, 16  ;;  %s3764_s21 = scalar_lea.vmem %s282_s15, 32 }
  0x32   : > { %p3758_p3 = scmp.ne.s32.totalorder %s282_s15, %s3757_s20  ;;  %p3765_p6 = scmp.lt.s32.totalorder %s282_s15, %s282_s15 }
  0x33   : > { %p3766_p12 = scmp.lt.s32.totalorder %s3764_s21, %s3757_s20 }
  0x34   : > { %p3760_p10 = pnand %p3758_p3, %p4187_p7 }
  0x35   : > { %p3767_p4 = por %p3766_p12, %p3765_p6 }
  0x36   : > { %p3761_p8 = pneg %p3760_p10 }
  0x38   : > { %p3768_p2 = pnand %p3767_p4, %p3761_p8 }
  0x3a   : > { %3771 = shalt.err (!%p3768_p2)
}
  0x3b   : > { %3584 = dma.hbm_to_vmem [thread:$0]  (!%p4170_p1), %s5010_s3, 16, %s282_s15, [#allocation9]  }
  0x3c   : > { %p5012_p3 = scmp.ne.s32.totalorder %s5009_s19, 0  ;;  %p3611_p4 = scmp.lt.s32.totalorder %s4044_s29, 2 }
  0x3d   : > { %s4209_s12 = sand.u32 1, %s4032_s26   ;;  %s4214_s22 = sshll.u32 %s4040_s28, 10 }
  0x3e   : > { %s5048_s18 = smov (%p5012_p3, %s44_s18), 0  ;;  %p5014_p8 = scmp.ne.s32.totalorder %s5002_s9, 0 }
  0x3f   : > { %5013 = sst [smem:[#allocation27_spill]] %s5048_s18  ;;  %s56_s16 = ssub.s32 %s4040_s28, %s5048_s18 }
  0x40   : > { %p59_p6 = scmp.eq.s32.totalorder %s56_s16, 0  ;;  %p4218_p10 = pnand %p3611_p4, %p5014_p8 }
  0x41   : > { %s343_s15 = sand.u32 1, %s4044_s29   ;;  %s2676_s19 = sshll.u32 %s4209_s12, 6 }
  0x42   : > { %s5015_s20 = scalar_select %p4218_p10, 1, 0 }
  0x43   : > { %s5016_s21 = sadd.s32 1, %s4032_s26  ;;  %s5018_s1 = sld [smem:[#allocation29_spill]] }
  0x44   : > { %s4227_s23 = scalar_select %p59_p6, %s4032_s26, %s5016_s21  }
  0x45   : > { %s347_s9 = scalar_lea.vmem [#allocation5], %s2676_s19  ;;  %s4047_s18 = smov [#allocation10]  }
  0x46   : > { %5017 = sst [smem:[#allocation28_spill]] %s4227_s23  ;;  %s357_s16 = sshll.u32 %s347_s9, 4  ;;  %s4235_s16 = int_to_ptr.vmem [resolvable:$true] %s357_s16 }
  0x47   : > { %s4237_s28 = sshll.u32 %s4047_s18, 4  ;;  %s4239_s29 = scalar_lea.sflag [#allocation6], %s343_s15  ;;  %s293_s28 = int_to_ptr.vmem [resolvable:$true] %s4237_s28 }
  0x48   : > { %p4245_p13 = pneg %p4218_p10 }
  0x49   : > { %s4233_s24 = scalar_lea.hbm %s5018_s1, %s4214_s22  ;;  %s3777_s9 = scalar_lea.hbm %s5018_s1, 2048 }
  0x4a   : > { %s3772_s21 = scalar_lea.hbm %s4233_s24, 1024  ;;  %p3778_p9 = scmp.lt.u32.totalorder %s4233_s24, %s5018_s1 }
  0x4b   : > { %p3773_p12 = scmp.ne.s32.totalorder %s4233_s24, %s3772_s21  ;;  %p3779_p11 = scmp.lt.u32.totalorder %s3777_s9, %s3772_s21 }
  0x4c   : > { %s5019_s3 = scalar_select %p4245_p13, 1, 0 }
  0x4d   : > { %p3775_p2 = pnand %p4245_p13, %p3773_p12  ;;  %p3780_p0 = por %p3779_p11, %p3778_p9 }
  0x4e   : > { %p3781_p3 = scmp.lt.u32.totalorder %s3772_s21, %s4233_s24 }
  0x4f   : > { %p3776_p5 = pneg %p3775_p2 }
  0x50   : > { %p3782_p4 = por %p3781_p3, %p3780_p0 }
  0x52   : > { %p3783_p6 = pnand %p3782_p4, %p3776_p5 }
  0x54   : > { %3786 = shalt.err (!%p3783_p6)
}
  0x55   : > { %s3787_s15 = scalar_lea.vmem %s4235_s16, 1024  ;;  %s4048_s19 = smov [#allocation5]  }
  0x56   : > { %p3788_p8 = scmp.ne.s32.totalorder %s4235_s16, %s3787_s15  ;;  %s3792_s8 = sshll.u32 %s4048_s19, 4  ;;  %s3793_s8 = int_to_ptr.vmem [resolvable:$false] %s3792_s8 }
  0x57   : > { %s3794_s23 = scalar_lea.vmem %s3793_s8, 2048  ;;  %p3795_p1 = scmp.lt.s32.totalorder %s4235_s16, %s3793_s8 }
  0x58   : > { %p3790_p12 = pnand %p3788_p8, %p4245_p13  ;;  %p3796_p7 = scmp.lt.s32.totalorder %s3794_s23, %s3787_s15 }
  0x5a   : > { %p3791_p2 = pneg %p3790_p12  ;;  %p3797_p9 = por %p3796_p7, %p3795_p1 }
  0x5c   : > { %p3798_p11 = pnand %p3797_p9, %p3791_p2 }
  0x5e   : > { %3801 = shalt.err (!%p3798_p11)
}
  0x5f   : > { %s4991_s21 = smov 64   ;;  %s4050_s9 = smov 4  }
  0x60   : > { %3597 = dma.hbm_to_vmem [thread:$0]  (!%p4218_p10), %s4233_s24, 1024, %s4235_s16, %s4239_s29, %s4991_s21, %s4991_s21, %s4050_s9  }
  0x61   : > { %s3802_s15 = scalar_lea.hbm %s4969_s4, 16  ;;  %p5020_p7 = scmp.ne.s32.totalorder %s5011_s14, 0 }
  0x62   : > { %p3803_p1 = scmp.ne.s32.totalorder %s4969_s4, %s3802_s15  ;;  %p3809_p3 = scmp.lt.u32.totalorder %s3802_s15, %s4969_s4 }
  0x64   : > { %p3805_p5 = pnand %p3803_p1, %p5020_p7 }
  0x66   : > { %p3806_p0 = pneg %p3805_p5 }
  0x68   : > { %p3811_p4 = pnand %p3809_p3, %p3806_p0 }
  0x6a   : > { %3814 = shalt.err (!%p3811_p4)
}
  0x6b   : > { %s3815_s7 = scalar_lea.vmem %s293_s28, 16  ;;  %s3822_s24 = scalar_lea.vmem %s293_s28, 32 }
  0x6c   : > { %p3816_p6 = scmp.ne.s32.totalorder %s293_s28, %s3815_s7  ;;  %p3823_p2 = scmp.lt.s32.totalorder %s293_s28, %s293_s28 }
  0x6d   : > { %p3824_p9 = scmp.lt.s32.totalorder %s3822_s24, %s3815_s7 }
  0x6e   : > { %p3818_p8 = pnand %p3816_p6, %p5020_p7 }
  0x6f   : > { %p3825_p11 = por %p3824_p9, %p3823_p2 }
  0x70   : > { %p3819_p12 = pneg %p3818_p8 }
  0x72   : > { %p3826_p10 = pnand %p3825_p11, %p3819_p12 }
  0x74   : > { %3829 = shalt.err (!%p3826_p10)
}
  0x75   : > { %p5021_p1 = scmp.ne.s32.totalorder %s5008_s17, 0  ;;  %s4051_s1 = smov [#allocation11]  }
  0x76   : > { %s302_s26 = sshll.u32 %s4051_s1, 4  ;;  %s2673_s19 = sshll.u32 %s4209_s12, 3  ;;  %s303_s26 = int_to_ptr.vmem [resolvable:$true] %s302_s26 }
  0x77   : > { %3587 = dma.hbm_to_vmem [thread:$0]  (!%p5021_p1), %s4969_s4, 16, %s293_s28, [#allocation9]  }
  0x78   : > { %s3830_s23 = scalar_lea.hbm %s4970_s5, 9216 }
  0x79   : > { %p3831_p10 = scmp.ne.s32.totalorder %s4970_s5, %s3830_s23  ;;  %p3837_p3 = scmp.lt.u32.totalorder %s3830_s23, %s4970_s5 }
  0x7b   : > { %p3833_p5 = pnand %p3831_p10, %p5020_p7 }
  0x7d   : > { %p3834_p0 = pneg %p3833_p5 }
  0x7f   : > { %p3839_p4 = pnand %p3837_p3, %p3834_p0 }
  0x81   : > { %3842 = shalt.err (!%p3839_p4)
}
  0x82   : > { %s3843_s28 = scalar_lea.vmem %s303_s26, 9216  ;;  %p3851_p2 = scmp.lt.s32.totalorder %s303_s26, %s303_s26 }
  0x83   : > { %p3844_p6 = scmp.ne.s32.totalorder %s303_s26, %s3843_s28  ;;  %p3852_p9 = scmp.lt.s32.totalorder %s3843_s28, %s3843_s28 }
  0x85   : > { %p3846_p8 = pnand %p3844_p6, %p5020_p7  ;;  %p3853_p11 = por %p3852_p9, %p3851_p2 }
  0x87   : > { %p3847_p12 = pneg %p3846_p8 }
  0x89   : > { %p3854_p13 = pnand %p3853_p11, %p3847_p12 }
  0x8b   : > { %3857 = shalt.err (!%p3854_p13)
}
  0x8c   : > { %s5022_s18 = smov 64   ;;  %s4317_s8 = scalar_lea.hbm %s4965_s0, %s4214_s22 }
  0x8d   : > { %3590 = dma.hbm_to_vmem [thread:$0]  (!%p5021_p1), %s4970_s5, 9216, %s303_s26, [#allocation12], %s5022_s18, %s5022_s18, %s4050_s9  }
  0x8e   : > { %s320_s17 = scalar_lea.vmem [#allocation2], %s2673_s19  ;;  %s4321_s7 = scalar_lea.vmem [#allocation7], %s2673_s19 }
  0x8f   : > { %s333_s23 = sshll.u32 %s320_s17, 4  ;;  %s384_s24 = sshll.u32 %s4321_s7, 4  ;;  %s4319_s23 = int_to_ptr.vmem [resolvable:$true] %s333_s23  ;;  %s4353_s24 = int_to_ptr.vmem [resolvable:$true] %s384_s24 }
  0x90   : > { %s317_s16 = scalar_lea.sflag [#allocation3], %s4209_s12  ;;  %s3858_s28 = scalar_lea.hbm %s4317_s8, 128 }
  0x91   : > { %p3859_p13 = scmp.ne.s32.totalorder %s4317_s8, %s3858_s28  ;;  %p5023_p7 = scmp.ne.s32.totalorder %s5019_s3, 0 }
  0x92   : > { %s3863_s1 = scalar_lea.hbm %s4965_s0, 2048  ;;  %p3864_p5 = scmp.lt.u32.totalorder %s4317_s8, %s4965_s0 }
  0x93   : > { %p3861_p1 = pnand %p3859_p13, %p5023_p7  ;;  %p3865_p0 = scmp.lt.u32.totalorder %s3863_s1, %s3858_s28 }
  0x94   : > { %p3867_p4 = scmp.lt.u32.totalorder %s3858_s28, %s4317_s8 }
  0x95   : > { %p3862_p10 = pneg %p3861_p1  ;;  %p3866_p3 = por %p3865_p0, %p3864_p5 }
  0x97   : > { %p3868_p6 = por %p3867_p4, %p3866_p3 }
  0x99   : > { %p3869_p8 = pnand %p3868_p6, %p3862_p10 }
  0x9b   : > { %3872 = shalt.err (!%p3869_p8)
}
  0x9c   : > { %s3873_s19 = scalar_lea.vmem %s4319_s23, 128  ;;  %s4052_s17 = smov [#allocation2]  }
  0x9d   : > { %p3874_p12 = scmp.ne.s32.totalorder %s4319_s23, %s3873_s19  ;;  %s3878_s26 = sshll.u32 %s4052_s17, 4  ;;  %s3879_s26 = int_to_ptr.vmem [resolvable:$false] %s3878_s26 }
  0x9e   : > { %s3880_s21 = scalar_lea.vmem %s3879_s26, 256  ;;  %p3881_p11 = scmp.lt.s32.totalorder %s4319_s23, %s3879_s26 }
  0x9f   : > { %p3876_p2 = pnand %p3874_p12, %p5023_p7  ;;  %p3882_p13 = scmp.lt.s32.totalorder %s3880_s21, %s3873_s19 }
  0xa1   : > { %p3877_p9 = pneg %p3876_p2  ;;  %p3883_p1 = por %p3882_p13, %p3881_p11 }
  0xa3   : > { %p3884_p5 = pnand %p3883_p1, %p3877_p9 }
  0xa5   : > { %3887 = shalt.err (!%p3884_p5)
}
  0xa6   : > { %p5024_p10 = scmp.ne.s32.totalorder %s5015_s20, 0  ;;  %s2973_s28 = sadd.s32 896, %s4214_s22 }
  0xa7   : > { %s4359_s15 = scalar_lea.hbm %s4967_s2, %s2973_s28 }
  0xa8   : > { %3594 = dma.hbm_to_vmem [thread:$0]  (!%p5024_p10), %s4317_s8, 128, %s4319_s23, %s317_s16, %s5022_s18, %s5022_s18, %s4050_s9  }
  0xa9   : > { %s3888_s12 = scalar_lea.hbm %s4359_s15, 128  ;;  %s3893_s23 = scalar_lea.hbm %s4967_s2, 2048 }
  0xaa   : > { %p3889_p0 = scmp.ne.s32.totalorder %s4359_s15, %s3888_s12  ;;  %p3894_p6 = scmp.lt.u32.totalorder %s4359_s15, %s4967_s2 }
  0xab   : > { %p3895_p8 = scmp.lt.u32.totalorder %s3893_s23, %s3888_s12  ;;  %p3897_p2 = scmp.lt.u32.totalorder %s3888_s12, %s4359_s15 }
  0xac   : > { %p3891_p3 = pnand %p3889_p0, %p5023_p7 }
  0xad   : > { %p3896_p12 = por %p3895_p8, %p3894_p6 }
  0xae   : > { %p3892_p4 = pneg %p3891_p3 }
  0xaf   : > { %p3898_p9 = por %p3897_p2, %p3896_p12 }
  0xb1   : > { %p3899_p11 = pnand %p3898_p9, %p3892_p4 }
  0xb3   : > { %3902 = shalt.err (!%p3899_p11)
}
  0xb4   : > { %s3903_s16 = scalar_lea.vmem %s4353_s24, 128  ;;  %s4053_s17 = smov [#allocation7]  }
  0xb5   : > { %p3904_p13 = scmp.ne.s32.totalorder %s4353_s24, %s3903_s16  ;;  %s3908_s26 = sshll.u32 %s4053_s17, 4  ;;  %s3909_s26 = int_to_ptr.vmem [resolvable:$false] %s3908_s26 }
  0xb6   : > { %s3910_s21 = scalar_lea.vmem %s3909_s26, 256  ;;  %p3911_p0 = scmp.lt.s32.totalorder %s4353_s24, %s3909_s26 }
  0xb7   : > { %p3906_p1 = pnand %p3904_p13, %p5023_p7  ;;  %p3912_p3 = scmp.lt.s32.totalorder %s3910_s21, %s3903_s16 }
  0xb9   : > { %p3907_p5 = pneg %p3906_p1  ;;  %p3913_p6 = por %p3912_p3, %p3911_p0 }
  0xbb   : > { %p3914_p8 = pnand %p3913_p6, %p3907_p5 }
  0xbd   : > { %3917 = shalt.err (!%p3914_p8)
}
  0xbe   : > { %3600 = dma.hbm_to_vmem [thread:$0]  (!%p5024_p10), %s4359_s15, 128, %s4353_s24, %s4239_s29, %s5022_s18, %s5022_s18, %s4050_s9  }
  0xbf   : > { %p5025_p7 = scmp.ne.s32.totalorder %s5007_s13, 0 }
  0xc0   : > { %s4389_s3 = sand.u32 (!%p5025_p7), 1, %s4028_s25   ;;  %p5026_p4 = scmp.ne.s32.totalorder (!%p5025_p7), %s5003_s10, 0 }
  0xc1   : > { %396 = sbr.rel (%p5025_p7) target bundleno = 669 (0x29d), region = 44  ;;  %s399_s28 = scalar_lea.sflag (!%p5025_p7), [#allocation3], %s4389_s3 }
  0xc8   : > { %3999 = dma.done.wait (%p5026_p4), %s399_s28, 128  }
  0xc9   : > { %4001 = vsyncadd (%p5026_p4), %s399_s28, 4294967168  ;;  %s407_s20 = sand.u32 1, %s4130_s30   ;;  %s2684_s1 = sshll.u32 %s4389_s3, 6 }
  0xca   : > { %s408_s29 = scalar_lea.sflag [#allocation6], %s407_s20  ;;  %s4398_s9 = scalar_lea.vmem [#allocation5], %s2684_s1 }
  0xcb   : > { %4003 = dma.done.wait (%p5026_p4), %s408_s29, 1152  }
  0xcc   : > { %4005 = vsyncadd (%p5026_p4), %s408_s29, 4294966144  ;;  %p5027_p10 = scmp.eq.s32.totalorder %s4130_s30, 0 }
  0xce   : > { %4007 = dma.done.wait (%p5027_p10), [#allocation9], 32   ;;  %p5028_p12 = pmov %p5027_p10 }
  0xcf   : > { %p5029_p2 = pmov %p5027_p10 }
  0xd0   : > { %4009 = vsyncadd (%p5028_p12), [#allocation9], 4294967264 }
  0xd1   : > { %4011 = dma.done.wait (%p5029_p2), [#allocation12], 9216   ;;  %p5030_p9 = pmov %p5029_p2 }
  0xd2   : > { %v4054_v0 = vmov 0.0|0.0   ;;  %v3672_v1 = vld [vmem:[#allocation11 + $0xc0] sm:$0xff]   ;;  %v3674_v3 = vld [vmem:[#allocation11 + $0xc8] sm:$0xff]   ;;  %v3676_v5 = vld [vmem:[#allocation11 + $0xd0] sm:$0xff]   ;;  %v603_v9 = vlaneseq  ;;  %vm2188_vm3 = vcmask 1040384   ;;  %vm2269_vm4 = vcmask 1046528  }
  0xd3   : > { %4013 = vsyncadd (%p5030_p9), [#allocation12], 4294958080  ;;  %3207 = vmatprep.mubr.bf16.mxu0 %v4054_v0  ;;  %v3673_v2 = vld [vmem:[#allocation11] sm:$0xff]   ;;  %3159 = vmatprep.subr.bf16.mxu1 %v3672_v1  ;;  %v3675_v4 = vld [vmem:[#allocation11 + $0x8] sm:$0xff]   ;;  %s2689_s30 = sshll.u32 %s4389_s3, 7  ;;  %s2974_s13 = sshll.u32 %s4036_s27, 11 }
  0xd4   : > { %3191 = vmatprep.subr.bf16.mxu0 %v3673_v2  ;;  %3160 = vmatpush3.bf16.msra.mxu1 %v3672_v1  ;;  %v3677_v6 = vld [vmem:[#allocation11 + $0x10] sm:$0xff]   ;;  %v3678_v7 = vld [vmem:[#allocation11 + $0xd8] sm:$0xff]   ;;  %v3680_v10 = vld [vmem:[#allocation11 + $0xe0] sm:$0xff]   ;;  %v4413_v12 = vshrl.u32 %v603_v9, 7  ;;  %s4766_s10 = scalar_lea.vmem [#allocation13], %s2689_s30  ;;  %s4858_s15 = scalar_lea.hbm %s4971_s6, %s2974_s13 }
  0xd5   : > { %3192 = vmatpush3.bf16.msra.mxu0 %v3673_v2  ;;  %3161 = vmatprep.subr.bf16.mxu1 %v3674_v3  ;;  %v3679_v8 = vld [vmem:[#allocation11 + $0x18] sm:$0xff]   ;;  %v3681_v11 = vld [vmem:[#allocation11 + $0x20] sm:$0xff]   ;;  %v3682_v13 = vld [vmem:[#allocation11 + $0xe8] sm:$0xff]   ;;  %s2454_s18 = sshll.u32 %s4766_s10, 4  ;;  %s2433_s12 = scalar_lea.sflag [#allocation4], %s4389_s3  ;;  %s4860_s18 = int_to_ptr.vmem [resolvable:$true] %s2454_s18 }
  0xd6   : > { %3193 = vmatprep.subr.bf16.mxu0 %v3675_v4  ;;  %v2976_v14 = vld [vmem:[%s4398_s9] sm:$0xff]   ;;  %v4416_v15 = vld [vmem:[#allocation8] ss:$0 sm:$0xff]  ;;  %v4419_v19 = vadd.s32 8, %v4413_v12  ;;  %v3008_v20 = vld [vmem:[%s4398_s9 + $0x8] sm:$0xff]   ;;  %vm606_vm0 = vcmp.ge.s32.totalorder %v4413_v12, 1 }
  0xd7   : > { %v3683_v16 = vld [vmem:[#allocation11 + $0x28] sm:$0xff]   ;;  %v2977_v17 = vunpack.c.l.bf16 %v2976_v14  ;;  %v2978_v18 = vunpack.c.h.bf16 %v2976_v14  ;;  %v4422_v21 = vld [vmem:[#allocation10] ss:$0 sm:$0xff]  ;;  %v2981_v22 = vunpack.c.l.bf16 %v3008_v20  ;;  %v2982_v23 = vunpack.c.h.bf16 %v3008_v20  ;;  %v3684_v26 = vld [vmem:[#allocation11 + $0xf0] sm:$0xff]   ;;  %s3918_s19 = scalar_lea.vmem %s4860_s18, 2048  ;;  %p5033_p13 = scmp.ne.s32.totalorder %s5004_s11, 0 }
  0xd8   : > { %3162 = vmatpush3.bf16.msra.mxu1 %v3674_v3  ;;  %v3685_v29 = vld [vmem:[#allocation11 + $0x30] sm:$0xff]   ;;  %vm609_vm1 = vcmp.le.s32.totalorder %v4419_v19, 8  ;;  %v3009_v32 = vld [vmem:[%s4398_s9 + $0x10] sm:$0xff]   ;;  %v3010_v37 = vld [vmem:[%s4398_s9 + $0x18] sm:$0xff]   ;;  %p3919_p11 = scmp.ne.s32.totalorder %s4860_s18, %s3918_s19  ;;  %s4055_s8 = smov [#allocation13]  }
  0xd9   : > { %3194 = vmatpush3.bf16.msra.mxu0 %v3675_v4  ;;  %3163 = vmatprep.subr.bf16.mxu1 %v3676_v5  ;;  %v538_v24 = vmul.f32 %v2977_v17, %v4416_v15  ;;  %v539_v25 = vmul.f32 %v2978_v18, %v4416_v15  ;;  %v540_v27 = vmul.f32 %v2981_v22, %v4416_v15  ;;  %v2985_v35 = vunpack.c.l.bf16 %v3009_v32  ;;  %v3686_v38 = vld [vmem:[#allocation11 + $0xf8] sm:$0xff]   ;;  %vm4440_vm2 = vmpackc.low %vm609_vm1, %vm606_vm0  ;;  %v3011_v54 = vld [vmem:[%s4398_s9 + $0x20] sm:$0xff]   ;;  %s3922_s23 = sshll.u32 %s4055_s8, 4  ;;  %s3923_s23 = int_to_ptr.vmem [resolvable:$false] %s3922_s23 }
  0xda   : > { %3195 = vmatprep.subr.bf16.mxu0 %v3677_v6  ;;  %v541_v28 = vmul.f32 %v2982_v23, %v4416_v15  ;;  %v2986_v36 = vunpack.c.h.bf16 %v3009_v32  ;;  %v2989_v41 = vunpack.c.l.bf16 %v3010_v37  ;;  %v2990_v42 = vunpack.c.h.bf16 %v3010_v37  ;;  %v3687_v46 = vld [vmem:[#allocation11 + $0x38] sm:$0xff]   ;;  %v3689_v58 = vld [vmem:[#allocation11 + $0x100] sm:$0xff]   ;;  %v3692_v22 = vld [vmem:[#allocation11 + $0x190] sm:$0xff]   ;;  %p3920_p1 = pnand %p3919_p11, %p5033_p13  ;;  %s3924_s7 = scalar_lea.vmem %s3923_s23, 4096 }
  0xdb   : > { %v565_v30 = vadd.f32 %v4422_v21, %v538_v24  ;;  %v566_v31 = vadd.f32 %v4422_v21, %v539_v25  ;;  %v567_v33 = vadd.f32 %v4422_v21, %v540_v27  ;;  %v542_v44 = vmul.f32 %v2985_v35, %v4416_v15  ;;  %v3012_v57 = vld [vmem:[%s4398_s9 + $0x28] sm:$0xff]   ;;  %v3688_v63 = vld [vmem:[#allocation11 + $0x180] sm:$0xff]   ;;  %p3925_p0 = scmp.lt.s32.totalorder %s4860_s18, %s3923_s23  ;;  %p3926_p3 = scmp.lt.s32.totalorder %s3924_s7, %s3918_s19 }
  0xdc   : > { %3164 = vmatpush3.bf16.msra.mxu1 %v3676_v5  ;;  %v568_v34 = vadd.f32 %v4422_v21, %v541_v28  ;;  %v543_v45 = vmul.f32 %v2986_v36, %v4416_v15  ;;  %v544_v48 = vmul.f32 %v2989_v41, %v4416_v15  ;;  %v545_v49 = vmul.f32 %v2990_v42, %v4416_v15  ;;  %v3014_v23 = vld [vmem:[%s4398_s9 + $0x38] sm:$0xff]   ;;  %v3693_v25 = vld [vmem:[#allocation11 + $0x110] sm:$0xff]   ;;  %v3694_v35 = vld [vmem:[#allocation11 + $0x198] sm:$0xff]   ;;  %p3921_p5 = pneg %p3920_p1 }
  0xdd   : > { %3196 = vmatpush3.bf16.msra.mxu0 %v3677_v6  ;;  %3165 = vmatprep.subr.bf16.mxu1 %v3678_v7  ;;  %v585_v39 = vmax.f32 %v565_v30, 0.0  ;;  %v586_v40 = vmax.f32 %v566_v31, 0.0  ;;  %v587_v50 = vmax.f32 %v567_v33, 0.0  ;;  %v569_v52 = vadd.f32 %v4422_v21, %v542_v44  ;;  %v3691_v6 = vld [vmem:[#allocation11 + $0x108] sm:$0xff]   ;;  %v3696_v44 = vld [vmem:[#allocation11 + $0x1a0] sm:$0xff]   ;;  %p3927_p6 = por %p3926_p3, %p3925_p0 }
  0xde   : > { %3197 = vmatprep.subr.bf16.mxu0 %v3679_v8  ;;  %v588_v51 = vmax.f32 %v568_v34, 0.0  ;;  %v570_v53 = vadd.f32 %v4422_v21, %v543_v45  ;;  %v2993_v55 = vunpack.c.l.bf16 %v3011_v54  ;;  %v2994_v56 = vunpack.c.h.bf16 %v3011_v54  ;;  %v3695_v34 = vld [vmem:[#allocation11 + $0x118] sm:$0xff]   ;;  %v3697_v45 = vld [vmem:[#allocation11 + $0x120] sm:$0xff]  }
  0xdf   : > { %v4446_v47 = vpack.c.bf16 %v586_v40, %v585_v39  ;;  %v589_v59 = vmax.f32 %v569_v52, 0.0  ;;  %v571_v61 = vadd.f32 %v4422_v21, %v544_v48  ;;  %v572_v62 = vadd.f32 %v4422_v21, %v545_v49  ;;  %v3698_v52 = vld [vmem:[#allocation11 + $0x1a8] sm:$0xff]   ;;  %p3928_p8 = pnand %p3927_p6, %p3921_p5 }
  0xe0   : > { %3166 = vmatpush3.bf16.msra.mxu1 %v3678_v7  ;;  %v590_v60 = vmax.f32 %v570_v53, 0.0  ;;  %v546_v1 = vmul.f32 %v2993_v55, %v4416_v15  ;;  %v547_v2 = vmul.f32 %v2994_v56, %v4416_v15  ;;  %v4461_v3 = vpack.c.bf16 %v588_v51, %v587_v50  ;;  %v3013_v7 = vld [vmem:[%s4398_s9 + $0x30] sm:$0xff]   ;;  %v3699_v51 = vld [vmem:[#allocation11 + $0x128] sm:$0xff]   ;;  %v3700_v56 = vld [vmem:[#allocation11 + $0x1b0] sm:$0xff]  }
  0xe1   : > { %3198 = vmatpush3.bf16.msra.mxu0 %v3679_v8  ;;  %3167 = vmatprep.subr.bf16.mxu1 %v3680_v10  ;;  %v2997_v4 = vunpack.c.l.bf16 %v3012_v57  ;;  %v2998_v5 = vunpack.c.h.bf16 %v3012_v57  ;;  %v591_v9 = vmax.f32 %v571_v61, 0.0  ;;  %v3002_v17 = vunpack.c.h.bf16 %v3013_v7  ;;  %v3705_v61 = vld [vmem:[#allocation11 + $0x140] sm:$0xff]  }
  0xe2   : > { %3199 = vmatprep.subr.bf16.mxu0 %v3681_v11  ;;  %3175 = vmatprep.mubr.msk.bf16.mxu1 %vm4440_vm2, %v4446_v47  ;;  %v4464_v8 = vpack.c.bf16 %v590_v60, %v589_v59  ;;  %v574_v14 = vadd.f32 %v4422_v21, %v547_v2  ;;  %v3005_v32 = vunpack.c.l.bf16 %v3014_v23  ;;  %v3006_v33 = vunpack.c.h.bf16 %v3014_v23  ;;  %v3702_v59 = vld [vmem:[#allocation11 + $0x1b8] sm:$0xff]   ;;  %v3704_v60 = vld [vmem:[#allocation11 + $0x40] sm:$0xff]   ;;  %v3709_v2 = vld [vmem:[#allocation11 + $0x150] sm:$0xff]  }
  0xe3   : > { %v548_v18 = vmul.f32 %v2997_v4, %v4416_v15  ;;  %v549_v20 = vmul.f32 %v2998_v5, %v4416_v15  ;;  %v3710_v4 = vld [vmem:[#allocation11 + $0x58] sm:$0xff]   ;;  %v3724_v23 = vld [vmem:[#allocation11 + $0x1d0] sm:$0xff]  }
  0xe4   : > { %3168 = vmatpush3.bf16.msra.mxu1 %v3680_v10  ;;  %v592_v10 = vmax.f32 %v572_v62, 0.0  ;;  %v594_v27 = vmax.f32 %v574_v14, 0.0  ;;  %v552_v41 = vmul.f32 %v3005_v32, %v4416_v15  ;;  %v553_v42 = vmul.f32 %v3006_v33, %v4416_v15  ;;  %v3706_v62 = vld [vmem:[#allocation11 + $0x48] sm:$0xff]   ;;  %v3711_v5 = vld [vmem:[#allocation11 + $0x158] sm:$0xff]   ;;  %v3732_v32 = vld [vmem:[#allocation11 + $0x1f0] sm:$0xff]  }
  0xe5   : > { %3200 = vmatpush3.bf16.msra.mxu0 %v3681_v11  ;;  %3169 = vmatprep.subr.bf16.mxu1 %v3682_v13  ;;  %v3690_v11 = vld [vmem:[#allocation11 + $0x188] sm:$0xff]   ;;  %v575_v30 = vadd.f32 %v4422_v21, %v548_v18  ;;  %v576_v31 = vadd.f32 %v4422_v21, %v549_v20  ;;  %v3718_v14 = vld [vmem:[#allocation11 + $0x78] sm:$0xff]   ;;  %v3721_v18 = vld [vmem:[#allocation11 + $0x80] sm:$0xff]  }
  0xe6   : > { %3201 = vmatprep.subr.bf16.mxu0 %v3683_v16  ;;  %v4477_v24 = vpack.c.bf16 %v592_v10, %v591_v9  ;;  %v579_v49 = vadd.f32 %v4422_v21, %v552_v41  ;;  %v580_v50 = vadd.f32 %v4422_v21, %v553_v42  ;;  %v3714_v9 = vld [vmem:[#allocation11 + $0x68] sm:$0xff]   ;;  %v3733_v33 = vld [vmem:[#allocation11 + $0xb0] sm:$0xff]  }
  0xe7   : > { %v595_v39 = vmax.f32 %v575_v30, 0.0  ;;  %v596_v40 = vmax.f32 %v576_v31, 0.0  ;;  %v3715_v10 = vld [vmem:[#allocation11 + $0x168] sm:$0xff]   ;;  %v3742_v42 = vld [vmem:[#allocation11 + $0x230] sm:$0xff]  }
  0xe8   : > { %3170 = vmatpush3.bf16.msra.mxu1 %v3682_v13  ;;  %v573_v13 = vadd.f32 %v4422_v21, %v546_v1  ;;  %v599_v54 = vmax.f32 %v579_v49, 0.0  ;;  %v600_v55 = vmax.f32 %v580_v50, 0.0  ;;  %v3708_v1 = vld [vmem:[#allocation11 + $0x50] sm:$0xff]   ;;  %v3722_v20 = vld [vmem:[#allocation11 + $0x1c8] sm:$0xff]  }
  0xe9   : > { %3202 = vmatpush3.bf16.msra.mxu0 %v3683_v16  ;;  %3171 = vmatprep.subr.bf16.mxu1 %v3684_v26  ;;  %v3001_v16 = vunpack.c.l.bf16 %v3013_v7  ;;  %v3713_v7 = vld [vmem:[#allocation11 + $0x160] sm:$0xff]   ;;  %v3730_v30 = vld [vmem:[#allocation11 + $0x1e8] sm:$0xff]  }
  0xea   : > { %3203 = vmatprep.subr.bf16.mxu0 %v3685_v29  ;;  %v4525_v57 = vpack.c.bf16 %v600_v55, %v599_v54  ;;  %v3731_v31 = vld [vmem:[#allocation11 + $0xa8] sm:$0xff]  }
  0xeb   : > { %v550_v28 = vmul.f32 %v3001_v16, %v4416_v15  ;;  %v3719_v16 = vld [vmem:[#allocation11 + $0x178] sm:$0xff]   ;;  %v3741_v41 = vld [vmem:[#allocation11 + $0x228] sm:$0xff]  }
  0xec   : > { %3172 = vmatpush3.bf16.msra.mxu1 %v3684_v26  ;;  %v593_v26 = vmax.f32 %v573_v13, 0.0  ;;  %v3717_v13 = vld [vmem:[#allocation11 + $0x170] sm:$0xff]  }
  0xed   : > { %3204 = vmatpush3.bf16.msra.mxu0 %v3685_v29  ;;  %3173 = vmatprep.subr.bf16.mxu1 %v3686_v38  ;;  %v551_v29 = vmul.f32 %v3002_v17, %v4416_v15  ;;  %v577_v37 = vadd.f32 %v4422_v21, %v550_v28  ;;  %v4507_v15 = vpack.c.bf16 %v596_v40, %v595_v39  ;;  %v3720_v17 = vld [vmem:[#allocation11 + $0x1c0] sm:$0xff]   ;;  %v3738_v39 = vld [vmem:[#allocation11 + $0x210] sm:$0xff]   ;;  %v3739_v40 = vld [vmem:[#allocation11 + $0x218] sm:$0xff]  }
  0xee   : > { %3205 = vmatprep.subr.bf16.mxu0 %v3687_v46  ;;  %v4489_v36 = vpack.c.bf16 %v594_v27, %v593_v26  ;;  %v3726_v26 = vld [vmem:[#allocation11 + $0x1d8] sm:$0xff]   ;;  %v3728_v28 = vld [vmem:[#allocation11 + $0x1e0] sm:$0xff]  }
  0xef   : > { %v3727_v27 = vld [vmem:[#allocation11 + $0x98] sm:$0xff]  }
  0xf0   : > { %3174 = vmatpush3.bf16.msra.mxu1 %v3686_v38  ;;  %v578_v38 = vadd.f32 %v4422_v21, %v551_v29  ;;  %v3701_v21 = vld [vmem:[#allocation11 + $0x130] sm:$0xff]   ;;  %v3729_v29 = vld [vmem:[#allocation11 + $0xa0] sm:$0xff]  }
  0xf1   : > { %3206 = vmatpush3.bf16.msra.mxu0 %v3687_v46  ;;  %3255 = vmatprep.subr.bf16.mxu1 %v3689_v58  ;;  %v597_v46 = vmax.f32 %v577_v37, 0.0  ;;  %v3736_v37 = vld [vmem:[#allocation11 + $0x200] sm:$0xff]  }
  0xf2   : > { %3223 = vmatprep.subr.bf16.mxu0 %v3688_v63  ;;  %v598_v48 = vmax.f32 %v578_v38, 0.0  ;;  %v3737_v38 = vld [vmem:[#allocation11 + $0x208] sm:$0xff]  }
  0xf3   : > { %3176 = vmatmul.mubr.msk.bf16.vlgmr.msra.gmra.mrb[0].mxu1 %vm4440_vm2, %v4461_v3 }
  0xf4   : > { %3208 = vmatmul.mubr.msk.bf16.vlgmr.msra.gmra.mrb[0].mxu0 %vm4440_vm2, %v4446_v47  ;;  %3256 = vmatpush3.bf16.msra.mxu1 %v3689_v58  ;;  %v4511_v53 = vpack.c.bf16 %v598_v48, %v597_v46  ;;  %v3703_v58 = vld [vmem:[#allocation11 + $0x138] sm:$0xff]  }
  0xf5   : > { %3224 = vmatpush3.bf16.msra.mxu0 %v3688_v63  ;;  %3257 = vmatprep.subr.bf16.mxu1 %v3691_v6  ;;  %v3707_v63 = vld [vmem:[#allocation11 + $0x148] sm:$0xff]  }
  0xf6   : > { %3225 = vmatprep.subr.bf16.mxu0 %v3690_v11  ;;  %3179 = vmatprep.mubr.msk.bf16.mxu1 %vm4440_vm2, %v4464_v8 }
  0xf7   : > { %3211 = vmatprep.mubr.msk.bf16.mxu0 %vm4440_vm2, %v4461_v3 }
  0xf8   : > { %3258 = vmatpush3.bf16.msra.mxu1 %v3691_v6  ;;  %v3712_v6 = vld [vmem:[#allocation11 + $0x60] sm:$0xff]  }
  0xf9   : > { %3226 = vmatpush3.bf16.msra.mxu0 %v3690_v11  ;;  %3259 = vmatprep.subr.bf16.mxu1 %v3693_v25  ;;  %v3716_v11 = vld [vmem:[#allocation11 + $0x70] sm:$0xff]  }
  0xfa   : > { %3227 = vmatprep.subr.bf16.mxu0 %v3692_v22 }
  0xfb   : > { %3180 = vmatmul.mubr.msk.bf16.gmra.mrb[4].mxu1 %vm4440_vm2, %v4477_v24 }
  0xfc   : > { %3212 = vmatmul.mubr.msk.bf16.gmra.mrb[4].mxu0 %vm4440_vm2, %v4464_v8  ;;  %3260 = vmatpush3.bf16.msra.mxu1 %v3693_v25  ;;  %v3725_v25 = vld [vmem:[#allocation11 + $0x90] sm:$0xff]  }
  0xfd   : > { %3228 = vmatpush3.bf16.msra.mxu0 %v3692_v22  ;;  %3261 = vmatprep.subr.bf16.mxu1 %v3695_v34  ;;  %v3723_v22 = vld [vmem:[#allocation11 + $0x88] sm:$0xff]  }
  0xfe   : > { %3229 = vmatprep.subr.bf16.mxu0 %v3694_v35  ;;  %3183 = vmatprep.mubr.msk.bf16.mxu1 %vm4440_vm2, %v4489_v36 }
  0xff   : > { %3215 = vmatprep.mubr.msk.bf16.mxu0 %vm4440_vm2, %v4477_v24 }
 0x100   : > { %3262 = vmatpush3.bf16.msra.mxu1 %v3695_v34  ;;  %v3734_v34 = vld [vmem:[#allocation11 + $0x1f8] sm:$0xff]  }
 0x101   : > { %3230 = vmatpush3.bf16.msra.mxu0 %v3694_v35  ;;  %3263 = vmatprep.subr.bf16.mxu1 %v3697_v45  ;;  %v3735_v35 = vld [vmem:[#allocation11 + $0xb8] sm:$0xff]  }
 0x102   : > { %3231 = vmatprep.subr.bf16.mxu0 %v3696_v44 }
 0x103   : > { %3184 = vmatmul.mubr.msk.bf16.gmra.mrb[8].mxu1 %vm4440_vm2, %v4507_v15 }
 0x104   : > { %3216 = vmatmul.mubr.msk.bf16.gmra.mrb[8].mxu0 %vm4440_vm2, %v4489_v36  ;;  %3264 = vmatpush3.bf16.msra.mxu1 %v3697_v45 }
 0x105   : > { %3232 = vmatpush3.bf16.msra.mxu0 %v3696_v44  ;;  %3265 = vmatprep.subr.bf16.mxu1 %v3699_v51  ;;  %v3743_v44 = vld [vmem:[#allocation11 + $0x238] sm:$0xff]  }
 0x106   : > { %3233 = vmatprep.subr.bf16.mxu0 %v3698_v52  ;;  %3187 = vmatprep.mubr.msk.bf16.mxu1 %vm4440_vm2, %v4511_v53 }
 0x107   : > { %3219 = vmatprep.mubr.msk.bf16.mxu0 %vm4440_vm2, %v4507_v15 }
 0x108   : > { %3266 = vmatpush3.bf16.msra.mxu1 %v3699_v51 }
 0x109   : > { %3234 = vmatpush3.bf16.msra.mxu0 %v3698_v52  ;;  %3267 = vmatprep.subr.bf16.mxu1 %v3701_v21 }
 0x10a   : > { %3235 = vmatprep.subr.bf16.mxu0 %v3700_v56 }
 0x10b   : > { %3188 = vmatmul.mubr.msk.bf16.gmra.mrb[12].mxu1 %vm4440_vm2, %v4525_v57 }
 0x10c   : > { %3220 = vmatmul.mubr.msk.bf16.gmra.mrb[12].mxu0 %vm4440_vm2, %v4511_v53  ;;  %3268 = vmatpush3.bf16.msra.mxu1 %v3701_v21 }
 0x10d   : > { %3236 = vmatpush3.bf16.msra.mxu0 %v3700_v56  ;;  %3269 = vmatprep.subr.bf16.mxu1 %v3703_v58 }
 0x10e   : > { %3237 = vmatprep.subr.bf16.mxu0 %v3702_v59  ;;  %3239 = vmatprep.mubr.msk.bf16.mxu0 %vm4440_vm2, %v4461_v3 }
 0x10f   : > { %3271 = vmatprep.mubr.msk.bf16.mxu1 %vm4440_vm2, %v4446_v47 }
 0x110   : > { %3270 = vmatpush3.bf16.msra.mxu1 %v3703_v58 }
 0x111   : > { %3238 = vmatpush3.bf16.msra.mxu0 %v3702_v59  ;;  %3287 = vmatprep.subr.bf16.mxu1 %v3704_v60 }
 0x112   : > { %3351 = vmatprep.subr.bf16.mxu0 %v3705_v61 }
 0x113   : > { %3272 = vmatmul.mubr.msk.bf16.vlgmr.msra.gmra.mrb[16].mxu1 %vm4440_vm2, %v4461_v3 }
 0x114   : > { %3240 = vmatmul.mubr.msk.bf16.vlgmr.msra.gmra.mrb[0].mxu0 %vm4440_vm2, %v4464_v8  ;;  %3288 = vmatpush3.bf16.msra.mxu1 %v3704_v60 }
 0x115   : > { %3352 = vmatpush3.bf16.msra.mxu0 %v3705_v61  ;;  %3289 = vmatprep.subr.bf16.mxu1 %v3706_v62 }
 0x116   : > { %3353 = vmatprep.subr.bf16.mxu0 %v3707_v63  ;;  %3243 = vmatprep.mubr.msk.bf16.mxu0 %vm4440_vm2, %v4477_v24 }
 0x117   : > { %3275 = vmatprep.mubr.msk.bf16.mxu1 %vm4440_vm2, %v4464_v8 }
 0x118   : > { %3290 = vmatpush3.bf16.msra.mxu1 %v3706_v62 }
 0x119   : > { %3354 = vmatpush3.bf16.msra.mxu0 %v3707_v63  ;;  %3291 = vmatprep.subr.bf16.mxu1 %v3708_v1 }
 0x11a   : > { %3355 = vmatprep.subr.bf16.mxu0 %v3709_v2 }
 0x11b   : > { %3276 = vmatmul.mubr.msk.bf16.gmra.mrb[20].mxu1 %vm4440_vm2, %v4477_v24 }
 0x11c   : > { %3244 = vmatmul.mubr.msk.bf16.gmra.mrb[4].mxu0 %vm4440_vm2, %v4489_v36  ;;  %3292 = vmatpush3.bf16.msra.mxu1 %v3708_v1 }
 0x11d   : > { %3356 = vmatpush3.bf16.msra.mxu0 %v3709_v2  ;;  %3293 = vmatprep.subr.bf16.mxu1 %v3710_v4 }
 0x11e   : > { %3357 = vmatprep.subr.bf16.mxu0 %v3711_v5  ;;  %3247 = vmatprep.mubr.msk.bf16.mxu0 %vm4440_vm2, %v4507_v15 }
 0x11f   : > { %3279 = vmatprep.mubr.msk.bf16.mxu1 %vm4440_vm2, %v4489_v36 }
 0x120   : > { %3294 = vmatpush3.bf16.msra.mxu1 %v3710_v4 }
 0x121   : > { %3358 = vmatpush3.bf16.msra.mxu0 %v3711_v5  ;;  %3295 = vmatprep.subr.bf16.mxu1 %v3712_v6 }
 0x122   : > { %3359 = vmatprep.subr.bf16.mxu0 %v3713_v7 }
 0x123   : > { %3280 = vmatmul.mubr.msk.bf16.gmra.mrb[24].mxu1 %vm4440_vm2, %v4507_v15 }
 0x124   : > { %3248 = vmatmul.mubr.msk.bf16.gmra.mrb[8].mxu0 %vm4440_vm2, %v4511_v53  ;;  %3296 = vmatpush3.bf16.msra.mxu1 %v3712_v6 }
 0x125   : > { %3360 = vmatpush3.bf16.msra.mxu0 %v3713_v7  ;;  %3297 = vmatprep.subr.bf16.mxu1 %v3714_v9 }
 0x126   : > { %3361 = vmatprep.subr.bf16.mxu0 %v3715_v10  ;;  %3251 = vmatprep.mubr.msk.bf16.mxu0 %vm4440_vm2, %v4525_v57 }
 0x127   : > { %3283 = vmatprep.mubr.msk.bf16.mxu1 %vm4440_vm2, %v4511_v53 }
 0x128   : > { %3298 = vmatpush3.bf16.msra.mxu1 %v3714_v9 }
 0x129   : > { %3362 = vmatpush3.bf16.msra.mxu0 %v3715_v10  ;;  %3299 = vmatprep.subr.bf16.mxu1 %v3716_v11 }
 0x12a   : > { %3363 = vmatprep.subr.bf16.mxu0 %v3717_v13 }
 0x12b   : > { %3284 = vmatmul.mubr.msk.bf16.gmra.mrb[28].mxu1 %vm4440_vm2, %v4525_v57 }
 0x12c   : > { %3252 = vmatmul.mubr.bf16.gmra.mrb[12].mxu0 %v4054_v0  ;;  %3300 = vmatpush3.bf16.msra.mxu1 %v3716_v11 }
 0x12d   : > { %3364 = vmatpush3.bf16.msra.mxu0 %v3717_v13  ;;  %3301 = vmatprep.subr.bf16.mxu1 %v3718_v14 }
 0x12e   : > { %3365 = vmatprep.subr.bf16.mxu0 %v3719_v16  ;;  %3303 = vmatprep.mubr.bf16.mxu1 %v4054_v0 }
 0x12f   : > { %3367 = vmatprep.mubr.msk.bf16.mxu0 %vm4440_vm2, %v4446_v47 }
 0x130   : > { %3302 = vmatpush3.bf16.msra.mxu1 %v3718_v14 }
 0x131   : > { %3366 = vmatpush3.bf16.msra.mxu0 %v3719_v16  ;;  %3319 = vmatprep.subr.bf16.mxu1 %v3720_v17 }
 0x132   : > { %3383 = vmatprep.subr.bf16.mxu0 %v3721_v18 }
 0x133   : > { %3304 = vmatmul.mubr.msk.bf16.vlgmr.msra.gmra.mrb[16].mxu1 %vm4440_vm2, %v4446_v47 }
 0x134   : > { %3368 = vmatmul.mubr.msk.bf16.vlgmr.msra.gmra.mrb[16].mxu0 %vm4440_vm2, %v4461_v3  ;;  %3320 = vmatpush3.bf16.msra.mxu1 %v3720_v17 }
 0x135   : > { %3384 = vmatpush3.bf16.msra.mxu0 %v3721_v18  ;;  %3321 = vmatprep.subr.bf16.mxu1 %v3722_v20 }
 0x136   : > { %3385 = vmatprep.subr.bf16.mxu0 %v3723_v22  ;;  %3307 = vmatprep.mubr.msk.bf16.mxu1 %vm4440_vm2, %v4461_v3 }
 0x137   : > { %3371 = vmatprep.mubr.msk.bf16.mxu0 %vm4440_vm2, %v4464_v8 }
 0x138   : > { %3322 = vmatpush3.bf16.msra.mxu1 %v3722_v20 }
 0x139   : > { %3386 = vmatpush3.bf16.msra.mxu0 %v3723_v22  ;;  %3323 = vmatprep.subr.bf16.mxu1 %v3724_v23 }
 0x13a   : > { %3387 = vmatprep.subr.bf16.mxu0 %v3725_v25 }
 0x13b   : > { %3308 = vmatmul.mubr.msk.bf16.gmra.mrb[20].mxu1 %vm4440_vm2, %v4464_v8 }
 0x13c   : > { %3372 = vmatmul.mubr.msk.bf16.gmra.mrb[20].mxu0 %vm4440_vm2, %v4477_v24  ;;  %3324 = vmatpush3.bf16.msra.mxu1 %v3724_v23 }
 0x13d   : > { %3388 = vmatpush3.bf16.msra.mxu0 %v3725_v25  ;;  %3325 = vmatprep.subr.bf16.mxu1 %v3726_v26 }
 0x13e   : > { %3389 = vmatprep.subr.bf16.mxu0 %v3727_v27  ;;  %3311 = vmatprep.mubr.msk.bf16.mxu1 %vm4440_vm2, %v4477_v24 }
 0x13f   : > { %3375 = vmatprep.mubr.msk.bf16.mxu0 %vm4440_vm2, %v4489_v36 }
 0x140   : > { %3326 = vmatpush3.bf16.msra.mxu1 %v3726_v26 }
 0x141   : > { %3390 = vmatpush3.bf16.msra.mxu0 %v3727_v27  ;;  %3327 = vmatprep.subr.bf16.mxu1 %v3728_v28 }
 0x142   : > { %3391 = vmatprep.subr.bf16.mxu0 %v3729_v29 }
 0x143   : > { %3312 = vmatmul.mubr.msk.bf16.gmra.mrb[24].mxu1 %vm4440_vm2, %v4489_v36 }
 0x144   : > { %3376 = vmatmul.mubr.msk.bf16.gmra.mrb[24].mxu0 %vm4440_vm2, %v4507_v15  ;;  %3328 = vmatpush3.bf16.msra.mxu1 %v3728_v28 }
 0x145   : > { %3392 = vmatpush3.bf16.msra.mxu0 %v3729_v29  ;;  %3329 = vmatprep.subr.bf16.mxu1 %v3730_v30 }
 0x146   : > { %3393 = vmatprep.subr.bf16.mxu0 %v3731_v31  ;;  %3315 = vmatprep.mubr.msk.bf16.mxu1 %vm4440_vm2, %v4507_v15 }
 0x147   : > { %3379 = vmatprep.mubr.msk.bf16.mxu0 %vm4440_vm2, %v4511_v53 }
 0x148   : > { %3330 = vmatpush3.bf16.msra.mxu1 %v3730_v30 }
 0x149   : > { %3394 = vmatpush3.bf16.msra.mxu0 %v3731_v31  ;;  %3331 = vmatprep.subr.bf16.mxu1 %v3732_v32 }
 0x14a   : > { %3395 = vmatprep.subr.bf16.mxu0 %v3733_v33 }
 0x14b   : > { %3316 = vmatmul.mubr.msk.bf16.gmra.mrb[28].mxu1 %vm4440_vm2, %v4511_v53 }
 0x14c   : > { %3380 = vmatmul.mubr.msk.bf16.gmra.mrb[28].mxu0 %vm4440_vm2, %v4525_v57  ;;  %3332 = vmatpush3.bf16.msra.mxu1 %v3732_v32 }
 0x14d   : > { %3396 = vmatpush3.bf16.msra.mxu0 %v3733_v33  ;;  %3333 = vmatprep.subr.bf16.mxu1 %v3734_v34 }
 0x14e   : > { %3397 = vmatprep.subr.bf16.mxu0 %v3735_v35  ;;  %3335 = vmatprep.mubr.msk.bf16.mxu1 %vm4440_vm2, %v4461_v3 }
 0x14f   : > { %3399 = vmatprep.mubr.bf16.mxu0 %v4054_v0 }
 0x150   : > { %3334 = vmatpush3.bf16.msra.mxu1 %v3734_v34 }
 0x151   : > { %3398 = vmatpush3.bf16.msra.mxu0 %v3735_v35  ;;  %3447 = vmatprep.subr.bf16.mxu1 %v3736_v37 }
 0x152   : > { %3415 = vmatprep.subr.bf16.mxu0 %v3736_v37 }
 0x153   : > { %3336 = vmatmul.mubr.msk.bf16.vlgmr.msra.gmra.mrb[16].mxu1 %vm4440_vm2, %v4464_v8 }
 0x154   : > { %3400 = vmatmul.mubr.msk.bf16.vlgmr.msra.gmra.mrb[16].mxu0 %vm4440_vm2, %v4446_v47  ;;  %3455 = vmatpush3.bf16.msra.mxu1 %v3736_v37  ;;  %v3740_v47 = vld [vmem:[#allocation11 + $0x220] sm:$0xff]  }
 0x155   : > { %3416 = vmatpush3.bf16.msra.mxu0 %v3736_v37  ;;  %3448 = vmatprep.subr.bf16.mxu1 %v3737_v38 }
 0x156   : > { %3417 = vmatprep.subr.bf16.mxu0 %v3737_v38  ;;  %3339 = vmatprep.mubr.msk.bf16.mxu1 %vm4440_vm2, %v4477_v24 }
 0x157   : > { %3403 = vmatprep.mubr.msk.bf16.mxu0 %vm4440_vm2, %v4461_v3 }
 0x158   : > { %3456 = vmatpush3.bf16.msra.mxu1 %v3737_v38 }
 0x159   : > { %3418 = vmatpush3.bf16.msra.mxu0 %v3737_v38  ;;  %3449 = vmatprep.subr.bf16.mxu1 %v3738_v39 }
 0x15a   : > { %3419 = vmatprep.subr.bf16.mxu0 %v3738_v39 }
 0x15b   : > { %3340 = vmatmul.mubr.msk.bf16.gmra.mrb[20].mxu1 %vm4440_vm2, %v4489_v36 }
 0x15c   : > { %3404 = vmatmul.mubr.msk.bf16.gmra.mrb[20].mxu0 %vm4440_vm2, %v4464_v8  ;;  %3457 = vmatpush3.bf16.msra.mxu1 %v3738_v39 }
 0x15d   : > { %3420 = vmatpush3.bf16.msra.mxu0 %v3738_v39  ;;  %3450 = vmatprep.subr.bf16.mxu1 %v3739_v40 }
 0x15e   : > { %3421 = vmatprep.subr.bf16.mxu0 %v3739_v40  ;;  %3343 = vmatprep.mubr.msk.bf16.mxu1 %vm4440_vm2, %v4507_v15 }
 0x15f   : > { %3407 = vmatprep.mubr.msk.bf16.mxu0 %vm4440_vm2, %v4477_v24 }
 0x160   : > { %3458 = vmatpush3.bf16.msra.mxu1 %v3739_v40 }
 0x161   : > { %3422 = vmatpush3.bf16.msra.mxu0 %v3739_v40  ;;  %3451 = vmatprep.subr.bf16.mxu1 %v3740_v47 }
 0x162   : > { %3423 = vmatprep.subr.bf16.mxu0 %v3740_v47 }
 0x163   : > { %3344 = vmatmul.mubr.msk.bf16.gmra.mrb[24].mxu1 %vm4440_vm2, %v4511_v53 }
 0x164   : > { %3408 = vmatmul.mubr.msk.bf16.gmra.mrb[24].mxu0 %vm4440_vm2, %v4489_v36  ;;  %3459 = vmatpush3.bf16.msra.mxu1 %v3740_v47 }
 0x165   : > { %3424 = vmatpush3.bf16.msra.mxu0 %v3740_v47  ;;  %3452 = vmatprep.subr.bf16.mxu1 %v3741_v41 }
 0x166   : > { %3425 = vmatprep.subr.bf16.mxu0 %v3741_v41  ;;  %3347 = vmatprep.mubr.msk.bf16.mxu1 %vm4440_vm2, %v4525_v57 }
 0x167   : > { %3411 = vmatprep.mubr.msk.bf16.mxu0 %vm4440_vm2, %v4507_v15 }
 0x168   : > { %3460 = vmatpush3.bf16.msra.mxu1 %v3741_v41 }
 0x169   : > { %3426 = vmatpush3.bf16.msra.mxu0 %v3741_v41  ;;  %3453 = vmatprep.subr.bf16.mxu1 %v3742_v42 }
 0x16a   : > { %3427 = vmatprep.subr.bf16.mxu0 %v3742_v42 }
 0x16b   : > { %3348 = vmatmul.mubr.bf16.gmra.mrb[28].mxu1 %v4054_v0 }
 0x16c   : > { %3412 = vmatmul.mubr.msk.bf16.gmra.mrb[28].mxu0 %vm4440_vm2, %v4511_v53  ;;  %3461 = vmatpush3.bf16.msra.mxu1 %v3742_v42 }
 0x16d   : > { %3428 = vmatpush3.bf16.msra.mxu0 %v3742_v42  ;;  %3454 = vmatprep.subr.bf16.mxu1 %v3743_v44 }
 0x16e   : > { %3429 = vmatprep.subr.bf16.mxu0 %v3743_v44  ;;  %3431 = vmatprep.mubr.msk.bf16.mxu0 %vm4440_vm2, %v4461_v3 }
 0x16f   : > { %3439 = vmatprep.mubr.msk.bf16.mxu1 %vm4440_vm2, %v4507_v15 }
 0x170   : > { %3462 = vmatpush3.bf16.msra.mxu1 %v3743_v44 }
 0x171   : > { %3430 = vmatpush3.bf16.msra.mxu0 %v3743_v44 }
 0x173   : > { %3440 = vmatmul.mubr.msk.bf16.vlgmr.msra.gmra.mrb[32].mxu1 %vm4440_vm2, %v4511_v53 }
 0x174   : > { %3432 = vmatmul.mubr.msk.bf16.vlgmr.msra.gmra.mrb[16].mxu0 %vm4440_vm2, %v4464_v8  ;;  %3443 = vmatprep.mubr.msk.bf16.mxu1 %vm4440_vm2, %v4525_v57 }
 0x175   : > { %3435 = vmatprep.mubr.msk.bf16.mxu0 %vm4440_vm2, %v4477_v24 }
 0x17b   : > { %3444 = vmatmul.mubr.bf16.gmra.mrb[36].mxu1 %v4054_v0 }
 0x17c   : > { %3436 = vmatmul.mubr.msk.bf16.gmra.mrb[20].mxu0 %vm4440_vm2, %v4489_v36 }
 0x1c6   : > { %v3177_v3 = vpop.f32.mrb[0].mxu1 }
 0x1c7   : > { %v782_v45 = vpop.f32.mrb[1].mxu1 }
 0x1c8   : > { %v3178_v46 = vpop.f32.mrb[2].mxu1 }
 0x1c9   : > { %v785_v48 = vpop.f32.mrb[3].mxu1 }
 0x1ce   : > { %v3181_v15 = vpop.f32.mrb[4].mxu1 }
 0x1cf   : > { %v798_v8 = vpop.f32.mrb[5].mxu1 }
 0x1d0   : > { %v3182_v49 = vpop.f32.mrb[6].mxu1 }
 0x1d1   : > { %v801_v50 = vpop.f32.mrb[7].mxu1 }
 0x1d6   : > { %v3185_v51 = vpop.f32.mrb[8].mxu1 }
 0x1d7   : > { %v814_v52 = vpop.f32.mrb[9].mxu1 }
 0x1d8   : > { %v3186_v53 = vpop.f32.mrb[10].mxu1 }
 0x1d9   : > { %v817_v54 = vpop.f32.mrb[11].mxu1 }
 0x1de   : > { %v3189_v55 = vpop.f32.mrb[12].mxu1 }
 0x1df   : > { %v830_v24 = vpop.f32.mrb[13].mxu1 }
 0x1e0   : > { %v3190_v21 = vpop.f32.mrb[14].mxu1 }
 0x1e1   : > { %v833_v0 = vpop.f32.mrb[15].mxu1 }
 0x1e7   : > { %v3241_v56 = vpop.f32.mrb[0].mxu0 }
 0x1e8   : > { %v3463_v57 = vadd.f32 %v3241_v56, %v3177_v3  ;;  %v1089_v43 = vpop.f32.mrb[1].mxu0 }
 0x1e9   : > { %v4691_v36 = vadd.f32 %v1089_v43, %v782_v45  ;;  %v3242_v58 = vpop.f32.mrb[2].mxu0 }
 0x1ea   : > { %v3465_v59 = vadd.f32 %v3242_v58, %v3178_v46  ;;  %v1092_v60 = vpop.f32.mrb[3].mxu0  ;;  %v2192_v62 = vrot.slane %v3463_v57, 7 }
 0x1eb   : > { %v3466_v61 = vadd.f32 %v1092_v60, %v785_v48  ;;  %v2189_v1 = vrot.slane %v4691_v36, 7 }
 0x1ec   : > { %v2194_v63 = vrot.slane %v3465_v59, 7 }
 0x1ed   : > { %v2190_v2 = vrot.slane %v3466_v61, 7 }
 0x1ee   : > { %v2195_v4 = vsel %vm2188_vm3, %v2192_v62, %v2194_v63 }
 0x1ef   : > { %v3245_v5 = vpop.f32.mrb[4].mxu0  ;;  %v2193_v6 = vsel %vm2188_vm3, %v2190_v2, %v2192_v62  ;;  %v2191_v7 = vsel %vm2188_vm3, %v2189_v1, %v2190_v2 }
 0x1f0   : > { %v3467_v9 = vadd.f32 %v3245_v5, %v3181_v15  ;;  %v1105_v10 = vpop.f32.mrb[5].mxu0 }
 0x1f1   : > { %v3468_v11 = vadd.f32 %v1105_v10, %v798_v8  ;;  %v3246_v13 = vpop.f32.mrb[6].mxu0 }
 0x1f2   : > { %v3469_v14 = vadd.f32 %v3246_v13, %v3182_v49  ;;  %v1108_v16 = vpop.f32.mrb[7].mxu0  ;;  %v2200_v20 = vrot.slane %v3467_v9, 7 }
 0x1f3   : > { %v2196_v17 = vrot.slane %v3468_v11, 7  ;;  %v3470_v18 = vadd.f32 %v1108_v16, %v801_v50 }
 0x1f4   : > { %v2202_v22 = vrot.slane %v3469_v14, 7 }
 0x1f5   : > { %v2198_v23 = vrot.slane %v3470_v18, 7  ;;  %v2197_v25 = vsel %vm2188_vm3, %v2194_v63, %v2196_v17 }
 0x1f6   : > { %v2203_v26 = vsel %vm2188_vm3, %v2200_v20, %v2202_v22 }
 0x1f7   : > { %v3249_v27 = vpop.f32.mrb[8].mxu0  ;;  %v2201_v28 = vsel %vm2188_vm3, %v2198_v23, %v2200_v20  ;;  %v2199_v29 = vsel %vm2188_vm3, %v2196_v17, %v2198_v23 }
 0x1f8   : > { %v3471_v30 = vadd.f32 %v3249_v27, %v3185_v51  ;;  %v1121_v31 = vpop.f32.mrb[9].mxu0 }
 0x1f9   : > { %v3472_v32 = vadd.f32 %v1121_v31, %v814_v52  ;;  %v3250_v33 = vpop.f32.mrb[10].mxu0 }
 0x1fa   : > { %v3473_v34 = vadd.f32 %v3250_v33, %v3186_v53  ;;  %v1124_v35 = vpop.f32.mrb[11].mxu0  ;;  %v2208_v39 = vrot.slane %v3471_v30, 7 }
 0x1fb   : > { %v2204_v37 = vrot.slane %v3472_v32, 7  ;;  %v3474_v38 = vadd.f32 %v1124_v35, %v817_v54 }
 0x1fc   : > { %v2210_v40 = vrot.slane %v3473_v34, 7 }
 0x1fd   : > { %v2206_v47 = vrot.slane %v3474_v38, 7  ;;  %v2205_v41 = vsel %vm2188_vm3, %v2202_v22, %v2204_v37 }
 0x1fe   : > { %v2211_v42 = vsel %vm2188_vm3, %v2208_v39, %v2210_v40 }
 0x1ff   : > { %v3253_v44 = vpop.f32.mrb[12].mxu0  ;;  %v2209_v3 = vsel %vm2188_vm3, %v2206_v47, %v2208_v39  ;;  %v2207_v45 = vsel %vm2188_vm3, %v2204_v37, %v2206_v47 }
 0x200   : > { %v3475_v46 = vadd.f32 %v3253_v44, %v3189_v55  ;;  %v1137_v48 = vpop.f32.mrb[13].mxu0 }
 0x201   : > { %v3476_v15 = vadd.f32 %v1137_v48, %v830_v24  ;;  %v3254_v8 = vpop.f32.mrb[14].mxu0 }
 0x202   : > { %v3477_v49 = vadd.f32 %v3254_v8, %v3190_v21  ;;  %v1140_v50 = vpop.f32.mrb[15].mxu0  ;;  %v2216_v53 = vrot.slane %v3475_v46, 7  ;;  %v2236_v21 = vsel %vm2188_vm3, 0.0, %v2189_v1 }
 0x203   : > { %v2212_v51 = vrot.slane %v3476_v15, 7  ;;  %v3478_v52 = vadd.f32 %v1140_v50, %v833_v0 }
 0x204   : > { %v2218_v54 = vrot.slane %v3477_v49, 7 }
 0x205   : > { %v2214_v56 = vrot.slane %v3478_v52, 7  ;;  %v2213_v57 = vsel %vm2188_vm3, %v2210_v40, %v2212_v51 }
 0x206   : > { %v2219_v43 = vsel %vm2188_vm3, %v2216_v53, %v2218_v54 }
 0x207   : > { %v2217_v36 = vsel %vm2188_vm3, %v2214_v56, %v2216_v53  ;;  %v2215_v58 = vsel %vm2188_vm3, %v2212_v51, %v2214_v56 }
 0x226   : > { %v3337_v59 = vpop.f32.mrb[16].mxu1 }
 0x227   : > { %v4709_v55 = vadd.f32 %v3337_v59, %v2193_v6  ;;  %v1591_v24 = vpop.f32.mrb[17].mxu1 }
 0x228   : > { %v4712_v60 = vadd.f32 %v2236_v21, %v1591_v24  ;;  %v3338_v0 = vpop.f32.mrb[18].mxu1 }
 0x229   : > { %v4714_v61 = vadd.f32 %v3338_v0, %v2195_v4  ;;  %v1594_v62 = vpop.f32.mrb[19].mxu1 }
 0x22a   : > { %v2238_v63 = vadd.f32 %v2191_v7, %v1594_v62 }
 0x22e   : > { %v3341_v2 = vpop.f32.mrb[20].mxu1 }
 0x22f   : > { %v4716_v5 = vadd.f32 %v3341_v2, %v2201_v28  ;;  %v1607_v9 = vpop.f32.mrb[21].mxu1 }
 0x230   : > { %v4718_v10 = vadd.f32 %v2197_v25, %v1607_v9  ;;  %v3342_v11 = vpop.f32.mrb[22].mxu1 }
 0x231   : > { %v4720_v13 = vadd.f32 %v3342_v11, %v2203_v26  ;;  %v1610_v6 = vpop.f32.mrb[23].mxu1 }
 0x232   : > { %v4722_v14 = vadd.f32 %v2199_v29, %v1610_v6 }
 0x236   : > { %v3345_v1 = vpop.f32.mrb[24].mxu1 }
 0x237   : > { %v2247_v16 = vadd.f32 %v3345_v1, %v2209_v3  ;;  %v3409_v17 = vpop.f32.mrb[24].mxu0  ;;  %v1623_v18 = vpop.f32.mrb[25].mxu1 }
 0x238   : > { %v2245_v4 = vadd.f32 %v2205_v41, %v1623_v18  ;;  %v1963_v20 = vpop.f32.mrb[25].mxu0  ;;  %v3346_v22 = vpop.f32.mrb[26].mxu1 }
 0x239   : > { %v4724_v7 = vadd.f32 %v3346_v22, %v2211_v42  ;;  %v3410_v23 = vpop.f32.mrb[26].mxu0  ;;  %v1626_v27 = vpop.f32.mrb[27].mxu1 }
 0x23a   : > { %v4726_v28 = vadd.f32 %v2207_v45, %v1626_v27  ;;  %v1966_v25 = vpop.f32.mrb[27].mxu0 }
 0x23e   : > { %v3349_v30 = vpop.f32.mrb[28].mxu1 }
 0x23f   : > { %v4728_v26 = vadd.f32 %v3349_v30, %v2217_v36  ;;  %v3413_v31 = vpop.f32.mrb[28].mxu0  ;;  %v1639_v29 = vpop.f32.mrb[29].mxu1 }
 0x240   : > { %v4730_v32 = vadd.f32 %v2213_v57, %v1639_v29  ;;  %v4732_v33 = vpop.f32.mrb[29].mxu0  ;;  %v3350_v34 = vpop.f32.mrb[30].mxu1 }
 0x241   : > { %v4734_v35 = vadd.f32 %v3350_v34, %v2219_v43  ;;  %v4736_v37 = vpop.f32.mrb[30].mxu0  ;;  %v1642_v38 = vpop.f32.mrb[31].mxu1 }
 0x242   : > { %v4738_v39 = vadd.f32 %v2215_v58, %v1642_v38  ;;  %v4740_v40 = vpop.f32.mrb[31].mxu0 }
 0x246   : > { %v3441_v47 = vpop.f32.mrb[32].mxu1 }
 0x247   : > { %v3433_v41 = vpop.f32.mrb[16].mxu0  ;;  %v3479_v42 = vadd.f32 %v3441_v47, %v3409_v17  ;;  %v2125_v44 = vpop.f32.mrb[33].mxu1 }
 0x248   : > { %v2093_v3 = vpop.f32.mrb[17].mxu0  ;;  %v4742_v45 = vadd.f32 %v2125_v44, %v1963_v20  ;;  %v3442_v46 = vpop.f32.mrb[34].mxu1  ;;  %v2273_v49 = vrot.slane %v3433_v41, 1 }
 0x249   : > { %v4744_v48 = vpop.f32.mrb[18].mxu0  ;;  %v4746_v15 = vadd.f32 %v3442_v46, %v3410_v23  ;;  %v2128_v8 = vpop.f32.mrb[35].mxu1  ;;  %v2289_v53 = vrot.slane %v3479_v42, 1  ;;  %v2270_v54 = vrot.slane %v2093_v3, 1 }
 0x24a   : > { %v2275_v50 = vrot.slane %v4744_v48, 1  ;;  %v2096_v51 = vpop.f32.mrb[19].mxu0  ;;  %v3482_v52 = vadd.f32 %v2128_v8, %v1966_v25  ;;  %v2285_v43 = vrot.slane %v4742_v45, 1 }
 0x24b   : > { %v2291_v56 = vrot.slane %v4746_v15, 1  ;;  %v2271_v57 = vrot.slane %v2096_v51, 1 }
 0x24c   : > { %v2276_v36 = vsel %vm2269_vm4, %v2273_v49, %v2275_v50  ;;  %v2287_v58 = vrot.slane %v3482_v52, 1 }
 0x24d   : > { %v2320_v59 = vadd.f32 %v2276_v36, %v4709_v55  ;;  %v2292_v24 = vsel %vm2269_vm4, %v2289_v53, %v2291_v56  ;;  %v2272_v21 = vsel %vm2269_vm4, %v2270_v54, %v2271_v57  ;;  %v2274_v0 = vsel %vm2269_vm4, %v2271_v57, %v2273_v49 }
 0x24e   : > { %v2328_v62 = vadd.f32 %v2292_v24, %v2247_v16  ;;  %v2318_v2 = vadd.f32 %v2272_v21, %v4712_v60  ;;  %v2319_v9 = vadd.f32 %v2274_v0, %v2238_v63  ;;  %v2288_v11 = vsel %vm2269_vm4, %v2285_v43, %v2287_v58  ;;  %v3445_v6 = vpop.f32.mrb[36].mxu1 }
 0x24f   : > { %v2340_v1 = vsel %vm606_vm0, %v2320_v59, 0.0  ;;  %v2290_v55 = vsel %vm2269_vm4, %v2287_v58, %v2289_v53  ;;  %v2326_v17 = vadd.f32 %v2288_v11, %v2245_v4  ;;  %v3437_v18 = vpop.f32.mrb[20].mxu0  ;;  %v4764_v20 = vadd.f32 %v3445_v6, %v3413_v31  ;;  %v2141_v22 = vpop.f32.mrb[37].mxu1 }
 0x250   : > { %2356 = vst [vmem:[%s4766_s10 + $0x10] sm:$0xff] %v2340_v1  ;;  %v4771_v60 = vsel %vm606_vm0, %v2328_v62, 0.0  ;;  %v2338_v63 = vsel %vm606_vm0, %v2318_v2, 0.0  ;;  %v2339_v16 = vsel %vm609_vm1, %v2319_v9, 0.0  ;;  %v2109_v4 = vpop.f32.mrb[21].mxu0  ;;  %v3446_v23 = vpop.f32.mrb[38].mxu1  ;;  %v2393_v34 = vmul.f32 %v2340_v1, %v2340_v1 }
 0x251   : > { %2364 = vst [vmem:[%s4766_s10 + $0x50] sm:$0xff] %v4771_v60  ;;  %2354 = vst [vmem:[%s4766_s10] sm:$0xff] %v2338_v63  ;;  %v2370_v27 = vadd.f32 %v2339_v16, %v2338_v63  ;;  %v2391_v25 = vmul.f32 %v2338_v63, %v2338_v63  ;;  %v2392_v30 = vmul.f32 %v2339_v16, %v2339_v16  ;;  %v3438_v31 = vpop.f32.mrb[22].mxu0  ;;  %v2144_v29 = vpop.f32.mrb[39].mxu1  ;;  %v4784_v47 = vsel %vm606_vm0, %v2326_v17, 0.0 }
 0x252   : > { %2355 = vst [vmem:[%s4766_s10 + $0x8] sm:$0xff] %v2339_v16  ;;  %v2327_v38 = vadd.f32 %v2290_v55, %v4726_v28  ;;  %v2112_v41 = vpop.f32.mrb[23].mxu0  ;;  %2362 = vst [vmem:[%s4766_s10 + $0x40] sm:$0xff] %v4784_v47  ;;  %v2281_v44 = vrot.slane %v3437_v18, 1  ;;  %v2277_v3 = vrot.slane %v2109_v4, 1  ;;  %v3484_v48 = vadd.f32 %v2141_v22, %v4732_v33 }
 0x253   : > { %v2407_v42 = vadd.f32 %v2392_v30, %v2391_v25  ;;  %v2371_v45 = vadd.f32 %v2370_v27, %v2340_v1  ;;  %v2283_v8 = vrot.slane %v3438_v31, 1  ;;  %v3485_v28 = vadd.f32 %v3446_v23, %v4736_v37 }
 0x254   : > { %v4790_v46 = vsel %vm609_vm1, %v2327_v38, 0.0  ;;  %v2297_v49 = vrot.slane %v4764_v20, 1  ;;  %v2278_v51 = vsel %vm2269_vm4, %v2275_v50, %v2277_v3  ;;  %v2279_v53 = vrot.slane %v2112_v41, 1 }
 0x255   : > { %2363 = vst [vmem:[%s4766_s10 + $0x48] sm:$0xff] %v4790_v46  ;;  %v2408_v52 = vadd.f32 %v2407_v42, %v2393_v34  ;;  %v2321_v54 = vadd.f32 %v2278_v51, %v4714_v61  ;;  %v2293_v57 = vrot.slane %v3484_v48, 1  ;;  %v2284_v36 = vsel %vm2269_vm4, %v2281_v44, %v2283_v8 }
 0x256   : > { %v2286_v33 = vsel %vm2269_vm4, %v2283_v8, %v2285_v43  ;;  %v2324_v58 = vadd.f32 %v2284_v36, %v4716_v5  ;;  %v2299_v59 = vrot.slane %v3485_v28, 1  ;;  %v2280_v24 = vsel %vm2269_vm4, %v2277_v3, %v2279_v53 }
 0x257   : > { %v2325_v37 = vadd.f32 %v2286_v33, %v4720_v13  ;;  %v2341_v50 = vsel %vm609_vm1, %v2321_v54, 0.0  ;;  %v2294_v61 = vsel %vm2269_vm4, %v2291_v56, %v2293_v57  ;;  %v2282_v21 = vsel %vm2269_vm4, %v2279_v53, %v2281_v44 }
 0x258   : > { %v2322_v43 = vadd.f32 %v2280_v24, %v4718_v10  ;;  %2357 = vst [vmem:[%s4766_s10 + $0x18] sm:$0xff] %v2341_v50  ;;  %v2372_v5 = vadd.f32 %v2371_v45, %v2341_v50  ;;  %v2394_v0 = vmul.f32 %v2341_v50, %v2341_v50  ;;  %v2329_v13 = vadd.f32 %v2294_v61, %v4724_v7 }
 0x259   : > { %v2344_v62 = vsel %vm606_vm0, %v2324_v58, 0.0  ;;  %v2345_v2 = vsel %vm609_vm1, %v2325_v37, 0.0  ;;  %v2300_v15 = vsel %vm2269_vm4, %v2297_v49, %v2299_v59  ;;  %v2317_v56 = vsel %vm2269_vm4, %v2299_v59, 0.0 }
 0x25a   : > { %2360 = vst [vmem:[%s4766_s10 + $0x30] sm:$0xff] %v2344_v62  ;;  %v2409_v9 = vadd.f32 %v2408_v52, %v2394_v0  ;;  %v4822_v10 = vsel %vm609_vm1, %v2329_v13, 0.0  ;;  %2361 = vst [vmem:[%s4766_s10 + $0x38] sm:$0xff] %v2345_v2  ;;  %v2332_v7 = vadd.f32 %v2300_v15, %v4728_v26  ;;  %v2333_v11 = vadd.f32 %v2317_v56, %v4734_v35 }
 0x25b   : > { %2365 = vst [vmem:[%s4766_s10 + $0x58] sm:$0xff] %v4822_v10  ;;  %v2323_v6 = vadd.f32 %v2282_v21, %v4722_v14  ;;  %v2342_v1 = vsel %vm606_vm0, %v2322_v43, 0.0  ;;  %v3486_v26 = vadd.f32 %v2144_v29, %v4740_v40  ;;  %v2397_v4 = vmul.f32 %v2344_v62, %v2344_v62 }
 0x25c   : > { %v4834_v55 = vsel %vm606_vm0, %v2332_v7, 0.0  ;;  %2358 = vst [vmem:[%s4766_s10 + $0x20] sm:$0xff] %v2342_v1  ;;  %v2373_v17 = vadd.f32 %v2372_v5, %v2342_v1  ;;  %v2395_v18 = vmul.f32 %v2342_v1, %v2342_v1  ;;  %v4840_v20 = vsel %vm609_vm1, %v2333_v11, 0.0 }
 0x25d   : > { %2368 = vst [vmem:[%s4766_s10 + $0x70] sm:$0xff] %v4834_v55  ;;  %v2343_v14 = vsel %vm609_vm1, %v2323_v6, 0.0  ;;  %2369 = vst [vmem:[%s4766_s10 + $0x78] sm:$0xff] %v4840_v20  ;;  %v2295_v16 = vrot.slane %v3486_v26, 1  ;;  %v2398_v27 = vmul.f32 %v2345_v2, %v2345_v2  ;;  %v2399_v41 = vmul.f32 %v4784_v47, %v4784_v47 }
 0x25e   : > { %2359 = vst [vmem:[%s4766_s10 + $0x28] sm:$0xff] %v2343_v14  ;;  %v2374_v35 = vadd.f32 %v2373_v17, %v2343_v14  ;;  %v2396_v22 = vmul.f32 %v2343_v14, %v2343_v14  ;;  %v2410_v63 = vadd.f32 %v2409_v9, %v2395_v18  ;;  %v2400_v3 = vmul.f32 %v4790_v46, %v4790_v46 }
 0x25f   : > { %v2296_v25 = vsel %vm2269_vm4, %v2293_v57, %v2295_v16  ;;  %v2298_v30 = vsel %vm2269_vm4, %v2295_v16, %v2297_v49 }
 0x260   : > { %v2375_v40 = vadd.f32 %v2374_v35, %v2344_v62  ;;  %v2411_v23 = vadd.f32 %v2410_v63, %v2396_v22  ;;  %v2330_v34 = vadd.f32 %v2296_v25, %v4730_v32  ;;  %v2331_v38 = vadd.f32 %v2298_v30, %v4738_v39 }
 0x262   : > { %v2376_v31 = vadd.f32 %v2375_v40, %v2345_v2  ;;  %v2412_v29 = vadd.f32 %v2411_v23, %v2397_v4  ;;  %v2350_v32 = vsel %vm606_vm0, %v2330_v34, 0.0  ;;  %v2351_v39 = vsel %vm609_vm1, %v2331_v38, 0.0 }
 0x263   : > { %2366 = vst [vmem:[%s4766_s10 + $0x60] sm:$0xff] %v2350_v32  ;;  %2367 = vst [vmem:[%s4766_s10 + $0x68] sm:$0xff] %v2351_v39 }
 0x264   : > { %v2377_v42 = vadd.f32 %v2376_v31, %v4784_v47  ;;  %v2413_v44 = vadd.f32 %v2412_v29, %v2398_v27 }
 0x266   : > { %v2414_v45 = vadd.f32 %v2413_v44, %v2399_v41  ;;  %v2378_v48 = vadd.f32 %v2377_v42, %v4790_v46 }
 0x267   : > { %3931 = shalt.err (!%p3928_p8)
}
 0x268   : > { %s3932_s22 = scalar_lea.hbm %s4858_s15, 2048  ;;  %s3936_s26 = scalar_lea.hbm %s4971_s6, 4096 }
 0x269   : > { %p3933_p7 = scmp.ne.s32.totalorder %s4858_s15, %s3932_s22  ;;  %p3937_p12 = scmp.lt.u32.totalorder %s4858_s15, %s4971_s6 }
 0x26a   : > { %p3938_p2 = scmp.lt.u32.totalorder %s3936_s26, %s3932_s22  ;;  %p3940_p11 = scmp.lt.u32.totalorder %s3932_s22, %s4858_s15 }
 0x26b   : > { %p3934_p4 = pnand %p3933_p7, %p5033_p13 }
 0x26c   : > { %p3939_p9 = por %p3938_p2, %p3937_p12 }
 0x26d   : > { %p3935_p10 = pneg %p3934_p4 }
 0x26e   : > { %p3941_p1 = por %p3940_p11, %p3939_p9 }
 0x270   : > { %p3942_p5 = pnand %p3941_p1, %p3935_p10 }
 0x272   : > { %3945 = shalt.err (!%p3942_p5)
}
 0x273   : > { %s4056_s20 = smov 128   ;;  %s4057_s1 = smov 8   ;;  %v2401_v12 = vmul.f32 %v4771_v60, %v4771_v60  ;;  %v2379_v19 = vadd.f32 %v2378_v48, %v4771_v60  ;;  %v2415_v47 = vadd.f32 %v2414_v45, %v2400_v3  ;;  %v2402_v46 = vmul.f32 %v4822_v10, %v4822_v10 }
 0x274   : > { %3577 = dma.vmem_to_hbm [thread:$0]  (%p5033_p13), %s4860_s18, 2048, %s4858_s15, %s2433_s12, %s4056_s20, %s4056_s20, %s4057_s1   ;;  %v2403_v51 = vmul.f32 %v2350_v32, %v2350_v32  ;;  %v2404_v54 = vmul.f32 %v2351_v39, %v2351_v39  ;;  %v2405_v36 = vmul.f32 %v4834_v55, %v4834_v55  ;;  %v2406_v58 = vmul.f32 %v4840_v20, %v4840_v20 }
 0x275   : > { %v2380_v8 = vadd.f32 %v2379_v19, %v4822_v10  ;;  %v2416_v28 = vadd.f32 %v2415_v47, %v2401_v12  ;;  %s2690_s29 = sshll.u32 %s4389_s3, 3  ;;  %s2967_s9 = sshll.u32 %s4036_s27, 7  ;;  %vm2429_vm5 = vcmask 1041408  }
 0x276   : > { %s477_s30 = scalar_lea.vmem [#allocation14], %s2690_s29  ;;  %s5034_s24 = sld [smem:[#allocation31_spill]] }
 0x277   : > { %v2381_v49 = vadd.f32 %v2380_v8, %v2350_v32  ;;  %v2417_v52 = vadd.f32 %v2416_v28, %v2402_v46  ;;  %s2471_s10 = sshll.u32 %s477_s30, 4  ;;  %s2438_s27 = scalar_lea.sflag [#allocation15], %s4389_s3  ;;  %s4918_s10 = int_to_ptr.vmem [resolvable:$true] %s2471_s10 }
 0x278   : > { %s3946_s12 = scalar_lea.vmem %s4918_s10, 128  ;;  %s4058_s19 = smov [#allocation14]  }
 0x279   : > { %v2382_v53 = vadd.f32 %v2381_v49, %v2351_v39  ;;  %v2418_v57 = vadd.f32 %v2417_v52, %v2403_v51  ;;  %p3947_p0 = scmp.ne.s32.totalorder %s4918_s10, %s3946_s12  ;;  %s3950_s8 = sshll.u32 %s4058_s19, 4  ;;  %s3951_s8 = int_to_ptr.vmem [resolvable:$false] %s3950_s8 }
 0x27a   : > { %s3952_s23 = scalar_lea.vmem %s3951_s8, 256  ;;  %p3953_p8 = scmp.lt.s32.totalorder %s4918_s10, %s3951_s8 }
 0x27b   : > { %v2383_v33 = vadd.f32 %v2382_v53, %v4834_v55  ;;  %v2419_v60 = vadd.f32 %v2418_v57, %v2404_v54  ;;  %p3948_p3 = pnand %p3947_p0, %p5033_p13  ;;  %p3954_p7 = scmp.lt.s32.totalorder %s3952_s23, %s3946_s12 }
 0x27c   : > { %s5035_s14 = smov %s5034_s24  ;;  %s4916_s15 = scalar_lea.hbm %s5034_s24, %s2967_s9 }
 0x27d   : > { %v2384_v37 = vadd.f32 %v2383_v33, %v4840_v20  ;;  %v2420_v59 = vadd.f32 %v2419_v60, %v2405_v36  ;;  %p3949_p6 = pneg %p3948_p3  ;;  %p3955_p4 = por %p3954_p7, %p3953_p8 }
 0x27f   : > { %v2385_v24 = vrot.slane %v2384_v37, 4  ;;  %v2421_v50 = vadd.f32 %v2420_v59, %v2406_v58  ;;  %p3956_p10 = pnand %p3955_p4, %p3949_p6 }
 0x281   : > { %v2386_v61 = vadd.f32 %v2385_v24, %v2384_v37  ;;  %v2422_v21 = vrot.slane %v2421_v50, 4 }
 0x283   : > { %v2387_v43 = vrot.slane %v2386_v61, 2  ;;  %v2423_v5 = vadd.f32 %v2422_v21, %v2421_v50 }
 0x285   : > { %v2388_v0 = vadd.f32 %v2387_v43, %v2386_v61  ;;  %v2424_v13 = vrot.slane %v2423_v5, 2 }
 0x287   : > { %v2389_v62 = vrot.slane %v2388_v0, 1  ;;  %v2425_v2 = vadd.f32 %v2424_v13, %v2423_v5 }
 0x289   : > { %v2426_v15 = vrot.slane %v2425_v2, 1  ;;  %v2390_v56 = vadd.f32 %v2389_v62, %v2388_v0 }
 0x28b   : > { %v2427_v9 = vadd.f32 %v2426_v15, %v2425_v2 }
 0x28d   : > { %v2428_v10 = vsel %vm2188_vm3, %v2390_v56, %v2427_v9 }
 0x28e   : > { %v2430_v7 = vsel %vm2429_vm5, %v2428_v10, 0.0 }
 0x28f   : > { %2431 = vst [vmem:[%s477_s30] sm:$0xff] %v2430_v7 }
 0x290   : > { %3959 = shalt.err (!%p3956_p10)
}
 0x291   : > { %s3960_s3 = scalar_lea.hbm %s4916_s15, 128  ;;  %s3964_s16 = scalar_lea.hbm %s5035_s14, 256 }
 0x292   : > { %p3961_p12 = scmp.ne.s32.totalorder %s4916_s15, %s3960_s3  ;;  %p3965_p11 = scmp.lt.u32.totalorder %s4916_s15, %s5035_s14 }
 0x293   : > { %p3966_p1 = scmp.lt.u32.totalorder %s3964_s16, %s3960_s3  ;;  %p3968_p0 = scmp.lt.u32.totalorder %s3960_s3, %s4916_s15 }
 0x294   : > { %p3962_p2 = pnand %p3961_p12, %p5033_p13 }
 0x295   : > { %p3967_p5 = por %p3966_p1, %p3965_p11 }
 0x296   : > { %p3963_p9 = pneg %p3962_p2 }
 0x297   : > { %p3969_p3 = por %p3968_p0, %p3967_p5 }
 0x299   : > { %p3970_p6 = pnand %p3969_p3, %p3963_p9 }
 0x29b   : > { %3973 = shalt.err (!%p3970_p6)
}
 0x29c   : > { %3578 = dma.vmem_to_hbm [thread:$0]  (%p5033_p13), %s4918_s10, 128, %s4916_s15, %s2438_s27  }
 0x29d PF: > { %s5036_s21 = sld [smem:[#allocation22_spill]]  ;;  %s5037_s28 = sld [smem:[#allocation26_spill]] }
 0x29e   : > { %s5038_s20 = sld [smem:[#allocation25_spill]] }
 0x2a3   : > { %s2483_s1 = sand.u32 1, %s5036_s21   ;;  %p5039_p8 = scmp.ne.s32.totalorder %s5037_s28, 0 }
 0x2a4   : > { %p5040_p7 = scmp.ge.s32.totalorder %s5038_s20, 2  ;;  %s2484_s29 = scalar_lea.sflag [#allocation4], %s2483_s1 }
 0x2a6   : > { %p3602_p4 = pnand %p5040_p7, %p5039_p8 }
 0x2a8   : > { %4015 = dma.done.wait (!%p3602_p4), %s2484_s29, 2048  }
 0x2a9   : > { %4017 = vsyncadd (!%p3602_p4), %s2484_s29, 4294965248  ;;  %s2493_s9 = scalar_lea.sflag [#allocation15], %s2483_s1 }
 0x2aa   : > { %4019 = dma.done.wait (!%p3602_p4), %s2493_s9, 128  }
 0x2ab   : > { %4021 = vsyncadd (!%p3602_p4), %s2493_s9, 4294967168  ;;  %s32_s29 = sadd.s32 1, %s5038_s20   ;;  %s5041_s11 = sld [smem:[#allocation23_spill]] }
 0x2ac   : > { %p29_p10 = scmp.ge.s32.totalorder %s32_s29, 4   ;;  %s5042_s26 = sld [smem:[#allocation28_spill]] }
 0x2ad   : > { %s5043_s27 = sld [smem:[#allocation24_spill]]  ;;  %s5044_s28 = sld [smem:[#allocation27_spill]] }
 0x2ae   : > { %s5045_s24 = smov %s4028_s25  ;;  %31 = sbr.rel (!%p29_p10) target bundleno = 16 (0x10), region = 150 }
 0x2b1   : > { %s5046_s25 = smov %s5041_s11 }
 0x2b5   :  { %2498 = vsyncpa [#allocation3], 1 }
 0x2b6   :  { %2500 = vsyncpa [#allocation3 + $0x1], 1 }
 0x2b7   :  { %2501 = vsyncpa [#allocation6], 1 }
 0x2b8   :  { %2503 = vsyncpa [#allocation6 + $0x1], 1 }
 0x2b9   :  { %2504 = vsyncpa [#allocation9], 1 }
 0x2ba   :  { %2505 = vsyncpa [#allocation12], 1 }
 0x2bb   :  { %2506 = vsyncpa [#allocation4], 1 }
 0x2bc   :  { %2508 = vsyncpa [#allocation4 + $0x1], 1 }
 0x2bd   :  { %2509 = vsyncpa [#allocation15], 1 }
 0x2be   :  { %2511 = vsyncpa [#allocation15 + $0x1], 1 }

// kernel: down_forward.3
= control target key start
LH: loop header
LB: loop body
LE: loop exit
PB: predicated region body
PF: predicated region fallthrough
CT: control target
= control target key end

     0   :  { %s4513_s0 = inlined_call_operand.hbm [shape: bf16[2,8,32,256], index: 0, kind: input, shape index: {}, may-alias: {0,1,2}]   ;;  %s4514_s1 = inlined_call_operand.hbm [shape: bf16[2,8,32,256], index: 1, kind: input, shape index: {}, may-alias: {0,1,2}]   ;;  %s4515_s2 = inlined_call_operand.hbm [shape: bf16[2,8,32,256], index: 2, kind: input, shape index: {}, may-alias: {0,1,2}]   ;;  %s4516_s3 = inlined_call_operand.hbm [shape: bf16[9,128,128], index: 3, kind: input, shape index: {}]   ;;  %s4517_s4 = inlined_call_operand.hbm [shape: bf16[2,8,16,128], index: 4, kind: output, shape index: {0}]   ;;  %s4518_s5 = inlined_call_operand.hbm [shape: f32[2,1,8,128], index: 5, kind: output, shape index: {1}]  }
   0x1   :  { %4540 = sst [smem:[#allocation25_spill]] %s4514_s1 }
   0x2   :  { %11 = vsyncpa [#allocation3], 0 }
   0x3   :  { %13 = vsyncpa [#allocation3 + $0x1], 0 }
   0x4   :  { %14 = vsyncpa [#allocation6], 0 }
   0x5   :  { %16 = vsyncpa [#allocation6 + $0x1], 0 }
   0x6   :  { %17 = vsyncpa [#allocation9], 0 }
   0x7   :  { %18 = vsyncpa [#allocation4], 0 }
   0x8   :  { %20 = vsyncpa [#allocation4 + $0x1], 0 }
   0x9   :  { %21 = vsyncpa [#allocation12], 0 }
   0xa   :  { %23 = vsyncpa [#allocation12 + $0x1], 0  ;;  %s3862_s18 = smov 0   ;;  %s3864_s19 = smov 0  }
   0xb   :  { %s3866_s20 = smov 0   ;;  %s3868_s21 = smov 0  }
   0xc   :  { %s3870_s22 = smov 0   ;;  %s3872_s23 = smov 0  }
   0xd LB: > { %4541 = sst [smem:[#allocation18_spill]] %s3797_s18  ;;  %s41_s24 = sadd.s32 1, %s3813_s22  ;;  %s3817_s23 = sphi %s3872_s23, %s29_s23   ;;  %s3813_s22 = sphi %s3870_s22, %s4575_s22   ;;  %s3809_s21 = sphi %s3868_s21, %s4574_s21   ;;  %s3805_s20 = sphi %s3866_s20, %s4573_s20   ;;  %s3801_s19 = sphi %s3864_s19, %s4577_s19   ;;  %s3797_s18 = sphi %s3862_s18, %s4576_s18  }
   0xe   : > { %4542 = sst [smem:[#allocation19_spill]] %s3805_s20  ;;  %s58_s25 = sadd.s32 1, %s3805_s20 }
   0xf   : > { %4543 = sst [smem:[#allocation20_spill]] %s3813_s22  ;;  %p43_p0 = scmp.ge.s32.totalorder %s41_s24, 2 }
  0x10   : > { %4544 = sst [smem:[#allocation21_spill]] %s3817_s23  ;;  %p4519_p1 = scmp.ne.s32.totalorder %s3805_s20, %s3801_s19 }
  0x11   : > { %p66_p2 = scmp.eq.s32.totalorder %s3817_s23, 0  ;;  %s4579_s24 = smov (%p43_p0, %s41_s24), 0 }
  0x12   : > { %4545 = sst [smem:[#allocation22_spill]] %s4579_s24  ;;  %p3446_p5 = scmp.lt.s32.totalorder %s3817_s23, 2 }
  0x13   : > { %p67_p4 = por %p66_p2, %p4519_p1  ;;  %s53_s26 = ssub.s32 %s3813_s22, %s4579_s24 }
  0x14   : > { %s3907_s27 = sand.u32 1, %s3805_s20   ;;  %p56_p6 = scmp.eq.s32.totalorder %s53_s26, 0 }
  0x15   : > { %s3910_s28 = sshll.u32 %s3813_s22, 12  ;;  %p3912_p7 = pnand %p3446_p5, %p67_p4 }
  0x16   : > { %s3917_s30 = scalar_select %p56_p6, %s3805_s20, %s58_s25  }
  0x17   : > { %s4546_s29 = scalar_select %p3912_p7, 1, 0 }
  0x18   : > { %4547 = sst [smem:[#allocation23_spill]] %s3917_s30  ;;  %s276_s6 = sand.u32 1, %s3817_s23  }
  0x19   : > { %s2679_s7 = sshll.u32 %s3907_s27, 8  ;;  %s4548_s1 = sld [smem:[#allocation25_spill]] }
  0x1a   : > { %s280_s11 = scalar_lea.vmem [#allocation5], %s2679_s7  ;;  %s3929_s13 = scalar_lea.sflag [#allocation6], %s276_s6 }
  0x1b   : > { %s290_s12 = sshll.u32 %s280_s11, 4  ;;  %p3935_p9 = pneg %p3912_p7  ;;  %s3927_s12 = int_to_ptr.vmem [resolvable:$true] %s290_s12 }
  0x1d   : > { %s4549_s15 = scalar_select %p3935_p9, 1, 0 }
  0x1f   : > { %s3925_s10 = scalar_lea.hbm %s4548_s1, %s3910_s28  ;;  %s3582_s25 = scalar_lea.hbm %s4548_s1, 8192 }
  0x20   : > { %s3577_s14 = scalar_lea.hbm %s3925_s10, 4096  ;;  %p3583_p12 = scmp.lt.u32.totalorder %s3925_s10, %s4548_s1 }
  0x21   : > { %p3578_p8 = scmp.ne.s32.totalorder %s3925_s10, %s3577_s14  ;;  %p3584_p13 = scmp.lt.u32.totalorder %s3582_s25, %s3577_s14 }
  0x22   : > { %p3586_p2 = scmp.lt.u32.totalorder %s3577_s14, %s3925_s10 }
  0x23   : > { %p3580_p10 = pnand %p3935_p9, %p3578_p8  ;;  %p3585_p0 = por %p3584_p13, %p3583_p12 }
  0x25   : > { %p3581_p11 = pneg %p3580_p10  ;;  %p3587_p4 = por %p3586_p2, %p3585_p0 }
  0x27   : > { %p3588_p5 = pnand %p3587_p4, %p3581_p11 }
  0x29   : > { %3591 = shalt.err (!%p3588_p5)
}
  0x2a   : > { %s3592_s6 = scalar_lea.vmem %s3927_s12, 4096  ;;  %s3819_s8 = smov [#allocation5]  }
  0x2b   : > { %p3593_p6 = scmp.ne.s32.totalorder %s3927_s12, %s3592_s6  ;;  %s3597_s9 = sshll.u32 %s3819_s8, 4  ;;  %s3598_s9 = int_to_ptr.vmem [resolvable:$false] %s3597_s9 }
  0x2c   : > { %s3599_s11 = scalar_lea.vmem %s3598_s9, 8192  ;;  %p3600_p3 = scmp.lt.s32.totalorder %s3927_s12, %s3598_s9 }
  0x2d   : > { %p3595_p8 = pnand %p3593_p6, %p3935_p9  ;;  %p3601_p1 = scmp.lt.s32.totalorder %s3599_s11, %s3592_s6 }
  0x2f   : > { %p3596_p10 = pneg %p3595_p8  ;;  %p3602_p12 = por %p3601_p1, %p3600_p3 }
  0x31   : > { %p3603_p13 = pnand %p3602_p12, %p3596_p10 }
  0x33   : > { %3606 = shalt.err (!%p3603_p13)
}
  0x34   : > { %s4520_s14 = smov 128   ;;  %s4522_s16 = smov 8  }
  0x35   : > { %3434 = dma.hbm_to_vmem [thread:$0]  (!%p3912_p7), %s3925_s10, 4096, %s3927_s12, %s3929_s13, %s4520_s14, %s4520_s14, %s4522_s16  }
  0x36   : > { %s3963_s17 = sadd.s32 4294967295, %s3817_s23   ;;  %s2672_s25 = sadd.s32 4294967294, %s3817_s23  }
  0x37   : > { %p71_p1 = scmp.ne.s32.totalorder %s3801_s19, %s3797_s18  ;;  %p4529_p3 = scmp.eq.s32.totalorder %s3963_s17, 0 }
  0x38   : > { %p182_p11 = scmp.eq.s32.totalorder %s3963_s17, 1  ;;  %p188_p0 = scmp.eq.s32.totalorder %s2672_s25, 1 }
  0x39   : > { %p2673_p2 = scmp.ge.s32.totalorder %s3817_s23, 1  ;;  %p3973_p4 = por %p4529_p3, %p71_p1 }
  0x3a   : > { %p4551_p5 = scmp.ne.s32.totalorder %s3805_s20, %s3801_s19  ;;  %p3984_p8 = por %p188_p0, %p71_p1 }
  0x3b   : > { %s4550_s26 = scalar_select %p3973_p4, 1, 0 }
  0x3c   : > { %p3980_p6 = por %p182_p11, %p4551_p5  ;;  %p223_p10 = scmp.lt.s32.totalorder %s3817_s23, 3 }
  0x3d   : > { %s4553_s12 = scalar_select %p3984_p8, 1, 0 }
  0x3e   : > { %s4552_s10 = scalar_select %p3980_p6, 1, 0 }
  0x3f   : > { %4554 = sst [smem:[#allocation24_spill]] %s4553_s12  ;;  %p3989_p12 = pnand %p2673_p2, %p223_p10 }
  0x40   : > { %s3822_s6 = smov [#allocation8]   ;;  %s4537_s9 = sshll.u32 %s3907_s27, 5 }
  0x41   : > { %s4555_s7 = scalar_select %p3989_p12, 1, 0 }
  0x42   : > { %s235_s8 = sshll.u32 %s3822_s6, 4  ;;  %p3424_p13 = pneg %p3989_p12  ;;  %s3993_s8 = int_to_ptr.vmem [resolvable:$true] %s235_s8 }
  0x43   : > { %s4008_s16 = scalar_lea.hbm %s4513_s0, %s3910_s28  ;;  %s253_s1 = scalar_lea.vmem [#allocation2], %s4537_s9 }
  0x44   : > { %p4000_p11 = pnand %p3424_p13, %p4529_p3  ;;  %s266_s24 = sshll.u32 %s253_s1, 4  ;;  %s4012_s24 = int_to_ptr.vmem [resolvable:$true] %s266_s24 }
  0x45   : > { %s3607_s30 = scalar_lea.hbm %s4516_s3, 9216 }
  0x46   : > { %p3608_p1 = scmp.ne.s32.totalorder %s4516_s3, %s3607_s30  ;;  %p3609_p0 = pneg %p4000_p11 }
  0x47   : > { %p3614_p10 = scmp.lt.u32.totalorder %s3607_s30, %s4516_s3 }
  0x48   : > { %p3610_p2 = pnand %p3609_p0, %p3608_p1 }
  0x4a   : > { %p3611_p5 = pneg %p3610_p2 }
  0x4c   : > { %p3616_p13 = pnand %p3614_p10, %p3611_p5 }
  0x4e   : > { %3619 = shalt.err (!%p3616_p13)
}
  0x4f   : > { %s3620_s1 = scalar_lea.vmem %s3993_s8, 9216  ;;  %p3628_p4 = scmp.lt.s32.totalorder %s3993_s8, %s3993_s8 }
  0x50   : > { %p3621_p3 = scmp.ne.s32.totalorder %s3993_s8, %s3620_s1  ;;  %p3629_p12 = scmp.lt.s32.totalorder %s3620_s1, %s3620_s1 }
  0x52   : > { %p3623_p8 = pnand %p3621_p3, %p3609_p0  ;;  %p3630_p7 = por %p3629_p12, %p3628_p4 }
  0x54   : > { %p3624_p6 = pneg %p3623_p8 }
  0x56   : > { %p3631_p9 = pnand %p3630_p7, %p3624_p6 }
  0x58   : > { %3634 = shalt.err (!%p3631_p9)
}
  0x59   : > { %s3823_s20 = smov 64   ;;  %s3824_s22 = smov 4  }
  0x5a   : > { %3427 = dma.hbm_to_vmem [thread:$0]  (!%p4000_p11), %s4516_s3, 9216, %s3993_s8, [#allocation9], %s3823_s20, %s3823_s20, %s3824_s22  }
  0x5b   : > { %s250_s6 = scalar_lea.sflag [#allocation3], %s3907_s27  ;;  %s3635_s14 = scalar_lea.hbm %s4008_s16, 512 }
  0x5c   : > { %p3636_p3 = scmp.ne.s32.totalorder %s4008_s16, %s3635_s14  ;;  %p4557_p7 = scmp.ne.s32.totalorder %s4549_s15, 0 }
  0x5d   : > { %s3640_s9 = scalar_lea.hbm %s4513_s0, 8192  ;;  %p3641_p6 = scmp.lt.u32.totalorder %s4008_s16, %s4513_s0 }
  0x5e   : > { %p3638_p9 = pnand %p3636_p3, %p4557_p7  ;;  %p3642_p8 = scmp.lt.u32.totalorder %s3640_s9, %s3635_s14 }
  0x5f   : > { %p3644_p1 = scmp.lt.u32.totalorder %s3635_s14, %s4008_s16 }
  0x60   : > { %p3639_p4 = pneg %p3638_p9  ;;  %p3643_p12 = por %p3642_p8, %p3641_p6 }
  0x62   : > { %p3645_p0 = por %p3644_p1, %p3643_p12 }
  0x64   : > { %p3646_p2 = pnand %p3645_p0, %p3639_p4 }
  0x66   : > { %3649 = shalt.err (!%p3646_p2)
}
  0x67   : > { %s3650_s8 = scalar_lea.vmem %s4012_s24, 512  ;;  %s3825_s11 = smov [#allocation2]  }
  0x68   : > { %p3651_p11 = scmp.ne.s32.totalorder %s4012_s24, %s3650_s8  ;;  %s3655_s20 = sshll.u32 %s3825_s11, 4  ;;  %s3656_s20 = int_to_ptr.vmem [resolvable:$false] %s3655_s20 }
  0x69   : > { %s3657_s18 = scalar_lea.vmem %s3656_s20, 1024  ;;  %p3658_p13 = scmp.lt.s32.totalorder %s4012_s24, %s3656_s20 }
  0x6a   : > { %p3653_p5 = pnand %p3651_p11, %p4557_p7  ;;  %p3659_p3 = scmp.lt.s32.totalorder %s3657_s18, %s3650_s8 }
  0x6c   : > { %p3654_p10 = pneg %p3653_p5  ;;  %p3660_p9 = por %p3659_p3, %p3658_p13 }
  0x6e   : > { %p3661_p6 = pnand %p3660_p9, %p3654_p10 }
  0x70   : > { %3664 = shalt.err (!%p3661_p6)
}
  0x71   : > { %p4558_p4 = scmp.ne.s32.totalorder %s4546_s29, 0  ;;  %s4559_s12 = smov 8  }
  0x72   : > { %s4560_s9 = smov 128   ;;  %s2800_s22 = sadd.s32 3584, %s3910_s28 }
  0x73   : > { %3431 = dma.hbm_to_vmem [thread:$0]  (!%p4558_p4), %s4008_s16, 512, %s4012_s24, %s250_s6, %s4560_s9, %s4560_s9, %s4559_s12  }
  0x74   : > { %s4561_s23 = sshll.u32 %s3907_s27, 5  ;;  %s4068_s8 = scalar_lea.hbm %s4515_s2, %s2800_s22 }
  0x75   : > { %s304_s30 = scalar_lea.vmem [#allocation7], %s4561_s23  ;;  %s3665_s11 = scalar_lea.hbm %s4068_s8, 512 }
  0x76   : > { %s317_s14 = sshll.u32 %s304_s30, 4  ;;  %p3666_p8 = scmp.ne.s32.totalorder %s4068_s8, %s3665_s11  ;;  %s4070_s14 = int_to_ptr.vmem [resolvable:$true] %s317_s14 }
  0x77   : > { %s3670_s28 = scalar_lea.hbm %s4515_s2, 8192  ;;  %p3671_p0 = scmp.lt.u32.totalorder %s4068_s8, %s4515_s2 }
  0x78   : > { %p3668_p12 = pnand %p3666_p8, %p4557_p7  ;;  %p3672_p2 = scmp.lt.u32.totalorder %s3670_s28, %s3665_s11 }
  0x79   : > { %p3674_p5 = scmp.lt.u32.totalorder %s3665_s11, %s4068_s8 }
  0x7a   : > { %p3669_p1 = pneg %p3668_p12  ;;  %p3673_p11 = por %p3672_p2, %p3671_p0 }
  0x7c   : > { %p3675_p10 = por %p3674_p5, %p3673_p11 }
  0x7e   : > { %p3676_p13 = pnand %p3675_p10, %p3669_p1 }
  0x80   : > { %3679 = shalt.err (!%p3676_p13)
}
  0x81   : > { %s3680_s20 = scalar_lea.vmem %s4070_s14, 512  ;;  %s3826_s18 = smov [#allocation7]  }
  0x82   : > { %p3681_p3 = scmp.ne.s32.totalorder %s4070_s14, %s3680_s20  ;;  %s3685_s22 = sshll.u32 %s3826_s18, 4  ;;  %s3686_s22 = int_to_ptr.vmem [resolvable:$false] %s3685_s22 }
  0x83   : > { %s3687_s23 = scalar_lea.vmem %s3686_s22, 1024  ;;  %p3688_p8 = scmp.lt.s32.totalorder %s4070_s14, %s3686_s22 }
  0x84   : > { %p3683_p9 = pnand %p3681_p3, %p4557_p7  ;;  %p3689_p12 = scmp.lt.s32.totalorder %s3687_s23, %s3680_s20 }
  0x86   : > { %p3684_p6 = pneg %p3683_p9  ;;  %p3690_p0 = por %p3689_p12, %p3688_p8 }
  0x88   : > { %p3691_p2 = pnand %p3690_p0, %p3684_p6 }
  0x8a   : > { %3694 = shalt.err (!%p3691_p2)
}
  0x8b   : > { %3437 = dma.hbm_to_vmem [thread:$0]  (!%p4558_p4), %s4068_s8, 512, %s4070_s14, %s3929_s13, %s4560_s9, %s4560_s9, %s4559_s12  }
  0x8c   : > { %p4562_p7 = scmp.ne.s32.totalorder %s4555_s7, 0 }
  0x8d   : > { %s4100_s15 = sand.u32 (!%p4562_p7), 1, %s3801_s19   ;;  %p4563_p1 = scmp.ne.s32.totalorder (!%p4562_p7), %s4550_s26, 0 }
  0x8e   : > { %329 = sbr.rel (%p4562_p7) target bundleno = 618 (0x26a), region = 36  ;;  %s332_s30 = scalar_lea.sflag (!%p4562_p7), [#allocation3], %s4100_s15 }
  0x95   : > { %3776 = dma.done.wait (%p4563_p1), %s332_s30, 512  }
  0x96   : > { %3778 = vsyncadd (%p4563_p1), %s332_s30, 4294966784  ;;  %s340_s29 = sand.u32 1, %s3963_s17   ;;  %s2687_s25 = sshll.u32 %s4100_s15, 8 }
  0x97   : > { %s341_s13 = scalar_lea.sflag [#allocation6], %s340_s29  ;;  %s4109_s12 = scalar_lea.vmem [#allocation5], %s2687_s25 }
  0x98   : > { %3780 = dma.done.wait (%p4563_p1), %s341_s13, 4608  }
  0x99   : > { %3782 = vsyncadd (%p4563_p1), %s341_s13, 4294962688  ;;  %p4564_p4 = scmp.eq.s32.totalorder %s3963_s17, 0 }
  0x9b   : > { %3784 = dma.done.wait (%p4564_p4), [#allocation9], 9216   ;;  %p4565_p11 = pmov %p4564_p4 }
  0x9c   : > { %v3827_v0 = vmov 0   ;;  %v3505_v2 = vld [vmem:[#allocation8 + $0xc0] sm:$0xff]   ;;  %v3507_v4 = vld [vmem:[#allocation8 + $0xc8] sm:$0xff]   ;;  %v3509_v6 = vld [vmem:[#allocation8 + $0xd0] sm:$0xff]   ;;  %vm2139_vm0 = vcmask 1040384   ;;  %vm2220_vm1 = vcmask 1046528  }
  0x9d   : > { %3786 = vsyncadd (%p4565_p11), [#allocation9], 4294958080  ;;  %v4119_v1 = vcombine.low %v3827_v0, %v3827_v0  ;;  %v3506_v3 = vld [vmem:[#allocation8] sm:$0xff]   ;;  %3010 = vmatprep.subr.bf16.mxu1 %v3505_v2  ;;  %v3508_v5 = vld [vmem:[#allocation8 + $0x8] sm:$0xff]   ;;  %s2690_s17 = sshll.u32 %s4100_s15, 6  ;;  %s2817_s7 = sshll.u32 %s3809_s21, 10 }
  0x9e   : > { %3042 = vmatprep.subr.bf16.mxu0 %v3506_v3  ;;  %3011 = vmatpush3.bf16.msra.mxu1 %v3505_v2  ;;  %v3510_v7 = vld [vmem:[#allocation8 + $0x10] sm:$0xff]   ;;  %v3511_v8 = vld [vmem:[#allocation8 + $0xd8] sm:$0xff]   ;;  %v3513_v10 = vld [vmem:[#allocation8 + $0xe0] sm:$0xff]   ;;  %s4332_s26 = scalar_lea.vmem [#allocation10], %s2690_s17  ;;  %s4411_s8 = scalar_lea.hbm %s4517_s4, %s2817_s7 }
  0x9f   : > { %3058 = vmatprep.mubr.bf16.mxu0 %v4119_v1  ;;  %3043 = vmatpush3.bf16.msra.mxu0 %v3506_v3  ;;  %v3512_v9 = vld [vmem:[#allocation8 + $0x18] sm:$0xff]   ;;  %v3514_v11 = vld [vmem:[#allocation8 + $0x20] sm:$0xff]   ;;  %v3515_v12 = vld [vmem:[#allocation8 + $0xe8] sm:$0xff]   ;;  %s2478_s9 = sshll.u32 %s4332_s26, 4  ;;  %s2457_s11 = scalar_lea.sflag [#allocation4], %s4100_s15  ;;  %s4413_s9 = int_to_ptr.vmem [resolvable:$true] %s2478_s9 }
  0xa0   : > { %3012 = vmatprep.subr.bf16.mxu1 %v3507_v4  ;;  %3044 = vmatprep.subr.bf16.mxu0 %v3508_v5  ;;  %v3516_v13 = vld [vmem:[#allocation8 + $0x28] sm:$0xff]   ;;  %v424_v14 = vld [vmem:[%s4109_s12] sm:$0xff]  ;;  %v426_v16 = vld [vmem:[%s4109_s12 + $0x10] sm:$0xff]  ;;  %s3695_s24 = scalar_lea.vmem %s4413_s9, 1024  ;;  %p4566_p10 = scmp.ne.s32.totalorder %s4552_s10, 0 }
  0xa1   : > { %v425_v15 = vld [vmem:[%s4109_s12 + $0x8] sm:$0xff]  ;;  %v427_v17 = vld [vmem:[%s4109_s12 + $0x18] sm:$0xff]  ;;  %v456_v18 = vmax.bf16 %v426_v16, %v424_v14  ;;  %v428_v19 = vld [vmem:[%s4109_s12 + $0x20] sm:$0xff]  ;;  %p3696_p5 = scmp.ne.s32.totalorder %s4413_s9, %s3695_s24  ;;  %s3828_s27 = smov [#allocation10]  }
  0xa2   : > { %3013 = vmatpush3.bf16.msra.mxu1 %v3507_v4  ;;  %v429_v20 = vld [vmem:[%s4109_s12 + $0x28] sm:$0xff]  ;;  %v457_v21 = vmax.bf16 %v427_v17, %v425_v15  ;;  %v430_v22 = vld [vmem:[%s4109_s12 + $0x30] sm:$0xff]  ;;  %v431_v23 = vld [vmem:[%s4109_s12 + $0x38] sm:$0xff]  ;;  %s3699_s28 = sshll.u32 %s3828_s27, 4  ;;  %s3700_s28 = int_to_ptr.vmem [resolvable:$false] %s3699_s28 }
  0xa3   : > { %3045 = vmatpush3.bf16.msra.mxu0 %v3508_v5  ;;  %3014 = vmatprep.subr.bf16.mxu1 %v3509_v6  ;;  %v488_v24 = vrot.slane %v456_v18, 4  ;;  %v458_v25 = vmax.bf16 %v430_v22, %v428_v19  ;;  %v459_v26 = vmax.bf16 %v431_v23, %v429_v20  ;;  %v3517_v27 = vld [vmem:[#allocation8 + $0xf0] sm:$0xff]   ;;  %v3519_v32 = vld [vmem:[#allocation8 + $0xf8] sm:$0xff]   ;;  %v432_v35 = vld [vmem:[%s4109_s12 + $0x40] sm:$0xff]  ;;  %p3697_p13 = pnand %p3696_p5, %p4566_p10  ;;  %s3701_s16 = scalar_lea.vmem %s3700_s28, 2048 }
  0xa4   : > { %3046 = vmatprep.subr.bf16.mxu0 %v3510_v7  ;;  %v489_v28 = vrot.slane %v457_v21, 4  ;;  %v3518_v29 = vld [vmem:[#allocation8 + $0x30] sm:$0xff]   ;;  %v3520_v36 = vld [vmem:[#allocation8 + $0x38] sm:$0xff]   ;;  %v433_v37 = vld [vmem:[%s4109_s12 + $0x48] sm:$0xff]  ;;  %p3702_p9 = scmp.lt.s32.totalorder %s4413_s9, %s3700_s28  ;;  %p3703_p6 = scmp.lt.s32.totalorder %s3701_s16, %s3695_s24 }
  0xa5   : > { %v520_v30 = vmax.bf16 %v488_v24, %v456_v18  ;;  %v490_v31 = vrot.slane %v458_v25, 4  ;;  %v491_v34 = vrot.slane %v459_v26, 4  ;;  %v434_v38 = vld [vmem:[%s4109_s12 + $0x50] sm:$0xff]  ;;  %v435_v39 = vld [vmem:[%s4109_s12 + $0x58] sm:$0xff]  ;;  %v436_v43 = vld [vmem:[%s4109_s12 + $0x60] sm:$0xff]  ;;  %p3698_p3 = pneg %p3697_p13 }
  0xa6   : > { %3015 = vmatpush3.bf16.msra.mxu1 %v3509_v6  ;;  %v521_v33 = vmax.bf16 %v489_v28, %v457_v21  ;;  %v460_v41 = vmax.bf16 %v434_v38, %v432_v35  ;;  %v461_v42 = vmax.bf16 %v435_v39, %v433_v37  ;;  %v437_v44 = vld [vmem:[%s4109_s12 + $0x68] sm:$0xff]  ;;  %v438_v45 = vld [vmem:[%s4109_s12 + $0x70] sm:$0xff]  ;;  %v439_v47 = vld [vmem:[%s4109_s12 + $0x78] sm:$0xff]  ;;  %p3704_p8 = por %p3703_p6, %p3702_p9 }
  0xa7   : > { %3047 = vmatpush3.bf16.msra.mxu0 %v3510_v7  ;;  %3016 = vmatprep.subr.bf16.mxu1 %v3511_v8  ;;  %v522_v46 = vmax.bf16 %v490_v31, %v458_v25  ;;  %v462_v48 = vmax.bf16 %v438_v45, %v436_v43  ;;  %v523_v49 = vmax.bf16 %v491_v34, %v459_v26  ;;  %v3521_v53 = vld [vmem:[#allocation8 + $0x180] sm:$0xff]   ;;  %v441_v60 = vld [vmem:[%s4109_s12 + $0x88] sm:$0xff]  ;;  %v442_v62 = vld [vmem:[%s4109_s12 + $0x90] sm:$0xff] }
  0xa8   : > { %3048 = vmatprep.subr.bf16.mxu0 %v3512_v9  ;;  %v4134_v40 = vcombine.low %v520_v30, %v521_v33  ;;  %v492_v50 = vrot.slane %v460_v41, 4  ;;  %v493_v51 = vrot.slane %v461_v42, 4  ;;  %v463_v52 = vmax.bf16 %v439_v47, %v437_v44  ;;  %v3522_v54 = vld [vmem:[#allocation8 + $0x100] sm:$0xff]   ;;  %v443_v63 = vld [vmem:[%s4109_s12 + $0x98] sm:$0xff]  ;;  %v3523_v2 = vld [vmem:[#allocation8 + $0x188] sm:$0xff]   ;;  %p3705_p12 = pnand %p3704_p8, %p3698_p3 }
  0xa9   : > { %v494_v55 = vrot.slane %v462_v48, 4  ;;  %v440_v59 = vld [vmem:[%s4109_s12 + $0x80] sm:$0xff]  ;;  %v4143_v61 = vcombine.low %v522_v46, %v523_v49  ;;  %v465_v4 = vmax.bf16 %v443_v63, %v441_v60  ;;  %v445_v5 = vld [vmem:[%s4109_s12 + $0xa8] sm:$0xff]  ;;  %v446_v6 = vld [vmem:[%s4109_s12 + $0xb0] sm:$0xff] }
  0xaa   : > { %3017 = vmatpush3.bf16.msra.mxu1 %v3511_v8  ;;  %3026 = vmatprep.mubr.bf16.mxu1 %v4134_v40  ;;  %v524_v56 = vmax.bf16 %v492_v50, %v460_v41  ;;  %v525_v57 = vmax.bf16 %v493_v51, %v461_v42  ;;  %v495_v58 = vrot.slane %v463_v52, 4  ;;  %v444_v0 = vld [vmem:[%s4109_s12 + $0xa0] sm:$0xff]  ;;  %v464_v3 = vmax.bf16 %v442_v62, %v440_v59  ;;  %v447_v7 = vld [vmem:[%s4109_s12 + $0xb8] sm:$0xff]  ;;  %v3524_v8 = vld [vmem:[#allocation8 + $0x108] sm:$0xff]  }
  0xab   : > { %3049 = vmatpush3.bf16.msra.mxu0 %v3512_v9  ;;  %3018 = vmatprep.subr.bf16.mxu1 %v3513_v10  ;;  %v526_v9 = vmax.bf16 %v494_v55, %v462_v48  ;;  %v466_v14 = vmax.bf16 %v446_v6, %v444_v0  ;;  %v467_v15 = vmax.bf16 %v447_v7, %v445_v5  ;;  %v3526_v16 = vld [vmem:[#allocation8 + $0x110] sm:$0xff]   ;;  %v448_v17 = vld [vmem:[%s4109_s12 + $0xc0] sm:$0xff]  ;;  %v449_v18 = vld [vmem:[%s4109_s12 + $0xc8] sm:$0xff] }
  0xac   : > { %3050 = vmatprep.subr.bf16.mxu0 %v3514_v11  ;;  %v3525_v20 = vld [vmem:[#allocation8 + $0x190] sm:$0xff]   ;;  %v451_v24 = vld [vmem:[%s4109_s12 + $0xd8] sm:$0xff]  ;;  %v453_v30 = vld [vmem:[%s4109_s12 + $0xe8] sm:$0xff] }
  0xad   : > { %v450_v23 = vld [vmem:[%s4109_s12 + $0xd0] sm:$0xff]  ;;  %v498_v25 = vrot.slane %v466_v14, 4  ;;  %v499_v26 = vrot.slane %v467_v15, 4  ;;  %v469_v28 = vmax.bf16 %v451_v24, %v449_v18  ;;  %v3528_v33 = vld [vmem:[#allocation8 + $0x118] sm:$0xff]   ;;  %v3530_v43 = vld [vmem:[#allocation8 + $0x120] sm:$0xff]  }
  0xae   : > { %3019 = vmatpush3.bf16.msra.mxu1 %v3513_v10  ;;  %v4151_v10 = vcombine.low %v524_v56, %v525_v57  ;;  %v454_v31 = vld [vmem:[%s4109_s12 + $0xf0] sm:$0xff]  ;;  %v3527_v34 = vld [vmem:[#allocation8 + $0x198] sm:$0xff]   ;;  %v3529_v44 = vld [vmem:[#allocation8 + $0x1a0] sm:$0xff]  }
  0xaf   : > { %3051 = vmatpush3.bf16.msra.mxu0 %v3514_v11  ;;  %3020 = vmatprep.subr.bf16.mxu1 %v3515_v12  ;;  %v527_v11 = vmax.bf16 %v495_v58, %v463_v52  ;;  %v501_v37 = vrot.slane %v469_v28, 4  ;;  %v530_v38 = vmax.bf16 %v498_v25, %v466_v14  ;;  %v531_v39 = vmax.bf16 %v499_v26, %v467_v15  ;;  %v3532_v50 = vld [vmem:[#allocation8 + $0x128] sm:$0xff]   ;;  %v3534_v55 = vld [vmem:[#allocation8 + $0x130] sm:$0xff]   ;;  %v3536_v58 = vld [vmem:[#allocation8 + $0x138] sm:$0xff]  }
  0xb0   : > { %3052 = vmatprep.subr.bf16.mxu0 %v3516_v13  ;;  %v3531_v51 = vld [vmem:[#allocation8 + $0x1a8] sm:$0xff]   ;;  %v3533_v56 = vld [vmem:[#allocation8 + $0x1b0] sm:$0xff]   ;;  %v3535_v59 = vld [vmem:[#allocation8 + $0x1b8] sm:$0xff]  }
  0xb1   : > { %v4158_v19 = vcombine.low %v526_v9, %v527_v11  ;;  %v533_v46 = vmax.bf16 %v501_v37, %v469_v28  ;;  %v4173_v47 = vcombine.low %v530_v38, %v531_v39  ;;  %v3537_v60 = vld [vmem:[#allocation8 + $0x40] sm:$0xff]   ;;  %v3539_v63 = vld [vmem:[#allocation8 + $0x48] sm:$0xff]   ;;  %v3544_v5 = vld [vmem:[#allocation8 + $0x158] sm:$0xff]  }
  0xb2   : > { %3021 = vmatpush3.bf16.msra.mxu1 %v3515_v12  ;;  %v496_v12 = vrot.slane %v464_v3, 4  ;;  %v3538_v62 = vld [vmem:[#allocation8 + $0x140] sm:$0xff]   ;;  %v3540_v0 = vld [vmem:[#allocation8 + $0x148] sm:$0xff]   ;;  %v3549_v11 = vld [vmem:[#allocation8 + $0x70] sm:$0xff]  }
  0xb3   : > { %3053 = vmatpush3.bf16.msra.mxu0 %v3516_v13  ;;  %3022 = vmatprep.subr.bf16.mxu1 %v3517_v27  ;;  %v497_v13 = vrot.slane %v465_v4, 4  ;;  %v3545_v6 = vld [vmem:[#allocation8 + $0x60] sm:$0xff]   ;;  %v3548_v9 = vld [vmem:[#allocation8 + $0x168] sm:$0xff]   ;;  %v3552_v14 = vld [vmem:[#allocation8 + $0x178] sm:$0xff]  }
  0xb4   : > { %3054 = vmatprep.subr.bf16.mxu0 %v3518_v29  ;;  %v528_v21 = vmax.bf16 %v496_v12, %v464_v3  ;;  %v3542_v3 = vld [vmem:[#allocation8 + $0x150] sm:$0xff]   ;;  %v3546_v7 = vld [vmem:[#allocation8 + $0x160] sm:$0xff]   ;;  %v3556_v18 = vld [vmem:[#allocation8 + $0x88] sm:$0xff]  }
  0xb5   : > { %v529_v22 = vmax.bf16 %v497_v13, %v465_v4  ;;  %v3543_v4 = vld [vmem:[#allocation8 + $0x58] sm:$0xff]   ;;  %v3550_v12 = vld [vmem:[#allocation8 + $0x170] sm:$0xff]   ;;  %v3553_v15 = vld [vmem:[#allocation8 + $0x1c0] sm:$0xff]  }
  0xb6   : > { %3023 = vmatpush3.bf16.msra.mxu1 %v3517_v27  ;;  %v468_v27 = vmax.bf16 %v450_v23, %v448_v17  ;;  %v3551_v13 = vld [vmem:[#allocation8 + $0x78] sm:$0xff]   ;;  %v3555_v17 = vld [vmem:[#allocation8 + $0x1c8] sm:$0xff]   ;;  %v3561_v24 = vld [vmem:[#allocation8 + $0x1e0] sm:$0xff]  }
  0xb7   : > { %3055 = vmatpush3.bf16.msra.mxu0 %v3518_v29  ;;  %3024 = vmatprep.subr.bf16.mxu1 %v3519_v32  ;;  %v452_v29 = vld [vmem:[%s4109_s12 + $0xe0] sm:$0xff]  ;;  %v4167_v35 = vcombine.low %v528_v21, %v529_v22  ;;  %v3558_v21 = vld [vmem:[#allocation8 + $0x90] sm:$0xff]   ;;  %v3559_v22 = vld [vmem:[#allocation8 + $0x1d8] sm:$0xff]  }
  0xb8   : > { %3056 = vmatprep.subr.bf16.mxu0 %v3520_v36  ;;  %v470_v41 = vmax.bf16 %v454_v31, %v452_v29  ;;  %v3560_v23 = vld [vmem:[#allocation8 + $0x98] sm:$0xff]   ;;  %v3562_v25 = vld [vmem:[#allocation8 + $0xa0] sm:$0xff]   ;;  %v3563_v26 = vld [vmem:[#allocation8 + $0x1e8] sm:$0xff]  }
  0xb9   : > { %v3565_v28 = vld [vmem:[#allocation8 + $0x1f0] sm:$0xff]   ;;  %v3568_v31 = vld [vmem:[#allocation8 + $0xb8] sm:$0xff]   ;;  %v3574_v37 = vld [vmem:[#allocation8 + $0x228] sm:$0xff]  }
  0xba   : > { %3025 = vmatpush3.bf16.msra.mxu1 %v3519_v32  ;;  %v455_v32 = vld [vmem:[%s4109_s12 + $0xf8] sm:$0xff]  ;;  %v502_v48 = vrot.slane %v470_v41, 4  ;;  %v3566_v29 = vld [vmem:[#allocation8 + $0xb0] sm:$0xff]  }
  0xbb   : > { %3057 = vmatpush3.bf16.msra.mxu0 %v3520_v36  ;;  %3106 = vmatprep.subr.bf16.mxu1 %v3522_v54  ;;  %v500_v36 = vrot.slane %v468_v27, 4  ;;  %v471_v42 = vmax.bf16 %v455_v32, %v453_v30  ;;  %v3567_v30 = vld [vmem:[#allocation8 + $0x1f8] sm:$0xff]   ;;  %v3569_v32 = vld [vmem:[#allocation8 + $0x200] sm:$0xff]   ;;  %v3575_v38 = vld [vmem:[#allocation8 + $0x230] sm:$0xff]  }
  0xbc   : > { %3074 = vmatprep.subr.bf16.mxu0 %v3521_v53  ;;  %v3576_v39 = vld [vmem:[#allocation8 + $0x238] sm:$0xff]  }
  0xbd   : > { %3027 = vmatmul.mubr.bf16.vlgmr.msra.gmra.mrb[0].mxu1 %v4143_v61  ;;  %v532_v45 = vmax.bf16 %v500_v36, %v468_v27  ;;  %v503_v49 = vrot.slane %v471_v42, 4  ;;  %v3564_v27 = vld [vmem:[#allocation8 + $0xa8] sm:$0xff]   ;;  %v3572_v36 = vld [vmem:[#allocation8 + $0x218] sm:$0xff]  }
  0xbe   : > { %3059 = vmatmul.mubr.bf16.vlgmr.msra.gmra.mrb[0].mxu0 %v4134_v40  ;;  %3107 = vmatpush3.bf16.msra.mxu1 %v3522_v54 }
  0xbf   : > { %3075 = vmatpush3.bf16.msra.mxu0 %v3521_v53  ;;  %3108 = vmatprep.subr.bf16.mxu1 %v3524_v8  ;;  %v4175_v52 = vcombine.low %v532_v45, %v533_v46  ;;  %v534_v53 = vmax.bf16 %v502_v48, %v470_v41  ;;  %v535_v54 = vmax.bf16 %v503_v49, %v471_v42 }
  0xc0   : > { %3076 = vmatprep.subr.bf16.mxu0 %v3523_v2  ;;  %3030 = vmatprep.mubr.bf16.mxu1 %v4151_v10 }
  0xc1   : > { %3062 = vmatprep.mubr.bf16.mxu0 %v4143_v61  ;;  %v4181_v57 = vcombine.low %v534_v53, %v535_v54 }
  0xc2   : > { %3109 = vmatpush3.bf16.msra.mxu1 %v3524_v8  ;;  %v3547_v8 = vld [vmem:[#allocation8 + $0x68] sm:$0xff]  }
  0xc3   : > { %3077 = vmatpush3.bf16.msra.mxu0 %v3523_v2  ;;  %3110 = vmatprep.subr.bf16.mxu1 %v3526_v16  ;;  %v3541_v2 = vld [vmem:[#allocation8 + $0x50] sm:$0xff]  }
  0xc4   : > { %3078 = vmatprep.subr.bf16.mxu0 %v3525_v20 }
  0xc5   : > { %3031 = vmatmul.mubr.bf16.gmra.mrb[4].mxu1 %v4158_v19 }
  0xc6   : > { %3063 = vmatmul.mubr.bf16.gmra.mrb[4].mxu0 %v4151_v10  ;;  %3111 = vmatpush3.bf16.msra.mxu1 %v3526_v16  ;;  %v3554_v16 = vld [vmem:[#allocation8 + $0x80] sm:$0xff]  }
  0xc7   : > { %3079 = vmatpush3.bf16.msra.mxu0 %v3525_v20  ;;  %3112 = vmatprep.subr.bf16.mxu1 %v3528_v33  ;;  %v3557_v20 = vld [vmem:[#allocation8 + $0x1d0] sm:$0xff]  }
  0xc8   : > { %3080 = vmatprep.subr.bf16.mxu0 %v3527_v34  ;;  %3034 = vmatprep.mubr.bf16.mxu1 %v4167_v35 }
  0xc9   : > { %3066 = vmatprep.mubr.bf16.mxu0 %v4158_v19 }
  0xca   : > { %3113 = vmatpush3.bf16.msra.mxu1 %v3528_v33  ;;  %v3570_v33 = vld [vmem:[#allocation8 + $0x208] sm:$0xff]  }
  0xcb   : > { %3081 = vmatpush3.bf16.msra.mxu0 %v3527_v34  ;;  %3114 = vmatprep.subr.bf16.mxu1 %v3530_v43  ;;  %v3571_v34 = vld [vmem:[#allocation8 + $0x210] sm:$0xff]  }
  0xcc   : > { %3082 = vmatprep.subr.bf16.mxu0 %v3529_v44 }
  0xcd   : > { %3035 = vmatmul.mubr.bf16.gmra.mrb[8].mxu1 %v4173_v47 }
  0xce   : > { %3067 = vmatmul.mubr.bf16.gmra.mrb[8].mxu0 %v4167_v35  ;;  %3115 = vmatpush3.bf16.msra.mxu1 %v3530_v43 }
  0xcf   : > { %3083 = vmatpush3.bf16.msra.mxu0 %v3529_v44  ;;  %3116 = vmatprep.subr.bf16.mxu1 %v3532_v50 }
  0xd0   : > { %3084 = vmatprep.subr.bf16.mxu0 %v3531_v51  ;;  %3038 = vmatprep.mubr.bf16.mxu1 %v4175_v52 }
  0xd1   : > { %3070 = vmatprep.mubr.bf16.mxu0 %v4173_v47 }
  0xd2   : > { %3117 = vmatpush3.bf16.msra.mxu1 %v3532_v50 }
  0xd3   : > { %3085 = vmatpush3.bf16.msra.mxu0 %v3531_v51  ;;  %3118 = vmatprep.subr.bf16.mxu1 %v3534_v55 }
  0xd4   : > { %3086 = vmatprep.subr.bf16.mxu0 %v3533_v56 }
  0xd5   : > { %3039 = vmatmul.mubr.bf16.gmra.mrb[12].mxu1 %v4181_v57 }
  0xd6   : > { %3071 = vmatmul.mubr.bf16.gmra.mrb[12].mxu0 %v4175_v52  ;;  %3119 = vmatpush3.bf16.msra.mxu1 %v3534_v55 }
  0xd7   : > { %3087 = vmatpush3.bf16.msra.mxu0 %v3533_v56  ;;  %3120 = vmatprep.subr.bf16.mxu1 %v3536_v58 }
  0xd8   : > { %3088 = vmatprep.subr.bf16.mxu0 %v3535_v59  ;;  %3090 = vmatprep.mubr.bf16.mxu0 %v4143_v61 }
  0xd9   : > { %3122 = vmatprep.mubr.bf16.mxu1 %v4134_v40 }
  0xda   : > { %3121 = vmatpush3.bf16.msra.mxu1 %v3536_v58 }
  0xdb   : > { %3089 = vmatpush3.bf16.msra.mxu0 %v3535_v59  ;;  %3138 = vmatprep.subr.bf16.mxu1 %v3537_v60 }
  0xdc   : > { %3202 = vmatprep.subr.bf16.mxu0 %v3538_v62 }
  0xdd   : > { %3123 = vmatmul.mubr.bf16.vlgmr.msra.gmra.mrb[16].mxu1 %v4143_v61 }
  0xde   : > { %3091 = vmatmul.mubr.bf16.vlgmr.msra.gmra.mrb[0].mxu0 %v4151_v10  ;;  %3139 = vmatpush3.bf16.msra.mxu1 %v3537_v60 }
  0xdf   : > { %3203 = vmatpush3.bf16.msra.mxu0 %v3538_v62  ;;  %3140 = vmatprep.subr.bf16.mxu1 %v3539_v63 }
  0xe0   : > { %3204 = vmatprep.subr.bf16.mxu0 %v3540_v0  ;;  %3094 = vmatprep.mubr.bf16.mxu0 %v4158_v19 }
  0xe1   : > { %3126 = vmatprep.mubr.bf16.mxu1 %v4151_v10 }
  0xe2   : > { %3141 = vmatpush3.bf16.msra.mxu1 %v3539_v63 }
  0xe3   : > { %3205 = vmatpush3.bf16.msra.mxu0 %v3540_v0  ;;  %3142 = vmatprep.subr.bf16.mxu1 %v3541_v2 }
  0xe4   : > { %3206 = vmatprep.subr.bf16.mxu0 %v3542_v3 }
  0xe5   : > { %3127 = vmatmul.mubr.bf16.gmra.mrb[20].mxu1 %v4158_v19 }
  0xe6   : > { %3095 = vmatmul.mubr.bf16.gmra.mrb[4].mxu0 %v4167_v35  ;;  %3143 = vmatpush3.bf16.msra.mxu1 %v3541_v2 }
  0xe7   : > { %3207 = vmatpush3.bf16.msra.mxu0 %v3542_v3  ;;  %3144 = vmatprep.subr.bf16.mxu1 %v3543_v4 }
  0xe8   : > { %3208 = vmatprep.subr.bf16.mxu0 %v3544_v5  ;;  %3098 = vmatprep.mubr.bf16.mxu0 %v4173_v47 }
  0xe9   : > { %3130 = vmatprep.mubr.bf16.mxu1 %v4167_v35 }
  0xea   : > { %3145 = vmatpush3.bf16.msra.mxu1 %v3543_v4 }
  0xeb   : > { %3209 = vmatpush3.bf16.msra.mxu0 %v3544_v5  ;;  %3146 = vmatprep.subr.bf16.mxu1 %v3545_v6 }
  0xec   : > { %3210 = vmatprep.subr.bf16.mxu0 %v3546_v7 }
  0xed   : > { %3131 = vmatmul.mubr.bf16.gmra.mrb[24].mxu1 %v4173_v47 }
  0xee   : > { %3099 = vmatmul.mubr.bf16.gmra.mrb[8].mxu0 %v4175_v52  ;;  %3147 = vmatpush3.bf16.msra.mxu1 %v3545_v6 }
  0xef   : > { %3211 = vmatpush3.bf16.msra.mxu0 %v3546_v7  ;;  %3148 = vmatprep.subr.bf16.mxu1 %v3547_v8 }
  0xf0   : > { %3212 = vmatprep.subr.bf16.mxu0 %v3548_v9  ;;  %3102 = vmatprep.mubr.bf16.mxu0 %v4181_v57 }
  0xf1   : > { %3134 = vmatprep.mubr.bf16.mxu1 %v4175_v52 }
  0xf2   : > { %3149 = vmatpush3.bf16.msra.mxu1 %v3547_v8 }
  0xf3   : > { %3213 = vmatpush3.bf16.msra.mxu0 %v3548_v9  ;;  %3150 = vmatprep.subr.bf16.mxu1 %v3549_v11 }
  0xf4   : > { %3214 = vmatprep.subr.bf16.mxu0 %v3550_v12 }
  0xf5   : > { %3135 = vmatmul.mubr.bf16.gmra.mrb[28].mxu1 %v4181_v57 }
  0xf6   : > { %3103 = vmatmul.mubr.bf16.gmra.mrb[12].mxu0 %v4119_v1  ;;  %3151 = vmatpush3.bf16.msra.mxu1 %v3549_v11 }
  0xf7   : > { %3215 = vmatpush3.bf16.msra.mxu0 %v3550_v12  ;;  %3152 = vmatprep.subr.bf16.mxu1 %v3551_v13 }
  0xf8   : > { %3216 = vmatprep.subr.bf16.mxu0 %v3552_v14  ;;  %3154 = vmatprep.mubr.bf16.mxu1 %v4119_v1 }
  0xf9   : > { %3218 = vmatprep.mubr.bf16.mxu0 %v4134_v40 }
  0xfa   : > { %3153 = vmatpush3.bf16.msra.mxu1 %v3551_v13 }
  0xfb   : > { %3217 = vmatpush3.bf16.msra.mxu0 %v3552_v14  ;;  %3170 = vmatprep.subr.bf16.mxu1 %v3553_v15 }
  0xfc   : > { %3234 = vmatprep.subr.bf16.mxu0 %v3554_v16 }
  0xfd   : > { %3155 = vmatmul.mubr.bf16.vlgmr.msra.gmra.mrb[16].mxu1 %v4134_v40 }
  0xfe   : > { %3219 = vmatmul.mubr.bf16.vlgmr.msra.gmra.mrb[16].mxu0 %v4143_v61  ;;  %3171 = vmatpush3.bf16.msra.mxu1 %v3553_v15 }
  0xff   : > { %3235 = vmatpush3.bf16.msra.mxu0 %v3554_v16  ;;  %3172 = vmatprep.subr.bf16.mxu1 %v3555_v17 }
 0x100   : > { %3236 = vmatprep.subr.bf16.mxu0 %v3556_v18  ;;  %3158 = vmatprep.mubr.bf16.mxu1 %v4143_v61 }
 0x101   : > { %3222 = vmatprep.mubr.bf16.mxu0 %v4151_v10 }
 0x102   : > { %3173 = vmatpush3.bf16.msra.mxu1 %v3555_v17 }
 0x103   : > { %3237 = vmatpush3.bf16.msra.mxu0 %v3556_v18  ;;  %3174 = vmatprep.subr.bf16.mxu1 %v3557_v20 }
 0x104   : > { %3238 = vmatprep.subr.bf16.mxu0 %v3558_v21 }
 0x105   : > { %3159 = vmatmul.mubr.bf16.gmra.mrb[20].mxu1 %v4151_v10 }
 0x106   : > { %3223 = vmatmul.mubr.bf16.gmra.mrb[20].mxu0 %v4158_v19  ;;  %3175 = vmatpush3.bf16.msra.mxu1 %v3557_v20 }
 0x107   : > { %3239 = vmatpush3.bf16.msra.mxu0 %v3558_v21  ;;  %3176 = vmatprep.subr.bf16.mxu1 %v3559_v22 }
 0x108   : > { %3240 = vmatprep.subr.bf16.mxu0 %v3560_v23  ;;  %3162 = vmatprep.mubr.bf16.mxu1 %v4158_v19 }
 0x109   : > { %3226 = vmatprep.mubr.bf16.mxu0 %v4167_v35 }
 0x10a   : > { %3177 = vmatpush3.bf16.msra.mxu1 %v3559_v22 }
 0x10b   : > { %3241 = vmatpush3.bf16.msra.mxu0 %v3560_v23  ;;  %3178 = vmatprep.subr.bf16.mxu1 %v3561_v24 }
 0x10c   : > { %3242 = vmatprep.subr.bf16.mxu0 %v3562_v25 }
 0x10d   : > { %3163 = vmatmul.mubr.bf16.gmra.mrb[24].mxu1 %v4167_v35 }
 0x10e   : > { %3227 = vmatmul.mubr.bf16.gmra.mrb[24].mxu0 %v4173_v47  ;;  %3179 = vmatpush3.bf16.msra.mxu1 %v3561_v24 }
 0x10f   : > { %3243 = vmatpush3.bf16.msra.mxu0 %v3562_v25  ;;  %3180 = vmatprep.subr.bf16.mxu1 %v3563_v26 }
 0x110   : > { %3244 = vmatprep.subr.bf16.mxu0 %v3564_v27  ;;  %3166 = vmatprep.mubr.bf16.mxu1 %v4173_v47 }
 0x111   : > { %3230 = vmatprep.mubr.bf16.mxu0 %v4175_v52 }
 0x112   : > { %3181 = vmatpush3.bf16.msra.mxu1 %v3563_v26 }
 0x113   : > { %3245 = vmatpush3.bf16.msra.mxu0 %v3564_v27  ;;  %3182 = vmatprep.subr.bf16.mxu1 %v3565_v28 }
 0x114   : > { %3246 = vmatprep.subr.bf16.mxu0 %v3566_v29 }
 0x115   : > { %3167 = vmatmul.mubr.bf16.gmra.mrb[28].mxu1 %v4175_v52 }
 0x116   : > { %3231 = vmatmul.mubr.bf16.gmra.mrb[28].mxu0 %v4181_v57  ;;  %3183 = vmatpush3.bf16.msra.mxu1 %v3565_v28 }
 0x117   : > { %3247 = vmatpush3.bf16.msra.mxu0 %v3566_v29  ;;  %3184 = vmatprep.subr.bf16.mxu1 %v3567_v30 }
 0x118   : > { %3248 = vmatprep.subr.bf16.mxu0 %v3568_v31  ;;  %3186 = vmatprep.mubr.bf16.mxu1 %v4143_v61 }
 0x119   : > { %3250 = vmatprep.mubr.bf16.mxu0 %v4119_v1 }
 0x11a   : > { %3185 = vmatpush3.bf16.msra.mxu1 %v3567_v30 }
 0x11b   : > { %3249 = vmatpush3.bf16.msra.mxu0 %v3568_v31  ;;  %3298 = vmatprep.subr.bf16.mxu1 %v3569_v32 }
 0x11c   : > { %3266 = vmatprep.subr.bf16.mxu0 %v3569_v32 }
 0x11d   : > { %3187 = vmatmul.mubr.bf16.vlgmr.msra.gmra.mrb[16].mxu1 %v4151_v10 }
 0x11e   : > { %3251 = vmatmul.mubr.bf16.vlgmr.msra.gmra.mrb[16].mxu0 %v4134_v40  ;;  %3306 = vmatpush3.bf16.msra.mxu1 %v3569_v32  ;;  %v3573_v40 = vld [vmem:[#allocation8 + $0x220] sm:$0xff]  }
 0x11f   : > { %3267 = vmatpush3.bf16.msra.mxu0 %v3569_v32  ;;  %3299 = vmatprep.subr.bf16.mxu1 %v3570_v33 }
 0x120   : > { %3268 = vmatprep.subr.bf16.mxu0 %v3570_v33  ;;  %3190 = vmatprep.mubr.bf16.mxu1 %v4158_v19 }
 0x121   : > { %3254 = vmatprep.mubr.bf16.mxu0 %v4143_v61 }
 0x122   : > { %3307 = vmatpush3.bf16.msra.mxu1 %v3570_v33 }
 0x123   : > { %3269 = vmatpush3.bf16.msra.mxu0 %v3570_v33  ;;  %3300 = vmatprep.subr.bf16.mxu1 %v3571_v34 }
 0x124   : > { %3270 = vmatprep.subr.bf16.mxu0 %v3571_v34 }
 0x125   : > { %3191 = vmatmul.mubr.bf16.gmra.mrb[20].mxu1 %v4167_v35 }
 0x126   : > { %3255 = vmatmul.mubr.bf16.gmra.mrb[20].mxu0 %v4151_v10  ;;  %3308 = vmatpush3.bf16.msra.mxu1 %v3571_v34 }
 0x127   : > { %3271 = vmatpush3.bf16.msra.mxu0 %v3571_v34  ;;  %3301 = vmatprep.subr.bf16.mxu1 %v3572_v36 }
 0x128   : > { %3272 = vmatprep.subr.bf16.mxu0 %v3572_v36  ;;  %3194 = vmatprep.mubr.bf16.mxu1 %v4173_v47 }
 0x129   : > { %3258 = vmatprep.mubr.bf16.mxu0 %v4158_v19 }
 0x12a   : > { %3309 = vmatpush3.bf16.msra.mxu1 %v3572_v36 }
 0x12b   : > { %3273 = vmatpush3.bf16.msra.mxu0 %v3572_v36  ;;  %3302 = vmatprep.subr.bf16.mxu1 %v3573_v40 }
 0x12c   : > { %3274 = vmatprep.subr.bf16.mxu0 %v3573_v40 }
 0x12d   : > { %3195 = vmatmul.mubr.bf16.gmra.mrb[24].mxu1 %v4175_v52 }
 0x12e   : > { %3259 = vmatmul.mubr.bf16.gmra.mrb[24].mxu0 %v4167_v35  ;;  %3310 = vmatpush3.bf16.msra.mxu1 %v3573_v40 }
 0x12f   : > { %3275 = vmatpush3.bf16.msra.mxu0 %v3573_v40  ;;  %3303 = vmatprep.subr.bf16.mxu1 %v3574_v37 }
 0x130   : > { %3276 = vmatprep.subr.bf16.mxu0 %v3574_v37  ;;  %3198 = vmatprep.mubr.bf16.mxu1 %v4181_v57 }
 0x131   : > { %3262 = vmatprep.mubr.bf16.mxu0 %v4173_v47 }
 0x132   : > { %3311 = vmatpush3.bf16.msra.mxu1 %v3574_v37 }
 0x133   : > { %3277 = vmatpush3.bf16.msra.mxu0 %v3574_v37  ;;  %3304 = vmatprep.subr.bf16.mxu1 %v3575_v38 }
 0x134   : > { %3278 = vmatprep.subr.bf16.mxu0 %v3575_v38 }
 0x135   : > { %3199 = vmatmul.mubr.bf16.gmra.mrb[28].mxu1 %v4119_v1 }
 0x136   : > { %3263 = vmatmul.mubr.bf16.gmra.mrb[28].mxu0 %v4175_v52  ;;  %3312 = vmatpush3.bf16.msra.mxu1 %v3575_v38 }
 0x137   : > { %3279 = vmatpush3.bf16.msra.mxu0 %v3575_v38  ;;  %3305 = vmatprep.subr.bf16.mxu1 %v3576_v39 }
 0x138   : > { %3280 = vmatprep.subr.bf16.mxu0 %v3576_v39  ;;  %3282 = vmatprep.mubr.bf16.mxu0 %v4143_v61 }
 0x139   : > { %3290 = vmatprep.mubr.bf16.mxu1 %v4173_v47 }
 0x13a   : > { %3313 = vmatpush3.bf16.msra.mxu1 %v3576_v39 }
 0x13b   : > { %3281 = vmatpush3.bf16.msra.mxu0 %v3576_v39 }
 0x13d   : > { %3291 = vmatmul.mubr.bf16.vlgmr.msra.gmra.mrb[32].mxu1 %v4175_v52 }
 0x13e   : > { %3283 = vmatmul.mubr.bf16.vlgmr.msra.gmra.mrb[16].mxu0 %v4151_v10  ;;  %3294 = vmatprep.mubr.bf16.mxu1 %v4181_v57 }
 0x13f   : > { %3286 = vmatprep.mubr.bf16.mxu0 %v4158_v19 }
 0x145   : > { %3295 = vmatmul.mubr.bf16.gmra.mrb[36].mxu1 %v4119_v1 }
 0x146   : > { %3287 = vmatmul.mubr.bf16.gmra.mrb[20].mxu0 %v4167_v35 }
 0x190   : > { %v3028_v41 = vpop.f32.mrb[0].mxu1 }
 0x191   : > { %v721_v42 = vpop.f32.mrb[1].mxu1 }
 0x192   : > { %v3029_v43 = vpop.f32.mrb[2].mxu1 }
 0x193   : > { %v724_v61 = vpop.f32.mrb[3].mxu1 }
 0x198   : > { %v3032_v44 = vpop.f32.mrb[4].mxu1 }
 0x199   : > { %v737_v45 = vpop.f32.mrb[5].mxu1 }
 0x19a   : > { %v3033_v46 = vpop.f32.mrb[6].mxu1 }
 0x19b   : > { %v740_v47 = vpop.f32.mrb[7].mxu1 }
 0x1a0   : > { %v3036_v48 = vpop.f32.mrb[8].mxu1 }
 0x1a1   : > { %v753_v49 = vpop.f32.mrb[9].mxu1 }
 0x1a2   : > { %v3037_v50 = vpop.f32.mrb[10].mxu1 }
 0x1a3   : > { %v756_v10 = vpop.f32.mrb[11].mxu1 }
 0x1a8   : > { %v3040_v51 = vpop.f32.mrb[12].mxu1 }
 0x1a9   : > { %v769_v52 = vpop.f32.mrb[13].mxu1 }
 0x1aa   : > { %v3041_v53 = vpop.f32.mrb[14].mxu1 }
 0x1ab   : > { %v772_v19 = vpop.f32.mrb[15].mxu1 }
 0x1b1   : > { %v3092_v54 = vpop.f32.mrb[0].mxu0 }
 0x1b2   : > { %v3314_v1 = vadd.f32 %v3092_v54, %v3028_v41  ;;  %v1040_v55 = vpop.f32.mrb[1].mxu0 }
 0x1b3   : > { %v4241_v35 = vadd.f32 %v1040_v55, %v721_v42  ;;  %v3093_v56 = vpop.f32.mrb[2].mxu0 }
 0x1b4   : > { %v3316_v57 = vadd.f32 %v3093_v56, %v3029_v43  ;;  %v1043_v58 = vpop.f32.mrb[3].mxu0  ;;  %v2143_v60 = vrot.slane %v3314_v1, 7 }
 0x1b5   : > { %v3317_v59 = vadd.f32 %v1043_v58, %v724_v61  ;;  %v2140_v63 = vrot.slane %v4241_v35, 7 }
 0x1b6   : > { %v2145_v62 = vrot.slane %v3316_v57, 7 }
 0x1b7   : > { %v2141_v0 = vrot.slane %v3317_v59, 7 }
 0x1b8   : > { %v2146_v2 = vsel %vm2139_vm0, %v2143_v60, %v2145_v62 }
 0x1b9   : > { %v3096_v3 = vpop.f32.mrb[4].mxu0  ;;  %v2144_v4 = vsel %vm2139_vm0, %v2141_v0, %v2143_v60  ;;  %v2142_v5 = vsel %vm2139_vm0, %v2140_v63, %v2141_v0 }
 0x1ba   : > { %v3318_v6 = vadd.f32 %v3096_v3, %v3032_v44  ;;  %v1056_v7 = vpop.f32.mrb[5].mxu0 }
 0x1bb   : > { %v3319_v8 = vadd.f32 %v1056_v7, %v737_v45  ;;  %v3097_v9 = vpop.f32.mrb[6].mxu0 }
 0x1bc   : > { %v3320_v11 = vadd.f32 %v3097_v9, %v3033_v46  ;;  %v1059_v12 = vpop.f32.mrb[7].mxu0  ;;  %v2151_v15 = vrot.slane %v3318_v6, 7 }
 0x1bd   : > { %v2147_v13 = vrot.slane %v3319_v8, 7  ;;  %v3321_v14 = vadd.f32 %v1059_v12, %v740_v47 }
 0x1be   : > { %v2153_v16 = vrot.slane %v3320_v11, 7 }
 0x1bf   : > { %v2149_v17 = vrot.slane %v3321_v14, 7  ;;  %v2148_v18 = vsel %vm2139_vm0, %v2145_v62, %v2147_v13 }
 0x1c0   : > { %v2154_v20 = vsel %vm2139_vm0, %v2151_v15, %v2153_v16 }
 0x1c1   : > { %v3100_v21 = vpop.f32.mrb[8].mxu0  ;;  %v2152_v22 = vsel %vm2139_vm0, %v2149_v17, %v2151_v15  ;;  %v2150_v23 = vsel %vm2139_vm0, %v2147_v13, %v2149_v17 }
 0x1c2   : > { %v3322_v24 = vadd.f32 %v3100_v21, %v3036_v48  ;;  %v1072_v25 = vpop.f32.mrb[9].mxu0 }
 0x1c3   : > { %v3323_v26 = vadd.f32 %v1072_v25, %v753_v49  ;;  %v3101_v27 = vpop.f32.mrb[10].mxu0 }
 0x1c4   : > { %v3324_v28 = vadd.f32 %v3101_v27, %v3037_v50  ;;  %v1075_v29 = vpop.f32.mrb[11].mxu0  ;;  %v2159_v32 = vrot.slane %v3322_v24, 7  ;;  %v2285_v27 = vlaneseq }
 0x1c5   : > { %v2155_v30 = vrot.slane %v3323_v26, 7  ;;  %v3325_v31 = vadd.f32 %v1075_v29, %v756_v10 }
 0x1c6   : > { %v2161_v33 = vrot.slane %v3324_v28, 7 }
 0x1c7   : > { %v2157_v34 = vrot.slane %v3325_v31, 7  ;;  %v2156_v36 = vsel %vm2139_vm0, %v2153_v16, %v2155_v30 }
 0x1c8   : > { %v2162_v40 = vsel %vm2139_vm0, %v2159_v32, %v2161_v33 }
 0x1c9   : > { %v3104_v37 = vpop.f32.mrb[12].mxu0  ;;  %v2160_v38 = vsel %vm2139_vm0, %v2157_v34, %v2159_v32  ;;  %v2158_v39 = vsel %vm2139_vm0, %v2155_v30, %v2157_v34 }
 0x1ca   : > { %v3326_v41 = vadd.f32 %v3104_v37, %v3040_v51  ;;  %v1088_v42 = vpop.f32.mrb[13].mxu0 }
 0x1cb   : > { %v3327_v43 = vadd.f32 %v1088_v42, %v769_v52  ;;  %v3105_v61 = vpop.f32.mrb[14].mxu0 }
 0x1cc   : > { %v3328_v44 = vadd.f32 %v3105_v61, %v3041_v53  ;;  %v1091_v45 = vpop.f32.mrb[15].mxu0  ;;  %v2167_v48 = vrot.slane %v3326_v41, 7  ;;  %v2187_v53 = vsel %vm2139_vm0, 0.0, %v2140_v63 }
 0x1cd   : > { %v2163_v46 = vrot.slane %v3327_v43, 7  ;;  %v3329_v47 = vadd.f32 %v1091_v45, %v772_v19 }
 0x1ce   : > { %v2169_v49 = vrot.slane %v3328_v44, 7 }
 0x1cf   : > { %v2165_v50 = vrot.slane %v3329_v47, 7  ;;  %v2164_v10 = vsel %vm2139_vm0, %v2161_v33, %v2163_v46  ;;  %v4294_v33 = vshrl.u32 %v2285_v27, 7 }
 0x1d0   : > { %v2170_v54 = vsel %vm2139_vm0, %v2167_v48, %v2169_v49 }
 0x1d1   : > { %v2168_v1 = vsel %vm2139_vm0, %v2165_v50, %v2167_v48  ;;  %v2166_v55 = vsel %vm2139_vm0, %v2163_v46, %v2165_v50  ;;  %v4299_v42 = vadd.s32 8, %v4294_v33  ;;  %vm2288_vm2 = vcmp.ge.s32.totalorder %v4294_v33, 1 }
 0x1d3   : > { %vm2291_vm3 = vcmp.le.s32.totalorder %v4299_v42, 8 }
 0x1f0   : > { %v3188_v35 = vpop.f32.mrb[16].mxu1 }
 0x1f1   : > { %v4259_v51 = vadd.f32 %v3188_v35, %v2144_v4  ;;  %v1542_v52 = vpop.f32.mrb[17].mxu1 }
 0x1f2   : > { %v4262_v56 = vadd.f32 %v2187_v53, %v1542_v52  ;;  %v3189_v19 = vpop.f32.mrb[18].mxu1 }
 0x1f3   : > { %v4264_v57 = vadd.f32 %v3189_v19, %v2146_v2  ;;  %v1545_v58 = vpop.f32.mrb[19].mxu1 }
 0x1f4   : > { %v4266_v59 = vadd.f32 %v2142_v5, %v1545_v58 }
 0x1f8   : > { %v3192_v60 = vpop.f32.mrb[20].mxu1 }
 0x1f9   : > { %v4268_v62 = vadd.f32 %v3192_v60, %v2152_v22  ;;  %v1558_v0 = vpop.f32.mrb[21].mxu1 }
 0x1fa   : > { %v4270_v3 = vadd.f32 %v2148_v18, %v1558_v0  ;;  %v3193_v6 = vpop.f32.mrb[22].mxu1 }
 0x1fb   : > { %v4272_v4 = vadd.f32 %v3193_v6, %v2154_v20  ;;  %v1561_v7 = vpop.f32.mrb[23].mxu1 }
 0x1fc   : > { %v4274_v8 = vadd.f32 %v2150_v23, %v1561_v7 }
 0x200   : > { %v3196_v63 = vpop.f32.mrb[24].mxu1 }
 0x201   : > { %v2198_v9 = vadd.f32 %v3196_v63, %v2160_v38  ;;  %v3260_v11 = vpop.f32.mrb[24].mxu0  ;;  %v1574_v2 = vpop.f32.mrb[25].mxu1 }
 0x202   : > { %v2196_v12 = vadd.f32 %v2156_v36, %v1574_v2  ;;  %v1914_v13 = vpop.f32.mrb[25].mxu0  ;;  %v3197_v5 = vpop.f32.mrb[26].mxu1 }
 0x203   : > { %v4276_v14 = vadd.f32 %v3197_v5, %v2162_v40  ;;  %v3261_v15 = vpop.f32.mrb[26].mxu0  ;;  %v1577_v16 = vpop.f32.mrb[27].mxu1 }
 0x204   : > { %v4278_v17 = vadd.f32 %v2158_v39, %v1577_v16  ;;  %v1917_v18 = vpop.f32.mrb[27].mxu0 }
 0x208   : > { %v3200_v21 = vpop.f32.mrb[28].mxu1 }
 0x209   : > { %v4280_v20 = vadd.f32 %v3200_v21, %v2168_v1  ;;  %v3264_v22 = vpop.f32.mrb[28].mxu0  ;;  %v1590_v23 = vpop.f32.mrb[29].mxu1 }
 0x20a   : > { %v4282_v24 = vadd.f32 %v2164_v10, %v1590_v23  ;;  %v4284_v25 = vpop.f32.mrb[29].mxu0  ;;  %v3201_v26 = vpop.f32.mrb[30].mxu1 }
 0x20b   : > { %v4286_v28 = vadd.f32 %v3201_v26, %v2170_v54  ;;  %v4288_v29 = vpop.f32.mrb[30].mxu0  ;;  %v1593_v30 = vpop.f32.mrb[31].mxu1 }
 0x20c   : > { %v4290_v31 = vadd.f32 %v2166_v55, %v1593_v30  ;;  %v4292_v32 = vpop.f32.mrb[31].mxu0 }
 0x210   : > { %v3292_v34 = vpop.f32.mrb[32].mxu1 }
 0x211   : > { %v3284_v36 = vpop.f32.mrb[16].mxu0  ;;  %v3330_v40 = vadd.f32 %v3292_v34, %v3260_v11  ;;  %v2076_v37 = vpop.f32.mrb[33].mxu1 }
 0x212   : > { %v2044_v38 = vpop.f32.mrb[17].mxu0  ;;  %v4296_v39 = vadd.f32 %v2076_v37, %v1914_v13  ;;  %v3293_v41 = vpop.f32.mrb[34].mxu1  ;;  %v2224_v45 = vrot.slane %v3284_v36, 1 }
 0x213   : > { %v3285_v43 = vpop.f32.mrb[18].mxu0  ;;  %v4301_v61 = vadd.f32 %v3293_v41, %v3261_v15  ;;  %v2079_v44 = vpop.f32.mrb[35].mxu1  ;;  %v2240_v49 = vrot.slane %v3330_v40, 1  ;;  %v2221_v50 = vrot.slane %v2044_v38, 1 }
 0x214   : > { %v2226_v46 = vrot.slane %v3285_v43, 1  ;;  %v2047_v47 = vpop.f32.mrb[19].mxu0  ;;  %v3333_v48 = vadd.f32 %v2079_v44, %v1917_v18  ;;  %v2236_v1 = vrot.slane %v4296_v39, 1 }
 0x215   : > { %v2242_v10 = vrot.slane %v4301_v61, 1  ;;  %v2222_v54 = vrot.slane %v2047_v47, 1 }
 0x216   : > { %v2227_v55 = vsel %vm2220_vm1, %v2224_v45, %v2226_v46  ;;  %v2238_v35 = vrot.slane %v3333_v48, 1 }
 0x217   : > { %v2271_v52 = vadd.f32 %v2227_v55, %v4259_v51  ;;  %v2243_v53 = vsel %vm2220_vm1, %v2240_v49, %v2242_v10  ;;  %v2223_v19 = vsel %vm2220_vm1, %v2221_v50, %v2222_v54  ;;  %v2225_v58 = vsel %vm2220_vm1, %v2222_v54, %v2224_v45 }
 0x218   : > { %v2279_v60 = vadd.f32 %v2243_v53, %v2198_v9  ;;  %v2269_v0 = vadd.f32 %v2223_v19, %v4262_v56  ;;  %v2270_v6 = vadd.f32 %v2225_v58, %v4266_v59  ;;  %v2239_v7 = vsel %vm2220_vm1, %v2236_v1, %v2238_v35  ;;  %v3296_v63 = vpop.f32.mrb[36].mxu1 }
 0x219   : > { %v2241_v11 = vsel %vm2220_vm1, %v2238_v35, %v2240_v49  ;;  %v2277_v2 = vadd.f32 %v2239_v7, %v2196_v12  ;;  %v4317_v13 = vpop.f32.mrb[20].mxu0  ;;  %v4319_v51 = vadd.f32 %v3296_v63, %v3264_v22  ;;  %v2092_v5 = vpop.f32.mrb[37].mxu1  ;;  %v2300_v15 = vsel %vm2288_vm2, %v2271_v52, 0.0 }
 0x21a   : > { %v2298_v9 = vsel %vm2288_vm2, %v2269_v0, 0.0  ;;  %v2299_v56 = vsel %vm2291_vm3, %v2270_v6, 0.0  ;;  %v2060_v59 = vpop.f32.mrb[21].mxu0  ;;  %v3297_v16 = vpop.f32.mrb[38].mxu1  ;;  %v2278_v22 = vadd.f32 %v2241_v11, %v4278_v17  ;;  %v2417_v36 = vmul.f32 %v2300_v15, %v2300_v15 }
 0x21b   : > { %v2821_v18 = vpack.c.bf16 %v2299_v56, %v2298_v9  ;;  %v2394_v21 = vadd.f32 %v2299_v56, %v2298_v9  ;;  %v2415_v23 = vmul.f32 %v2298_v9, %v2298_v9  ;;  %v3289_v12 = vpop.f32.mrb[22].mxu0  ;;  %v2095_v26 = vpop.f32.mrb[39].mxu1  ;;  %v2416_v27 = vmul.f32 %v2299_v56, %v2299_v56 }
 0x21c   : > { %v4330_v30 = vsel %vm2288_vm2, %v2277_v2, 0.0  ;;  %v2063_v34 = vpop.f32.mrb[23].mxu0  ;;  %v2232_v40 = vrot.slane %v4317_v13, 1  ;;  %v2228_v37 = vrot.slane %v2060_v59, 1  ;;  %v4338_v41 = vsel %vm2291_vm3, %v2278_v22, 0.0 }
 0x21d   : > { %2822 = vst [vmem:[%s4332_s26] sm:$0xff] %v2821_v18   ;;  %v2395_v38 = vadd.f32 %v2394_v21, %v2300_v15  ;;  %v2431_v39 = vadd.f32 %v2416_v27, %v2415_v23  ;;  %v3335_v17 = vadd.f32 %v2092_v5, %v4284_v25  ;;  %v2234_v43 = vrot.slane %v3289_v12, 1 }
 0x21e   : > { %v2841_v61 = vpack.c.bf16 %v4338_v41, %v4330_v30  ;;  %v2248_v44 = vrot.slane %v4319_v51, 1  ;;  %v2229_v45 = vsel %vm2220_vm1, %v2226_v46, %v2228_v37  ;;  %v3336_v47 = vadd.f32 %v3297_v16, %v4288_v29 }
 0x21f   : > { %v2272_v48 = vadd.f32 %v2229_v45, %v4264_v57  ;;  %v2432_v49 = vadd.f32 %v2431_v39, %v2417_v36  ;;  %v2244_v50 = vrot.slane %v3335_v17, 1  ;;  %v2235_v54 = vsel %vm2220_vm1, %v2232_v40, %v2234_v43 }
 0x220   : > { %2862 = vst [vmem:[%s4332_s26 + $0x20] sm:$0xff] %v2841_v61   ;;  %v2237_v55 = vsel %vm2220_vm1, %v2234_v43, %v2236_v1  ;;  %v2275_v25 = vadd.f32 %v2235_v54, %v4268_v62  ;;  %v2250_v35 = vrot.slane %v3336_v47, 1  ;;  %v2230_v52 = vrot.slane %v2063_v34, 1 }
 0x221   : > { %v2301_v53 = vsel %vm2291_vm3, %v2272_v48, 0.0  ;;  %v2245_v46 = vsel %vm2220_vm1, %v2242_v10, %v2244_v50  ;;  %v2276_v29 = vadd.f32 %v2237_v55, %v4272_v4  ;;  %v3337_v57 = vadd.f32 %v2095_v26, %v4292_v32 }
 0x222   : > { %v2826_v19 = vpack.c.bf16 %v2301_v53, %v2300_v15  ;;  %v2396_v58 = vadd.f32 %v2395_v38, %v2301_v53  ;;  %v2418_v0 = vmul.f32 %v2301_v53, %v2301_v53  ;;  %v2280_v1 = vadd.f32 %v2245_v46, %v4276_v14 }
 0x223   : > { %v2304_v62 = vsel %vm2288_vm2, %v2275_v25, 0.0  ;;  %v2305_v6 = vsel %vm2291_vm3, %v2276_v29, 0.0  ;;  %v2251_v7 = vsel %vm2220_vm1, %v2248_v44, %v2250_v35  ;;  %v2268_v10 = vsel %vm2220_vm1, %v2250_v35, 0.0 }
 0x224   : > { %v4365_v4 = vsel %vm2288_vm2, %v2279_v60, 0.0  ;;  %2859 = vst [vmem:[%s4332_s26 + $0x8] sm:$0xff] %v2826_v19   ;;  %v2433_v32 = vadd.f32 %v2432_v49, %v2418_v0  ;;  %v4370_v14 = vsel %vm2291_vm3, %v2280_v1, 0.0  ;;  %v2836_v63 = vpack.c.bf16 %v2305_v6, %v2304_v62 }
 0x225   : > { %v2846_v11 = vpack.c.bf16 %v4370_v14, %v4365_v4  ;;  %v2283_v2 = vadd.f32 %v2251_v7, %v4280_v20  ;;  %v2284_v13 = vadd.f32 %v2268_v10, %v4286_v28  ;;  %v2231_v51 = vsel %vm2220_vm1, %v2228_v37, %v2230_v52 }
 0x226   : > { %2861 = vst [vmem:[%s4332_s26 + $0x18] sm:$0xff] %v2836_v63   ;;  %v2233_v60 = vsel %vm2220_vm1, %v2230_v52, %v2232_v40  ;;  %v2246_v5 = vrot.slane %v3337_v57, 1  ;;  %v2273_v9 = vadd.f32 %v2231_v51, %v4270_v3  ;;  %v2422_v33 = vmul.f32 %v2305_v6, %v2305_v6 }
 0x227   : > { %2863 = vst [vmem:[%s4332_s26 + $0x28] sm:$0xff] %v2846_v11   ;;  %v4382_v15 = vsel %vm2288_vm2, %v2283_v2, 0.0  ;;  %v2274_v20 = vadd.f32 %v2233_v60, %v4274_v8  ;;  %v4388_v28 = vsel %vm2291_vm3, %v2284_v13, 0.0 }
 0x228   : > { %v2247_v56 = vsel %vm2220_vm1, %v2244_v50, %v2246_v5  ;;  %v2249_v59 = vsel %vm2220_vm1, %v2246_v5, %v2248_v44  ;;  %v2856_v16 = vpack.c.bf16 %v4388_v28, %v4382_v15  ;;  %v2302_v18 = vsel %vm2288_vm2, %v2273_v9, 0.0 }
 0x229   : > { %v2303_v3 = vsel %vm2291_vm3, %v2274_v20, 0.0  ;;  %v2397_v23 = vadd.f32 %v2396_v58, %v2302_v18  ;;  %v2419_v8 = vmul.f32 %v2302_v18, %v2302_v18  ;;  %v2281_v12 = vadd.f32 %v2247_v56, %v4282_v24 }
 0x22a   : > { %v2831_v21 = vpack.c.bf16 %v2303_v3, %v2302_v18  ;;  %2865 = vst [vmem:[%s4332_s26 + $0x38] sm:$0xff] %v2856_v16   ;;  %v2282_v26 = vadd.f32 %v2249_v59, %v4290_v31  ;;  %v2420_v22 = vmul.f32 %v2303_v3, %v2303_v3  ;;  %v2421_v24 = vmul.f32 %v2304_v62, %v2304_v62 }
 0x22b   : > { %v2398_v27 = vadd.f32 %v2397_v23, %v2303_v3  ;;  %v2434_v34 = vadd.f32 %v2433_v32, %v2419_v8  ;;  %v2310_v36 = vsel %vm2288_vm2, %v2281_v12, 0.0 }
 0x22c   : > { %2860 = vst [vmem:[%s4332_s26 + $0x10] sm:$0xff] %v2831_v21   ;;  %v2311_v40 = vsel %vm2291_vm3, %v2282_v26, 0.0 }
 0x22d   : > { %v2399_v31 = vadd.f32 %v2398_v27, %v2304_v62  ;;  %v2435_v37 = vadd.f32 %v2434_v34, %v2420_v22  ;;  %v2851_v38 = vpack.c.bf16 %v2311_v40, %v2310_v36 }
 0x22f   : > { %v2400_v39 = vadd.f32 %v2399_v31, %v2305_v6  ;;  %v2436_v17 = vadd.f32 %v2435_v37, %v2421_v24  ;;  %2864 = vst [vmem:[%s4332_s26 + $0x30] sm:$0xff] %v2851_v38  }
 0x230   : > { %3708 = shalt.err (!%p3705_p12)
}
 0x231   : > { %s3709_s6 = scalar_lea.hbm %s4411_s8, 1024  ;;  %s3713_s22 = scalar_lea.hbm %s4517_s4, 2048 }
 0x232   : > { %p3710_p0 = scmp.ne.s32.totalorder %s4411_s8, %s3709_s6  ;;  %p3714_p1 = scmp.lt.u32.totalorder %s4411_s8, %s4517_s4 }
 0x233   : > { %p3715_p4 = scmp.lt.u32.totalorder %s3713_s22, %s3709_s6  ;;  %p3717_p5 = scmp.lt.u32.totalorder %s3709_s6, %s4411_s8 }
 0x234   : > { %p3711_p2 = pnand %p3710_p0, %p4566_p10 }
 0x235   : > { %p3716_p11 = por %p3715_p4, %p3714_p1 }
 0x236   : > { %p3712_p7 = pneg %p3711_p2 }
 0x237   : > { %p3718_p13 = por %p3717_p5, %p3716_p11 }
 0x239   : > { %p3719_p3 = pnand %p3718_p13, %p3712_p7 }
 0x23b   : > { %3722 = shalt.err (!%p3719_p3)
}
 0x23c   : > { %s3829_s29 = smov 64   ;;  %s3830_s25 = smov 4   ;;  %v2423_v42 = vmul.f32 %v4330_v30, %v4330_v30  ;;  %v2401_v43 = vadd.f32 %v2400_v39, %v4330_v30  ;;  %v2437_v61 = vadd.f32 %v2436_v17, %v2422_v33  ;;  %v2424_v44 = vmul.f32 %v4338_v41, %v4338_v41 }
 0x23d   : > { %3420 = dma.vmem_to_hbm [thread:$0]  (%p4566_p10), %s4413_s9, 1024, %s4411_s8, %s2457_s11, %s3829_s29, %s3829_s29, %s3830_s25   ;;  %v2425_v48 = vmul.f32 %v4365_v4, %v4365_v4  ;;  %v2426_v54 = vmul.f32 %v4370_v14, %v4370_v14  ;;  %v2427_v35 = vmul.f32 %v2310_v36, %v2310_v36  ;;  %v2428_v46 = vmul.f32 %v2311_v40, %v2311_v40 }
 0x23e   : > { %v2438_v45 = vadd.f32 %v2437_v61, %v2423_v42  ;;  %v2402_v47 = vadd.f32 %v2401_v43, %v4338_v41  ;;  %v2429_v41 = vmul.f32 %v4382_v15, %v4382_v15  ;;  %v2430_v58 = vmul.f32 %v4388_v28, %v4388_v28  ;;  %s2691_s13 = sshll.u32 %s4100_s15, 3  ;;  %s2794_s12 = sshll.u32 %s3809_s21, 7 }
 0x23f   : > { %s398_s17 = scalar_lea.vmem [#allocation11], %s2691_s13  ;;  %vm2453_vm4 = vcmask 1041408   ;;  %s4464_s14 = scalar_lea.hbm %s4518_s5, %s2794_s12 }
 0x240   : > { %v2403_v49 = vadd.f32 %v2402_v47, %v4365_v4  ;;  %v2439_v50 = vadd.f32 %v2438_v45, %v2424_v44  ;;  %s2495_s26 = sshll.u32 %s398_s17, 4  ;;  %s2462_s21 = scalar_lea.sflag [#allocation12], %s4100_s15  ;;  %s4466_s26 = int_to_ptr.vmem [resolvable:$true] %s2495_s26 }
 0x241   : > { %s3723_s1 = scalar_lea.vmem %s4466_s26, 128  ;;  %s3831_s8 = smov [#allocation11]  }
 0x242   : > { %v2404_v55 = vadd.f32 %v2403_v49, %v4370_v14  ;;  %v2440_v25 = vadd.f32 %v2439_v50, %v2425_v48  ;;  %p3724_p9 = scmp.ne.s32.totalorder %s4466_s26, %s3723_s1  ;;  %s3727_s11 = sshll.u32 %s3831_s8, 4  ;;  %s3728_s11 = int_to_ptr.vmem [resolvable:$false] %s3727_s11 }
 0x243   : > { %s3729_s24 = scalar_lea.vmem %s3728_s11, 256  ;;  %p3730_p12 = scmp.lt.s32.totalorder %s4466_s26, %s3728_s11 }
 0x244   : > { %v2405_v30 = vadd.f32 %v2404_v55, %v2310_v36  ;;  %v2441_v52 = vadd.f32 %v2440_v25, %v2426_v54  ;;  %p3725_p6 = pnand %p3724_p9, %p4566_p10  ;;  %p3731_p0 = scmp.lt.s32.totalorder %s3729_s24, %s3723_s1 }
 0x246   : > { %v2406_v53 = vadd.f32 %v2405_v30, %v2311_v40  ;;  %v2442_v29 = vadd.f32 %v2441_v52, %v2427_v35  ;;  %p3726_p8 = pneg %p3725_p6  ;;  %p3732_p2 = por %p3731_p0, %p3730_p12 }
 0x248   : > { %v2407_v57 = vadd.f32 %v2406_v53, %v4382_v15  ;;  %v2443_v19 = vadd.f32 %v2442_v29, %v2428_v46  ;;  %p3733_p7 = pnand %p3732_p2, %p3726_p8 }
 0x24a   : > { %v2408_v0 = vadd.f32 %v2407_v57, %v4388_v28  ;;  %v2444_v1 = vadd.f32 %v2443_v19, %v2429_v41 }
 0x24c   : > { %v2409_v62 = vrot.slane %v2408_v0, 4  ;;  %v2445_v6 = vadd.f32 %v2444_v1, %v2430_v58 }
 0x24e   : > { %v2410_v7 = vadd.f32 %v2409_v62, %v2408_v0  ;;  %v2446_v10 = vrot.slane %v2445_v6, 4 }
 0x250   : > { %v2411_v4 = vrot.slane %v2410_v7, 2  ;;  %v2447_v32 = vadd.f32 %v2446_v10, %v2445_v6 }
 0x252   : > { %v2412_v14 = vadd.f32 %v2411_v4, %v2410_v7  ;;  %v2448_v63 = vrot.slane %v2447_v32, 2 }
 0x254   : > { %v2413_v11 = vrot.slane %v2412_v14, 1  ;;  %v2449_v2 = vadd.f32 %v2448_v63, %v2447_v32 }
 0x256   : > { %v2450_v13 = vrot.slane %v2449_v2, 1  ;;  %v2414_v51 = vadd.f32 %v2413_v11, %v2412_v14 }
 0x258   : > { %v2451_v60 = vadd.f32 %v2450_v13, %v2449_v2 }
 0x25a   : > { %v2452_v5 = vsel %vm2139_vm0, %v2414_v51, %v2451_v60 }
 0x25b   : > { %v2454_v15 = vsel %vm2453_vm4, %v2452_v5, 0.0 }
 0x25c   : > { %2455 = vst [vmem:[%s398_s17] sm:$0xff] %v2454_v15 }
 0x25d   : > { %3736 = shalt.err (!%p3733_p7)
}
 0x25e   : > { %s3737_s15 = scalar_lea.hbm %s4464_s14, 128  ;;  %s3741_s16 = scalar_lea.hbm %s4518_s5, 256 }
 0x25f   : > { %p3738_p1 = scmp.ne.s32.totalorder %s4464_s14, %s3737_s15  ;;  %p3742_p5 = scmp.lt.u32.totalorder %s4464_s14, %s4518_s5 }
 0x260   : > { %p3743_p13 = scmp.lt.u32.totalorder %s3741_s16, %s3737_s15  ;;  %p3745_p9 = scmp.lt.u32.totalorder %s3737_s15, %s4464_s14 }
 0x261   : > { %p3739_p4 = pnand %p3738_p1, %p4566_p10 }
 0x262   : > { %p3744_p3 = por %p3743_p13, %p3742_p5 }
 0x263   : > { %p3740_p11 = pneg %p3739_p4 }
 0x264   : > { %p3746_p6 = por %p3745_p9, %p3744_p3 }
 0x266   : > { %p3747_p8 = pnand %p3746_p6, %p3740_p11 }
 0x268   : > { %3750 = shalt.err (!%p3747_p8)
}
 0x269   : > { %3421 = dma.vmem_to_hbm [thread:$0]  (%p4566_p10), %s4466_s26, 128, %s4464_s14, %s2462_s21  }
 0x26a PF: > { %s4567_s18 = sld [smem:[#allocation18_spill]]  ;;  %s4568_s22 = sld [smem:[#allocation24_spill]] }
 0x26b   : > { %s4569_s23 = sld [smem:[#allocation21_spill]] }
 0x270   : > { %s2507_s30 = sand.u32 1, %s4567_s18   ;;  %p4570_p12 = scmp.ne.s32.totalorder %s4568_s22, 0 }
 0x271   : > { %p4571_p0 = scmp.ge.s32.totalorder %s4569_s23, 2  ;;  %s2508_s29 = scalar_lea.sflag [#allocation4], %s2507_s30 }
 0x273   : > { %p3439_p2 = pnand %p4571_p0, %p4570_p12 }
 0x275   : > { %3788 = dma.done.wait (!%p3439_p2), %s2508_s29, 1024  }
 0x276   : > { %3790 = vsyncadd (!%p3439_p2), %s2508_s29, 4294966272  ;;  %s2517_s25 = scalar_lea.sflag [#allocation12], %s2507_s30 }
 0x277   : > { %3792 = dma.done.wait (!%p3439_p2), %s2517_s25, 128  }
 0x278   : > { %3794 = vsyncadd (!%p3439_p2), %s2517_s25, 4294967168  ;;  %s29_s23 = sadd.s32 1, %s4569_s23   ;;  %s4572_s10 = sld [smem:[#allocation19_spill]] }
 0x279   : > { %p26_p7 = scmp.ge.s32.totalorder %s29_s23, 4   ;;  %s4573_s20 = sld [smem:[#allocation23_spill]] }
 0x27a   : > { %s4574_s21 = sld [smem:[#allocation20_spill]]  ;;  %s4575_s22 = sld [smem:[#allocation22_spill]] }
 0x27b   : > { %s4576_s18 = smov %s3801_s19  ;;  %28 = sbr.rel (!%p26_p7) target bundleno = 13 (0xd), region = 134 }
 0x27e   : > { %s4577_s19 = smov %s4572_s10 }
 0x282   :  { %2522 = vsyncpa [#allocation3], 1 }
 0x283   :  { %2524 = vsyncpa [#allocation3 + $0x1], 1 }
 0x284   :  { %2525 = vsyncpa [#allocation6], 1 }
 0x285   :  { %2527 = vsyncpa [#allocation6 + $0x1], 1 }
 0x286   :  { %2528 = vsyncpa [#allocation9], 1 }
 0x287   :  { %2529 = vsyncpa [#allocation4], 1 }
 0x288   :  { %2531 = vsyncpa [#allocation4 + $0x1], 1 }
 0x289   :  { %2532 = vsyncpa [#allocation12], 1 }
 0x28a   :  { %2534 = vsyncpa [#allocation12 + $0x1], 1 }

</bundles_post_ra>
